<compile_context>
chip_gen: v7x
topology: tpu7x:2x2x1
jax: 0.10.0
libtpu: 0.0.40
codegen_flags: <defaults>
</compile_context>

<pallas_src>
import functools

import jax
import jax.numpy as jnp
from jax.experimental import pallas as pl
from jax.experimental.pallas import tpu as pltpu

LANE = 128


def _round_up(x, m):
    return ((x + m - 1) // m) * m


# ----------------------------------------------------------------------------
# Kernel: fused concat + halo pad + (conv3x3 -> +bias -> ReLU) * 2
# for one (batch, row-tile) grid point.
# ----------------------------------------------------------------------------
def _up_double_conv_kernel(x2t_ref, x2m_ref, x2b_ref,
                           x1t_ref, x1m_ref, x1b_ref,
                           w1_ref, b1_ref, w2_ref, b2_ref,
                           o_ref,
                           xin_ref, mid_ref, acc1_ref, acc2_ref):
    TH = x2m_ref.shape[1]
    W = x2m_ref.shape[2]
    C2 = x2m_ref.shape[3]           # padded x2 channels (multiple of 128)
    C1 = x1m_ref.shape[3]           # padded x1 channels (multiple of 128)
    Cin = C2 + C1
    Cmid = w1_ref.shape[2]
    dt = xin_ref.dtype              # bf16 staging / matmul operand dtype

    HROWS = TH + 4                  # input rows: TH interior + 2-row halo each side
    MROWS = TH + 2                  # conv1 output rows (= mid rows, 1-row halo for conv2)

    t = pl.program_id(1)
    n_t = pl.num_programs(1)

    # ---- stage fused concat([x2, x1], channel) + halos in VMEM ----
    # 1-px column halo = conv zero padding (interior columns fully overwritten).
    zc = jnp.zeros((HROWS, 1, Cin), dt)
    xin_ref[:, 0:1, :] = zc
    xin_ref[:, W + 1:W + 2, :] = zc

    top_ok = (t > 0).astype(dt)         # top 2 halo rows are outside the image at t == 0
    bot_ok = (t < n_t - 1).astype(dt)   # bottom 2 halo rows are outside at the last tile

    xin_ref[0:2, 1:W + 1, :C2] = x2t_ref[0] * top_ok
    xin_ref[0:2, 1:W + 1, C2:] = x1t_ref[0] * top_ok
    xin_ref[2:TH + 2, 1:W + 1, :C2] = x2m_ref[0]
    xin_ref[2:TH + 2, 1:W + 1, C2:] = x1m_ref[0]
    xin_ref[TH + 2:TH + 4, 1:W + 1, :C2] = x2b_ref[0] * bot_ok
    xin_ref[TH + 2:TH + 4, 1:W + 1, C2:] = x1b_ref[0] * bot_ok

    # ---- conv1: 9 accumulating MXU dots (BN scale already folded into w1) ----
    # dx outer so the sublane-shifted column slab is loaded once per dx.
    for dx in range(3):
        slab = xin_ref[:, dx:dx + W, :]                 # (HROWS, W, Cin)
        for dy in range(3):
            k = dy * 3 + dx
            patch = slab[dy:dy + MROWS].reshape(MROWS * W, Cin)
            c = jnp.dot(patch, w1_ref[k], preferred_element_type=jnp.float32)
            if dx == 0 and dy == 0:
                acc1_ref[...] = c
            else:
                acc1_ref[...] += c
    y1 = jnp.maximum(acc1_ref[...] + b1_ref[...], 0.0)  # f32 epilogue

    # ---- stage y1 (bf16) with a 1-px halo for conv2 ----
    zc2 = jnp.zeros((MROWS, 1, Cmid), dt)
    mid_ref[:, 0:1, :] = zc2
    mid_ref[:, W + 1:W + 2, :] = zc2
    mid_ref[:, 1:W + 1, :] = y1.astype(dt).reshape(MROWS, W, Cmid)

    # y1 rows outside the image are conv2's ZERO padding (not conv1-of-padding).
    @pl.when(t == 0)
    def _():
        mid_ref[0:1, :, :] = jnp.zeros((1, W + 2, Cmid), dt)

    @pl.when(t == n_t - 1)
    def _():
        mid_ref[MROWS - 1:MROWS, :, :] = jnp.zeros((1, W + 2, Cmid), dt)

    # ---- conv2: 9 accumulating MXU dots ----
    for dx in range(3):
        slab = mid_ref[:, dx:dx + W, :]                 # (MROWS, W, Cmid)
        for dy in range(3):
            k = dy * 3 + dx
            patch = slab[dy:dy + TH].reshape(TH * W, Cmid)
            c = jnp.dot(patch, w2_ref[k], preferred_element_type=jnp.float32)
            if dx == 0 and dy == 0:
                acc2_ref[...] = c
            else:
                acc2_ref[...] += c
    y2 = jnp.maximum(acc2_ref[...] + b2_ref[...], 0.0)
    o_ref[0] = y2.astype(o_ref.dtype)       # lane-dense bf16 store (Cout_p % 128 == 0)


def up_double_conv_pallas(x2p, x1p, w1p, b1p, w2p, b2p, *, row_tile=8):
    """x2p/x1p: (N, H, W, C*_p) bf16, channels pre-padded to multiples of 128.
    w1p: (9, C2p+C1p, Cmid_p) bf16 (BN1 scale folded in), b1p: (1, Cmid_p) f32.
    w2p: (9, Cmid_p, Cout_p) bf16 (BN2 scale folded in), b2p: (1, Cout_p) f32.
    Returns (N, H*W, Cout_p) bf16."""
    N, H, W, C2p = x2p.shape
    C1p = x1p.shape[-1]
    Cin_p = C2p + C1p
    assert w1p.shape[1] == Cin_p
    Cmid_p = w1p.shape[2]
    Cout_p = w2p.shape[2]
    assert H % 2 == 0, "row tiling needs an even image height"

    TH = max(2, min(row_tile, H))
    while H % TH != 0 or TH % 2 != 0:
        TH -= 1
    T = H // TH
    TH2 = TH // 2

    # Overlapping (TH+4)-row input windows expressed with three non-overlapping
    # Blocked specs per input; out-of-range halo blocks are clamped here and
    # zeroed in the kernel.
    top_map = lambda n, t: (n, jnp.maximum(t * TH2 - 1, 0), 0, 0)                 # rows r0-2, r0-1
    main_map = lambda n, t: (n, t, 0, 0)                                          # rows r0 .. r0+TH-1
    bot_map = lambda n, t: (n, jnp.minimum(t * TH2 + TH2, H // 2 - 1), 0, 0)      # rows r0+TH, r0+TH+1

    def act_specs(c):
        return [pl.BlockSpec((1, 2, W, c), top_map),
                pl.BlockSpec((1, TH, W, c), main_map),
                pl.BlockSpec((1, 2, W, c), bot_map)]

    param_specs = [
        pl.BlockSpec(w1p.shape, lambda n, t: (0, 0, 0)),
        pl.BlockSpec(b1p.shape, lambda n, t: (0, 0)),
        pl.BlockSpec(w2p.shape, lambda n, t: (0, 0, 0)),
        pl.BlockSpec(b2p.shape, lambda n, t: (0, 0)),
    ]

    scratch = [
        pltpu.VMEM((TH + 4, W + 2, Cin_p), jnp.bfloat16),    # concat + 2-row halo stage
        pltpu.VMEM((TH + 2, W + 2, Cmid_p), jnp.bfloat16),   # y1 + 1-row halo
        pltpu.VMEM(((TH + 2) * W, Cmid_p), jnp.float32),     # conv1 f32 accumulator
        pltpu.VMEM((TH * W, Cout_p), jnp.float32),           # conv2 f32 accumulator
    ]

    # Scoped-VMEM budget: scratch + double-buffered activation/output/param blocks.
    bf2, f4 = 2, 4
    est = ((TH + 4) * (W + 2) * Cin_p * bf2
           + (TH + 2) * (W + 2) * Cmid_p * bf2
           + (TH + 2) * W * Cmid_p * f4
           + TH * W * Cout_p * f4
           + 2 * (TH + 4) * W * Cin_p * bf2              # x2 + x1 blocks (double buffered)
           + 2 * TH * W * Cout_p * bf2                   # output block (double buffered)
           + 2 * (9 * Cin_p * Cmid_p + 9 * Cmid_p * Cout_p) * bf2
           + 2 * (Cmid_p + Cout_p) * f4)
    vmem_limit = int(max(32 << 20, min(2 * est + (4 << 20), 100 << 20)))

    return pl.pallas_call(
        _up_double_conv_kernel,
        out_shape=jax.ShapeDtypeStruct((N, H * W, Cout_p), jnp.bfloat16),
        grid_spec=pltpu.PrefetchScalarGridSpec(
            num_scalar_prefetch=0,
            grid=(N, T),
            in_specs=act_specs(C2p) + act_specs(C1p) + param_specs,
            out_specs=pl.BlockSpec((1, TH * W, Cout_p), lambda n, t: (n, t, 0)),
            scratch_shapes=scratch,
        ),
        compiler_params=pltpu.CompilerParams(
            dimension_semantics=("parallel", "parallel"),
            vmem_limit_bytes=vmem_limit),
    )(x2p, x2p, x2p, x1p, x1p, x1p, w1p, b1p, w2p, b2p)


# ----------------------------------------------------------------------------
# JAX glue: bilinear x2 upsample (align_corners=True), layout, param prep.
# ----------------------------------------------------------------------------
def upsample_bilinear_x2_align_corners(x):
    """x: (N, H, W, C) -> (N, 2H, 2W, C); matches torch Upsample(scale_factor=2,
    mode='bilinear', align_corners=True)."""
    N, H, W, C = x.shape
    Ho, Wo = 2 * H, 2 * W

    def coords(n_in, n_out):
        if n_in == 1:
            return jnp.zeros((n_out,), jnp.float32)
        return jnp.arange(n_out, dtype=jnp.float32) * ((n_in - 1) / (n_out - 1))

    ys = coords(H, Ho)
    xs = coords(W, Wo)
    y0 = jnp.floor(ys).astype(jnp.int32)
    y1 = jnp.minimum(y0 + 1, H - 1)
    wy = ys - y0.astype(jnp.float32)
    x0 = jnp.floor(xs).astype(jnp.int32)
    x1 = jnp.minimum(x0 + 1, W - 1)
    wx = xs - x0.astype(jnp.float32)

    top = x[:, y0, :, :]
    bot = x[:, y1, :, :]
    rows = top * (1.0 - wy)[None, :, None, None] + bot * wy[None, :, None, None]
    left = rows[:, :, x0, :]
    right = rows[:, :, x1, :]
    return left * (1.0 - wx)[None, None, :, None] + right * wx[None, None, :, None]


def fold_bn(conv_bias, gamma, beta, mean, var, eps=1e-5):
    scale = gamma / jnp.sqrt(var + eps)
    bias = (conv_bias - mean) * scale + beta
    return scale, bias


def prepare_params(w1, s1, b1, w2, s2, b2, *, c2, c1, lane=LANE):
    """Fold BN scale into the conv weights, re-lay out the Cin axis so the x2 /
    x1 channel groups each start at a 128-lane boundary, zero-pad all channel
    dims to lane multiples, and cast the matmul operands to bf16 (biases f32)."""
    taps, cin, cmid = w1.shape
    cout = w2.shape[-1]
    assert cin == c2 + c1
    c2p, c1p = _round_up(c2, lane), _round_up(c1, lane)
    cmid_p, cout_p = _round_up(cmid, lane), _round_up(cout, lane)

    w1s = w1 * s1[None, None, :]
    w1p = jnp.zeros((taps, c2p + c1p, cmid_p), jnp.float32)
    w1p = w1p.at[:, :c2, :cmid].set(w1s[:, :c2, :])            # x2 channel group
    w1p = w1p.at[:, c2p:c2p + c1, :cmid].set(w1s[:, c2:, :])   # x1 channel group
    b1p = jnp.zeros((1, cmid_p), jnp.float32).at[0, :cmid].set(b1)

    w2s = w2 * s2[None, None, :]
    w2p = jnp.zeros((taps, cmid_p, cout_p), jnp.float32).at[:, :cmid, :cout].set(w2s)
    b2p = jnp.zeros((1, cout_p), jnp.float32).at[0, :cout].set(b2)

    return (w1p.astype(jnp.bfloat16), b1p, w2p.astype(jnp.bfloat16), b2p)


def up_forward(x1_nchw, x2_nchw, params, *, out_channels, row_tile=8):
    """Forward of `Up(in_channels, out_channels, bilinear=True)`.
    x1_nchw: (N, C1, H1, W1), x2_nchw: (N, C2, H2, W2), C1 + C2 = in_channels."""
    w1p, b1p, w2p, b2p = params
    x1 = jnp.transpose(x1_nchw, (0, 2, 3, 1)).astype(jnp.float32)
    x2 = jnp.transpose(x2_nchw, (0, 2, 3, 1)).astype(jnp.float32)

    # TODO(synk): fuse the bilinear x2 (align_corners) upsample into the kernel
    # (scalar-prefetched y0/y1/wy row tables) to remove this extra HBM pass.
    x1 = upsample_bilinear_x2_align_corners(x1)
    diffY = x2.shape[1] - x1.shape[1]
    diffX = x2.shape[2] - x1.shape[2]
    if diffY or diffX:
        x1 = jnp.pad(x1, ((0, 0),
                          (diffY // 2, diffY - diffY // 2),
                          (diffX // 2, diffX - diffX // 2),
                          (0, 0)))

    N, H, W, c2 = x2.shape
    c1 = x1.shape[-1]
    c2p, c1p = _round_up(c2, LANE), _round_up(c1, LANE)
    assert w1p.shape[1] == c2p + c1p, "params prepared for different channel counts"

    # Lane-align the channel groups so all in-kernel stores are full-width.
    x2p = jnp.pad(x2.astype(jnp.bfloat16), ((0, 0), (0, 0), (0, 0), (0, c2p - c2)))
    x1p = jnp.pad(x1.astype(jnp.bfloat16), ((0, 0), (0, 0), (0, 0), (0, c1p - c1)))

    out = up_double_conv_pallas(x2p, x1p, w1p, b1p, w2p, b2p, row_tile=row_tile)
    out = out[:, :, :out_channels].astype(jnp.float32).reshape(N, H, W, out_channels)
    # TODO(synk): keep NHWC/bf16 if the consumer allows; this transpose exists
    # only to match the PyTorch NCHW contract.
    return jnp.transpose(out, (0, 3, 1, 2))


# ----------------------------------------------------------------------------
# Pure-JAX reference mimicking the kernel's numerics (bf16 operands with the BN
# scale folded into weights, f32 accumulation/epilogues, bf16 y1 re-quantization)
# via lax conv at HIGHEST precision.
# ----------------------------------------------------------------------------
def _double_conv_ref(x_nhwc, w1s, b1, w2s, b2):
    q = lambda a: a.astype(jnp.bfloat16).astype(jnp.float32)

    def conv(x, w9):
        whwio = w9.reshape(3, 3, w9.shape[1], w9.shape[2])
        return jax.lax.conv_general_dilated(
            q(x), q(whwio), window_strides=(1, 1), padding="SAME",
            dimension_numbers=("NHWC", "HWIO", "NHWC"),
            precision=jax.lax.Precision.HIGHEST)

    y = jnp.maximum(conv(x_nhwc, w1s) + b1, 0.0)
    y = jnp.maximum(conv(y, w2s) + b2, 0.0)
    return y


if __name__ == "__main__":
    # Up(in_channels=8, out_channels=8, bilinear=True) -> DoubleConv(8, 8, mid=4)
    N, C_half, H1, W1 = 2, 4, 8, 8           # x1: (N, 4, 8, 8)
    H2, W2 = 16, 16                          # x2: (N, 4, 16, 16)
    in_channels, out_channels = 2 * C_half, 8
    mid_channels = in_channels // 2

    key = jax.random.PRNGKey(0)
    ks = jax.random.split(key, 12)

    x1 = jax.random.normal(ks[0], (N, C_half, H1, W1), jnp.float32)
    x2 = jax.random.normal(ks[1], (N, C_half, H2, W2), jnp.float32)

    # Synthetic conv weights as (9, Cin, Cout), tap index k = ky*3 + kx.
    w1 = 0.1 * jax.random.normal(ks[2], (9, in_channels, mid_channels), jnp.float32)
    cb1 = 0.05 * jax.random.normal(ks[3], (mid_channels,), jnp.float32)
    g1 = 1.0 + 0.1 * jax.random.normal(ks[4], (mid_channels,), jnp.float32)
    be1 = 0.1 * jax.random.normal(ks[5], (mid_channels,), jnp.float32)
    m1 = 0.1 * jax.random.normal(ks[6], (mid_channels,), jnp.float32)
    v1 = jnp.abs(jax.random.normal(ks[7], (mid_channels,), jnp.float32)) + 0.5

    w2 = 0.1 * jax.random.normal(ks[8], (9, mid_channels, out_channels), jnp.float32)
    cb2 = 0.05 * jax.random.normal(ks[9], (out_channels,), jnp.float32)
    g2 = 1.0 + 0.1 * jax.random.normal(ks[10], (out_channels,), jnp.float32)
    be2 = 0.1 * jax.random.normal(ks[11], (out_channels,), jnp.float32)
    m2 = jnp.zeros((out_channels,), jnp.float32)
    v2 = jnp.ones((out_channels,), jnp.float32)

    s1, b1 = fold_bn(cb1, g1, be1, m1, v1)   # (Cmid,)
    s2, b2 = fold_bn(cb2, g2, be2, m2, v2)   # (Cout,)
    kparams = prepare_params(w1, s1, b1, w2, s2, b2, c2=C_half, c1=C_half)

    fwd = jax.jit(functools.partial(up_forward, out_channels=out_channels))
    out = jax.block_until_ready(fwd(x1, x2, kparams))
    assert out.shape == (N, out_channels, H2, W2), out.shape

    # Cross-check against the lax-conv reference (same bf16 quantization points,
    # BN scale folded into the weights before the bf16 cast).
    x1u = upsample_bilinear_x2_align_corners(
        jnp.transpose(x1, (0, 2, 3, 1)).astype(jnp.float32))
    xcat = jnp.concatenate(
        [jnp.transpose(x2, (0, 2, 3, 1)).astype(jnp.float32), x1u], axis=-1)
    ref = jnp.transpose(
        _double_conv_ref(xcat, w1 * s1[None, None, :], b1,
                         w2 * s2[None, None, :], b2),
        (0, 3, 1, 2))
    err = float(jnp.max(jnp.abs(out - ref)))
    assert jnp.allclose(out, ref, rtol=2e-2, atol=2e-2), err

    print("KERNEL_OK")
</pallas_src>

<mosaic_0001>
module attributes {stable_mosaic.version = 11 : i64} {
  func.func @_up_double_conv_kernel(%arg0: i32, %arg1: i32, %arg2: memref<1x2x16x128xbf16, #tpu.memory_space<vmem>>, %arg3: memref<1x8x16x128xbf16, #tpu.memory_space<vmem>>, %arg4: memref<1x2x16x128xbf16, #tpu.memory_space<vmem>>, %arg5: memref<1x2x16x128xbf16, #tpu.memory_space<vmem>>, %arg6: memref<1x8x16x128xbf16, #tpu.memory_space<vmem>>, %arg7: memref<1x2x16x128xbf16, #tpu.memory_space<vmem>>, %arg8: memref<9x256x128xbf16, #tpu.memory_space<vmem>>, %arg9: memref<1x128xf32, #tpu.memory_space<vmem>>, %arg10: memref<9x128x128xbf16, #tpu.memory_space<vmem>>, %arg11: memref<1x128xf32, #tpu.memory_space<vmem>>, %arg12: memref<1x128x128xbf16, #tpu.memory_space<vmem>>, %arg13: memref<12x18x256xbf16, #tpu.memory_space<vmem>>, %arg14: memref<10x18x128xbf16, #tpu.memory_space<vmem>>, %arg15: memref<160x128xf32, #tpu.memory_space<vmem>>, %arg16: memref<128x128xf32, #tpu.memory_space<vmem>>) attributes {dimension_semantics = [#tpu.dimension_semantics<parallel>, #tpu.dimension_semantics<parallel>], iteration_bounds = array<i64: 2, 2>, scalar_prefetch = 0 : i64, scratch_operands = 4 : i64, tpu.core_type = #tpu.core_type<tc>, window_params = [{transform_indices = @transform_0, window_bounds = array<i64: 1, 2, 16, 128>}, {transform_indices = @transform_1, window_bounds = array<i64: 1, 8, 16, 128>}, {transform_indices = @transform_2, window_bounds = array<i64: 1, 2, 16, 128>}, {transform_indices = @transform_3, window_bounds = array<i64: 1, 2, 16, 128>}, {transform_indices = @transform_4, window_bounds = array<i64: 1, 8, 16, 128>}, {transform_indices = @transform_5, window_bounds = array<i64: 1, 2, 16, 128>}, {pipeline_mode = #tpu.pipeline_mode<synchronous>, transform_indices = @transform_6, window_bounds = array<i64: 9, 256, 128>}, {pipeline_mode = #tpu.pipeline_mode<synchronous>, transform_indices = @transform_7, window_bounds = array<i64: 1, 128>}, {pipeline_mode = #tpu.pipeline_mode<synchronous>, transform_indices = @transform_8, window_bounds = array<i64: 9, 128, 128>}, {pipeline_mode = #tpu.pipeline_mode<synchronous>, transform_indices = @transform_9, window_bounds = array<i64: 1, 128>}, {transform_indices = @transform_10, window_bounds = array<i64: 1, 128, 128>}]} {
    %cst = arith.constant 0.000000e+00 : bf16
    %0 = vector.broadcast %cst : bf16 to vector<12x1x256xbf16>
    %c0 = arith.constant 0 : index
    %c0_0 = arith.constant 0 : index
    %c0_1 = arith.constant 0 : index
    %1 = vector.load %arg13[%c0, %c0_0, %c0_1] : memref<12x18x256xbf16, #tpu.memory_space<vmem>>, vector<12x1x256xbf16>
    tpu.vector_store %arg13[%c0, %c0_0, %c0_1], %0 {strides = array<i32>} : memref<12x18x256xbf16, #tpu.memory_space<vmem>>, vector<12x1x256xbf16>,
    %c0_2 = arith.constant 0 : index
    %c17 = arith.constant 17 : index
    %c0_3 = arith.constant 0 : index
    %2 = vector.load %arg13[%c0_2, %c17, %c0_3] : memref<12x18x256xbf16, #tpu.memory_space<vmem>>, vector<12x1x256xbf16>
    tpu.vector_store %arg13[%c0_2, %c17, %c0_3], %0 {strides = array<i32>} : memref<12x18x256xbf16, #tpu.memory_space<vmem>>, vector<12x1x256xbf16>,
    %c0_i32 = arith.constant 0 : i32
    %3 = arith.cmpi sgt, %arg1, %c0_i32 : i32
    %4 = arith.extui %3 : i1 to i32
    %5 = arith.sitofp %4 : i32 to f32
    %6 = arith.truncf %5 : f32 to bf16
    %c1_i32 = arith.constant 1 : i32
    %7 = arith.cmpi slt, %arg1, %c1_i32 : i32
    %8 = arith.extui %7 : i1 to i32
    %9 = arith.sitofp %8 : i32 to f32
    %10 = arith.truncf %9 : f32 to bf16
    %c0_4 = arith.constant 0 : index
    %c0_5 = arith.constant 0 : index
    %c0_6 = arith.constant 0 : index
    %c0_7 = arith.constant 0 : index
    %11 = vector.load %arg2[%c0_4, %c0_5, %c0_6, %c0_7] : memref<1x2x16x128xbf16, #tpu.memory_space<vmem>>, vector<1x2x16x128xbf16>
    %12 = vector.shape_cast %11 : vector<1x2x16x128xbf16> to vector<2x16x128xbf16>
    %13 = vector.broadcast %6 : bf16 to vector<2x16x128xbf16>
    %14 = arith.mulf %12, %13 : vector<2x16x128xbf16>
    %c0_8 = arith.constant 0 : index
    %c1 = arith.constant 1 : index
    %c0_9 = arith.constant 0 : index
    %15 = vector.load %arg13[%c0_8, %c1, %c0_9] : memref<12x18x256xbf16, #tpu.memory_space<vmem>>, vector<2x16x128xbf16>
    tpu.vector_store %arg13[%c0_8, %c1, %c0_9], %14 {strides = array<i32>} : memref<12x18x256xbf16, #tpu.memory_space<vmem>>, vector<2x16x128xbf16>,
    %c0_10 = arith.constant 0 : index
    %c0_11 = arith.constant 0 : index
    %c0_12 = arith.constant 0 : index
    %c0_13 = arith.constant 0 : index
    %16 = vector.load %arg5[%c0_10, %c0_11, %c0_12, %c0_13] : memref<1x2x16x128xbf16, #tpu.memory_space<vmem>>, vector<1x2x16x128xbf16>
    %17 = vector.shape_cast %16 : vector<1x2x16x128xbf16> to vector<2x16x128xbf16>
    %18 = vector.broadcast %6 : bf16 to vector<2x16x128xbf16>
    %19 = arith.mulf %17, %18 : vector<2x16x128xbf16>
    %c0_14 = arith.constant 0 : index
    %c1_15 = arith.constant 1 : index
    %c128 = arith.constant 128 : index
    %20 = vector.load %arg13[%c0_14, %c1_15, %c128] : memref<12x18x256xbf16, #tpu.memory_space<vmem>>, vector<2x16x128xbf16>
    tpu.vector_store %arg13[%c0_14, %c1_15, %c128], %19 {strides = array<i32>} : memref<12x18x256xbf16, #tpu.memory_space<vmem>>, vector<2x16x128xbf16>,
    %c0_16 = arith.constant 0 : index
    %c0_17 = arith.constant 0 : index
    %c0_18 = arith.constant 0 : index
    %c0_19 = arith.constant 0 : index
    %21 = vector.load %arg3[%c0_16, %c0_17, %c0_18, %c0_19] : memref<1x8x16x128xbf16, #tpu.memory_space<vmem>>, vector<1x8x16x128xbf16>
    %22 = vector.shape_cast %21 : vector<1x8x16x128xbf16> to vector<8x16x128xbf16>
    %c2 = arith.constant 2 : index
    %c1_20 = arith.constant 1 : index
    %c0_21 = arith.constant 0 : index
    %23 = vector.load %arg13[%c2, %c1_20, %c0_21] : memref<12x18x256xbf16, #tpu.memory_space<vmem>>, vector<8x16x128xbf16>
    tpu.vector_store %arg13[%c2, %c1_20, %c0_21], %22 {strides = array<i32>} : memref<12x18x256xbf16, #tpu.memory_space<vmem>>, vector<8x16x128xbf16>,
    %c0_22 = arith.constant 0 : index
    %c0_23 = arith.constant 0 : index
    %c0_24 = arith.constant 0 : index
    %c0_25 = arith.constant 0 : index
    %24 = vector.load %arg6[%c0_22, %c0_23, %c0_24, %c0_25] : memref<1x8x16x128xbf16, #tpu.memory_space<vmem>>, vector<1x8x16x128xbf16>
    %25 = vector.shape_cast %24 : vector<1x8x16x128xbf16> to vector<8x16x128xbf16>
    %c2_26 = arith.constant 2 : index
    %c1_27 = arith.constant 1 : index
    %c128_28 = arith.constant 128 : index
    %26 = vector.load %arg13[%c2_26, %c1_27, %c128_28] : memref<12x18x256xbf16, #tpu.memory_space<vmem>>, vector<8x16x128xbf16>
    tpu.vector_store %arg13[%c2_26, %c1_27, %c128_28], %25 {strides = array<i32>} : memref<12x18x256xbf16, #tpu.memory_space<vmem>>, vector<8x16x128xbf16>,
    %c0_29 = arith.constant 0 : index
    %c0_30 = arith.constant 0 : index
    %c0_31 = arith.constant 0 : index
    %c0_32 = arith.constant 0 : index
    %27 = vector.load %arg4[%c0_29, %c0_30, %c0_31, %c0_32] : memref<1x2x16x128xbf16, #tpu.memory_space<vmem>>, vector<1x2x16x128xbf16>
    %28 = vector.shape_cast %27 : vector<1x2x16x128xbf16> to vector<2x16x128xbf16>
    %29 = vector.broadcast %10 : bf16 to vector<2x16x128xbf16>
    %30 = arith.mulf %28, %29 : vector<2x16x128xbf16>
    %c10 = arith.constant 10 : index
    %c1_33 = arith.constant 1 : index
    %c0_34 = arith.constant 0 : index
    %31 = vector.load %arg13[%c10, %c1_33, %c0_34] : memref<12x18x256xbf16, #tpu.memory_space<vmem>>, vector<2x16x128xbf16>
    tpu.vector_store %arg13[%c10, %c1_33, %c0_34], %30 {strides = array<i32>} : memref<12x18x256xbf16, #tpu.memory_space<vmem>>, vector<2x16x128xbf16>,
    %c0_35 = arith.constant 0 : index
    %c0_36 = arith.constant 0 : index
    %c0_37 = arith.constant 0 : index
    %c0_38 = arith.constant 0 : index
    %32 = vector.load %arg7[%c0_35, %c0_36, %c0_37, %c0_38] : memref<1x2x16x128xbf16, #tpu.memory_space<vmem>>, vector<1x2x16x128xbf16>
    %33 = vector.shape_cast %32 : vector<1x2x16x128xbf16> to vector<2x16x128xbf16>
    %34 = vector.broadcast %10 : bf16 to vector<2x16x128xbf16>
    %35 = arith.mulf %33, %34 : vector<2x16x128xbf16>
    %c10_39 = arith.constant 10 : index
    %c1_40 = arith.constant 1 : index
    %c128_41 = arith.constant 128 : index
    %36 = vector.load %arg13[%c10_39, %c1_40, %c128_41] : memref<12x18x256xbf16, #tpu.memory_space<vmem>>, vector<2x16x128xbf16>
    tpu.vector_store %arg13[%c10_39, %c1_40, %c128_41], %35 {strides = array<i32>} : memref<12x18x256xbf16, #tpu.memory_space<vmem>>, vector<2x16x128xbf16>,
    %c0_42 = arith.constant 0 : index
    %c0_43 = arith.constant 0 : index
    %c0_44 = arith.constant 0 : index
    %37 = vector.load %arg13[%c0_42, %c0_43, %c0_44] : memref<12x18x256xbf16, #tpu.memory_space<vmem>>, vector<12x16x256xbf16>
    %38 = vector.extract_strided_slice %37 {offsets = [0, 0, 0], sizes = [10, 16, 256], strides = [1, 1, 1]} : vector<12x16x256xbf16> to vector<10x16x256xbf16>
    %39 = vector.shape_cast %38 : vector<10x16x256xbf16> to vector<160x256xbf16>
    %c0_45 = arith.constant 0 : index
    %c0_46 = arith.constant 0 : index
    %c0_47 = arith.constant 0 : index
    %40 = vector.load %arg8[%c0_45, %c0_46, %c0_47] : memref<9x256x128xbf16, #tpu.memory_space<vmem>>, vector<1x256x128xbf16>
    %41 = vector.shape_cast %40 : vector<1x256x128xbf16> to vector<256x128xbf16>
    %cst_48 = arith.constant dense<0.000000e+00> : vector<160x128xf32>
    %42 = tpu.matmul %39, %41, %cst_48 {dimension_numbers = #tpu.dot_dimension_numbers<[1], [0], [0], [1], [0, 0, 1, 1], [], []>} : vector<160x256xbf16>, vector<256x128xbf16>, vector<160x128xf32> -> vector<160x128xf32>
    %c0_49 = arith.constant 0 : index
    %c0_50 = arith.constant 0 : index
    %43 = vector.load %arg15[%c0_49, %c0_50] : memref<160x128xf32, #tpu.memory_space<vmem>>, vector<160x128xf32>
    tpu.vector_store %arg15[%c0_49, %c0_50], %42 {strides = array<i32>} : memref<160x128xf32, #tpu.memory_space<vmem>>, vector<160x128xf32>,
    %44 = vector.extract_strided_slice %37 {offsets = [1, 0, 0], sizes = [10, 16, 256], strides = [1, 1, 1]} : vector<12x16x256xbf16> to vector<10x16x256xbf16>
    %45 = vector.shape_cast %44 : vector<10x16x256xbf16> to vector<160x256xbf16>
    %c3 = arith.constant 3 : index
    %c0_51 = arith.constant 0 : index
    %c0_52 = arith.constant 0 : index
    %46 = vector.load %arg8[%c3, %c0_51, %c0_52] : memref<9x256x128xbf16, #tpu.memory_space<vmem>>, vector<1x256x128xbf16>
    %47 = vector.shape_cast %46 : vector<1x256x128xbf16> to vector<256x128xbf16>
    %cst_53 = arith.constant dense<0.000000e+00> : vector<160x128xf32>
    %48 = tpu.matmul %45, %47, %cst_53 {dimension_numbers = #tpu.dot_dimension_numbers<[1], [0], [0], [1], [0, 0, 1, 1], [], []>} : vector<160x256xbf16>, vector<256x128xbf16>, vector<160x128xf32> -> vector<160x128xf32>
    %c0_54 = arith.constant 0 : index
    %c0_55 = arith.constant 0 : index
    %49 = vector.load %arg15[%c0_54, %c0_55] : memref<160x128xf32, #tpu.memory_space<vmem>>, vector<160x128xf32>
    %50 = arith.addf %49, %48 : vector<160x128xf32>
    %c0_56 = arith.constant 0 : index
    %c0_57 = arith.constant 0 : index
    %51 = vector.load %arg15[%c0_56, %c0_57] : memref<160x128xf32, #tpu.memory_space<vmem>>, vector<160x128xf32>
    tpu.vector_store %arg15[%c0_56, %c0_57], %50 {strides = array<i32>} : memref<160x128xf32, #tpu.memory_space<vmem>>, vector<160x128xf32>,
    %52 = vector.extract_strided_slice %37 {offsets = [2, 0, 0], sizes = [10, 16, 256], strides = [1, 1, 1]} : vector<12x16x256xbf16> to vector<10x16x256xbf16>
    %53 = vector.shape_cast %52 : vector<10x16x256xbf16> to vector<160x256xbf16>
    %c6 = arith.constant 6 : index
    %c0_58 = arith.constant 0 : index
    %c0_59 = arith.constant 0 : index
    %54 = vector.load %arg8[%c6, %c0_58, %c0_59] : memref<9x256x128xbf16, #tpu.memory_space<vmem>>, vector<1x256x128xbf16>
    %55 = vector.shape_cast %54 : vector<1x256x128xbf16> to vector<256x128xbf16>
    %cst_60 = arith.constant dense<0.000000e+00> : vector<160x128xf32>
    %56 = tpu.matmul %53, %55, %cst_60 {dimension_numbers = #tpu.dot_dimension_numbers<[1], [0], [0], [1], [0, 0, 1, 1], [], []>} : vector<160x256xbf16>, vector<256x128xbf16>, vector<160x128xf32> -> vector<160x128xf32>
    %c0_61 = arith.constant 0 : index
    %c0_62 = arith.constant 0 : index
    %57 = vector.load %arg15[%c0_61, %c0_62] : memref<160x128xf32, #tpu.memory_space<vmem>>, vector<160x128xf32>
    %58 = arith.addf %57, %56 : vector<160x128xf32>
    %c0_63 = arith.constant 0 : index
    %c0_64 = arith.constant 0 : index
    %59 = vector.load %arg15[%c0_63, %c0_64] : memref<160x128xf32, #tpu.memory_space<vmem>>, vector<160x128xf32>
    tpu.vector_store %arg15[%c0_63, %c0_64], %58 {strides = array<i32>} : memref<160x128xf32, #tpu.memory_space<vmem>>, vector<160x128xf32>,
    %c0_65 = arith.constant 0 : index
    %c1_66 = arith.constant 1 : index
    %c0_67 = arith.constant 0 : index
    %60 = vector.load %arg13[%c0_65, %c1_66, %c0_67] : memref<12x18x256xbf16, #tpu.memory_space<vmem>>, vector<12x16x256xbf16>
    %61 = vector.extract_strided_slice %60 {offsets = [0, 0, 0], sizes = [10, 16, 256], strides = [1, 1, 1]} : vector<12x16x256xbf16> to vector<10x16x256xbf16>
    %62 = vector.shape_cast %61 : vector<10x16x256xbf16> to vector<160x256xbf16>
    %c1_68 = arith.constant 1 : index
    %c0_69 = arith.constant 0 : index
    %c0_70 = arith.constant 0 : index
    %63 = vector.load %arg8[%c1_68, %c0_69, %c0_70] : memref<9x256x128xbf16, #tpu.memory_space<vmem>>, vector<1x256x128xbf16>
    %64 = vector.shape_cast %63 : vector<1x256x128xbf16> to vector<256x128xbf16>
    %cst_71 = arith.constant dense<0.000000e+00> : vector<160x128xf32>
    %65 = tpu.matmul %62, %64, %cst_71 {dimension_numbers = #tpu.dot_dimension_numbers<[1], [0], [0], [1], [0, 0, 1, 1], [], []>} : vector<160x256xbf16>, vector<256x128xbf16>, vector<160x128xf32> -> vector<160x128xf32>
    %c0_72 = arith.constant 0 : index
    %c0_73 = arith.constant 0 : index
    %66 = vector.load %arg15[%c0_72, %c0_73] : memref<160x128xf32, #tpu.memory_space<vmem>>, vector<160x128xf32>
    %67 = arith.addf %66, %65 : vector<160x128xf32>
    %c0_74 = arith.constant 0 : index
    %c0_75 = arith.constant 0 : index
    %68 = vector.load %arg15[%c0_74, %c0_75] : memref<160x128xf32, #tpu.memory_space<vmem>>, vector<160x128xf32>
    tpu.vector_store %arg15[%c0_74, %c0_75], %67 {strides = array<i32>} : memref<160x128xf32, #tpu.memory_space<vmem>>, vector<160x128xf32>,
    %69 = vector.extract_strided_slice %60 {offsets = [1, 0, 0], sizes = [10, 16, 256], strides = [1, 1, 1]} : vector<12x16x256xbf16> to vector<10x16x256xbf16>
    %70 = vector.shape_cast %69 : vector<10x16x256xbf16> to vector<160x256xbf16>
    %c4 = arith.constant 4 : index
    %c0_76 = arith.constant 0 : index
    %c0_77 = arith.constant 0 : index
    %71 = vector.load %arg8[%c4, %c0_76, %c0_77] : memref<9x256x128xbf16, #tpu.memory_space<vmem>>, vector<1x256x128xbf16>
    %72 = vector.shape_cast %71 : vector<1x256x128xbf16> to vector<256x128xbf16>
    %cst_78 = arith.constant dense<0.000000e+00> : vector<160x128xf32>
    %73 = tpu.matmul %70, %72, %cst_78 {dimension_numbers = #tpu.dot_dimension_numbers<[1], [0], [0], [1], [0, 0, 1, 1], [], []>} : vector<160x256xbf16>, vector<256x128xbf16>, vector<160x128xf32> -> vector<160x128xf32>
    %c0_79 = arith.constant 0 : index
    %c0_80 = arith.constant 0 : index
    %74 = vector.load %arg15[%c0_79, %c0_80] : memref<160x128xf32, #tpu.memory_space<vmem>>, vector<160x128xf32>
    %75 = arith.addf %74, %73 : vector<160x128xf32>
    %c0_81 = arith.constant 0 : index
    %c0_82 = arith.constant 0 : index
    %76 = vector.load %arg15[%c0_81, %c0_82] : memref<160x128xf32, #tpu.memory_space<vmem>>, vector<160x128xf32>
    tpu.vector_store %arg15[%c0_81, %c0_82], %75 {strides = array<i32>} : memref<160x128xf32, #tpu.memory_space<vmem>>, vector<160x128xf32>,
    %77 = vector.extract_strided_slice %60 {offsets = [2, 0, 0], sizes = [10, 16, 256], strides = [1, 1, 1]} : vector<12x16x256xbf16> to vector<10x16x256xbf16>
    %78 = vector.shape_cast %77 : vector<10x16x256xbf16> to vector<160x256xbf16>
    %c7 = arith.constant 7 : index
    %c0_83 = arith.constant 0 : index
    %c0_84 = arith.constant 0 : index
    %79 = vector.load %arg8[%c7, %c0_83, %c0_84] : memref<9x256x128xbf16, #tpu.memory_space<vmem>>, vector<1x256x128xbf16>
    %80 = vector.shape_cast %79 : vector<1x256x128xbf16> to vector<256x128xbf16>
    %cst_85 = arith.constant dense<0.000000e+00> : vector<160x128xf32>
    %81 = tpu.matmul %78, %80, %cst_85 {dimension_numbers = #tpu.dot_dimension_numbers<[1], [0], [0], [1], [0, 0, 1, 1], [], []>} : vector<160x256xbf16>, vector<256x128xbf16>, vector<160x128xf32> -> vector<160x128xf32>
    %c0_86 = arith.constant 0 : index
    %c0_87 = arith.constant 0 : index
    %82 = vector.load %arg15[%c0_86, %c0_87] : memref<160x128xf32, #tpu.memory_space<vmem>>, vector<160x128xf32>
    %83 = arith.addf %82, %81 : vector<160x128xf32>
    %c0_88 = arith.constant 0 : index
    %c0_89 = arith.constant 0 : index
    %84 = vector.load %arg15[%c0_88, %c0_89] : memref<160x128xf32, #tpu.memory_space<vmem>>, vector<160x128xf32>
    tpu.vector_store %arg15[%c0_88, %c0_89], %83 {strides = array<i32>} : memref<160x128xf32, #tpu.memory_space<vmem>>, vector<160x128xf32>,
    %c0_90 = arith.constant 0 : index
    %c2_91 = arith.constant 2 : index
    %c0_92 = arith.constant 0 : index
    %85 = vector.load %arg13[%c0_90, %c2_91, %c0_92] : memref<12x18x256xbf16, #tpu.memory_space<vmem>>, vector<12x16x256xbf16>
    %86 = vector.extract_strided_slice %85 {offsets = [0, 0, 0], sizes = [10, 16, 256], strides = [1, 1, 1]} : vector<12x16x256xbf16> to vector<10x16x256xbf16>
    %87 = vector.shape_cast %86 : vector<10x16x256xbf16> to vector<160x256xbf16>
    %c2_93 = arith.constant 2 : index
    %c0_94 = arith.constant 0 : index
    %c0_95 = arith.constant 0 : index
    %88 = vector.load %arg8[%c2_93, %c0_94, %c0_95] : memref<9x256x128xbf16, #tpu.memory_space<vmem>>, vector<1x256x128xbf16>
    %89 = vector.shape_cast %88 : vector<1x256x128xbf16> to vector<256x128xbf16>
    %cst_96 = arith.constant dense<0.000000e+00> : vector<160x128xf32>
    %90 = tpu.matmul %87, %89, %cst_96 {dimension_numbers = #tpu.dot_dimension_numbers<[1], [0], [0], [1], [0, 0, 1, 1], [], []>} : vector<160x256xbf16>, vector<256x128xbf16>, vector<160x128xf32> -> vector<160x128xf32>
    %c0_97 = arith.constant 0 : index
    %c0_98 = arith.constant 0 : index
    %91 = vector.load %arg15[%c0_97, %c0_98] : memref<160x128xf32, #tpu.memory_space<vmem>>, vector<160x128xf32>
    %92 = arith.addf %91, %90 : vector<160x128xf32>
    %c0_99 = arith.constant 0 : index
    %c0_100 = arith.constant 0 : index
    %93 = vector.load %arg15[%c0_99, %c0_100] : memref<160x128xf32, #tpu.memory_space<vmem>>, vector<160x128xf32>
    tpu.vector_store %arg15[%c0_99, %c0_100], %92 {strides = array<i32>} : memref<160x128xf32, #tpu.memory_space<vmem>>, vector<160x128xf32>,
    %94 = vector.extract_strided_slice %85 {offsets = [1, 0, 0], sizes = [10, 16, 256], strides = [1, 1, 1]} : vector<12x16x256xbf16> to vector<10x16x256xbf16>
    %95 = vector.shape_cast %94 : vector<10x16x256xbf16> to vector<160x256xbf16>
    %c5 = arith.constant 5 : index
    %c0_101 = arith.constant 0 : index
    %c0_102 = arith.constant 0 : index
    %96 = vector.load %arg8[%c5, %c0_101, %c0_102] : memref<9x256x128xbf16, #tpu.memory_space<vmem>>, vector<1x256x128xbf16>
    %97 = vector.shape_cast %96 : vector<1x256x128xbf16> to vector<256x128xbf16>
    %cst_103 = arith.constant dense<0.000000e+00> : vector<160x128xf32>
    %98 = tpu.matmul %95, %97, %cst_103 {dimension_numbers = #tpu.dot_dimension_numbers<[1], [0], [0], [1], [0, 0, 1, 1], [], []>} : vector<160x256xbf16>, vector<256x128xbf16>, vector<160x128xf32> -> vector<160x128xf32>
    %c0_104 = arith.constant 0 : index
    %c0_105 = arith.constant 0 : index
    %99 = vector.load %arg15[%c0_104, %c0_105] : memref<160x128xf32, #tpu.memory_space<vmem>>, vector<160x128xf32>
    %100 = arith.addf %99, %98 : vector<160x128xf32>
    %c0_106 = arith.constant 0 : index
    %c0_107 = arith.constant 0 : index
    %101 = vector.load %arg15[%c0_106, %c0_107] : memref<160x128xf32, #tpu.memory_space<vmem>>, vector<160x128xf32>
    tpu.vector_store %arg15[%c0_106, %c0_107], %100 {strides = array<i32>} : memref<160x128xf32, #tpu.memory_space<vmem>>, vector<160x128xf32>,
    %102 = vector.extract_strided_slice %85 {offsets = [2, 0, 0], sizes = [10, 16, 256], strides = [1, 1, 1]} : vector<12x16x256xbf16> to vector<10x16x256xbf16>
    %103 = vector.shape_cast %102 : vector<10x16x256xbf16> to vector<160x256xbf16>
    %c8 = arith.constant 8 : index
    %c0_108 = arith.constant 0 : index
    %c0_109 = arith.constant 0 : index
    %104 = vector.load %arg8[%c8, %c0_108, %c0_109] : memref<9x256x128xbf16, #tpu.memory_space<vmem>>, vector<1x256x128xbf16>
    %105 = vector.shape_cast %104 : vector<1x256x128xbf16> to vector<256x128xbf16>
    %cst_110 = arith.constant dense<0.000000e+00> : vector<160x128xf32>
    %106 = tpu.matmul %103, %105, %cst_110 {dimension_numbers = #tpu.dot_dimension_numbers<[1], [0], [0], [1], [0, 0, 1, 1], [], []>} : vector<160x256xbf16>, vector<256x128xbf16>, vector<160x128xf32> -> vector<160x128xf32>
    %c0_111 = arith.constant 0 : index
    %c0_112 = arith.constant 0 : index
    %107 = vector.load %arg15[%c0_111, %c0_112] : memref<160x128xf32, #tpu.memory_space<vmem>>, vector<160x128xf32>
    %108 = arith.addf %107, %106 : vector<160x128xf32>
    %c0_113 = arith.constant 0 : index
    %c0_114 = arith.constant 0 : index
    %109 = vector.load %arg15[%c0_113, %c0_114] : memref<160x128xf32, #tpu.memory_space<vmem>>, vector<160x128xf32>
    tpu.vector_store %arg15[%c0_113, %c0_114], %108 {strides = array<i32>} : memref<160x128xf32, #tpu.memory_space<vmem>>, vector<160x128xf32>,
    %c0_115 = arith.constant 0 : index
    %c0_116 = arith.constant 0 : index
    %110 = vector.load %arg15[%c0_115, %c0_116] : memref<160x128xf32, #tpu.memory_space<vmem>>, vector<160x128xf32>
    %c0_117 = arith.constant 0 : index
    %c0_118 = arith.constant 0 : index
    %111 = vector.load %arg9[%c0_117, %c0_118] : memref<1x128xf32, #tpu.memory_space<vmem>>, vector<1x128xf32>
    %112 = vector.broadcast %111 : vector<1x128xf32> to vector<160x128xf32>
    %113 = arith.addf %110, %112 : vector<160x128xf32>
    %cst_119 = arith.constant 0.000000e+00 : f32
    %114 = vector.broadcast %cst_119 : f32 to vector<160x128xf32>
    %115 = arith.maximumf %113, %114 : vector<160x128xf32>
    %cst_120 = arith.constant 0.000000e+00 : bf16
    %116 = vector.broadcast %cst_120 : bf16 to vector<10x1x128xbf16>
    %c0_121 = arith.constant 0 : index
    %c0_122 = arith.constant 0 : index
    %c0_123 = arith.constant 0 : index
    %117 = vector.load %arg14[%c0_121, %c0_122, %c0_123] : memref<10x18x128xbf16, #tpu.memory_space<vmem>>, vector<10x1x128xbf16>
    tpu.vector_store %arg14[%c0_121, %c0_122, %c0_123], %116 {strides = array<i32>} : memref<10x18x128xbf16, #tpu.memory_space<vmem>>, vector<10x1x128xbf16>,
    %c0_124 = arith.constant 0 : index
    %c17_125 = arith.constant 17 : index
    %c0_126 = arith.constant 0 : index
    %118 = vector.load %arg14[%c0_124, %c17_125, %c0_126] : memref<10x18x128xbf16, #tpu.memory_space<vmem>>, vector<10x1x128xbf16>
    tpu.vector_store %arg14[%c0_124, %c17_125, %c0_126], %116 {strides = array<i32>} : memref<10x18x128xbf16, #tpu.memory_space<vmem>>, vector<10x1x128xbf16>,
    %119 = arith.truncf %115 : vector<160x128xf32> to vector<160x128xbf16>
    %120 = vector.shape_cast %119 : vector<160x128xbf16> to vector<10x16x128xbf16>
    %c0_127 = arith.constant 0 : index
    %c1_128 = arith.constant 1 : index
    %c0_129 = arith.constant 0 : index
    %121 = vector.load %arg14[%c0_127, %c1_128, %c0_129] : memref<10x18x128xbf16, #tpu.memory_space<vmem>>, vector<10x16x128xbf16>
    tpu.vector_store %arg14[%c0_127, %c1_128, %c0_129], %120 {strides = array<i32>} : memref<10x18x128xbf16, #tpu.memory_space<vmem>>, vector<10x16x128xbf16>,
    %c0_i32_130 = arith.constant 0 : i32
    %122 = arith.cmpi eq, %arg1, %c0_i32_130 : i32
    %123 = arith.extui %122 : i1 to i32
    %c0_i32_131 = arith.constant 0 : i32
    %124 = arith.cmpi ne, %123, %c0_i32_131 : i32
    scf.if %124 {
      %cst_221 = arith.constant 0.000000e+00 : bf16
      %211 = vector.broadcast %cst_221 : bf16 to vector<1x18x128xbf16>
      %c0_222 = arith.constant 0 : index
      %c0_223 = arith.constant 0 : index
      %c0_224 = arith.constant 0 : index
      %212 = vector.load %arg14[%c0_222, %c0_223, %c0_224] : memref<10x18x128xbf16, #tpu.memory_space<vmem>>, vector<1x18x128xbf16>
      tpu.vector_store %arg14[%c0_222, %c0_223, %c0_224], %211 {strides = array<i32>} : memref<10x18x128xbf16, #tpu.memory_space<vmem>>, vector<1x18x128xbf16>,
    } else {
    }
    %c1_i32_132 = arith.constant 1 : i32
    %125 = arith.cmpi eq, %arg1, %c1_i32_132 : i32
    %126 = arith.extui %125 : i1 to i32
    %c0_i32_133 = arith.constant 0 : i32
    %127 = arith.cmpi ne, %126, %c0_i32_133 : i32
    scf.if %127 {
      %cst_221 = arith.constant 0.000000e+00 : bf16
      %211 = vector.broadcast %cst_221 : bf16 to vector<1x18x128xbf16>
      %c9 = arith.constant 9 : index
      %c0_222 = arith.constant 0 : index
      %c0_223 = arith.constant 0 : index
      %212 = vector.load %arg14[%c9, %c0_222, %c0_223] : memref<10x18x128xbf16, #tpu.memory_space<vmem>>, vector<1x18x128xbf16>
      tpu.vector_store %arg14[%c9, %c0_222, %c0_223], %211 {strides = array<i32>} : memref<10x18x128xbf16, #tpu.memory_space<vmem>>, vector<1x18x128xbf16>,
    } else {
    }
    %c0_134 = arith.constant 0 : index
    %c0_135 = arith.constant 0 : index
    %c0_136 = arith.constant 0 : index
    %128 = vector.load %arg14[%c0_134, %c0_135, %c0_136] : memref<10x18x128xbf16, #tpu.memory_space<vmem>>, vector<10x16x128xbf16>
    %129 = vector.extract_strided_slice %128 {offsets = [0, 0, 0], sizes = [8, 16, 128], strides = [1, 1, 1]} : vector<10x16x128xbf16> to vector<8x16x128xbf16>
    %130 = vector.shape_cast %129 : vector<8x16x128xbf16> to vector<128x128xbf16>
    %c0_137 = arith.constant 0 : index
    %c0_138 = arith.constant 0 : index
    %c0_139 = arith.constant 0 : index
    %131 = vector.load %arg10[%c0_137, %c0_138, %c0_139] : memref<9x128x128xbf16, #tpu.memory_space<vmem>>, vector<1x128x128xbf16>
    %132 = vector.shape_cast %131 : vector<1x128x128xbf16> to vector<128x128xbf16>
    %cst_140 = arith.constant dense<0.000000e+00> : vector<128x128xf32>
    %133 = tpu.matmul %130, %132, %cst_140 {dimension_numbers = #tpu.dot_dimension_numbers<[1], [0], [0], [1], [0, 0, 1, 1], [], []>} : vector<128x128xbf16>, vector<128x128xbf16>, vector<128x128xf32> -> vector<128x128xf32>
    %c0_141 = arith.constant 0 : index
    %c0_142 = arith.constant 0 : index
    %134 = vector.load %arg16[%c0_141, %c0_142] : memref<128x128xf32, #tpu.memory_space<vmem>>, vector<128x128xf32>
    tpu.vector_store %arg16[%c0_141, %c0_142], %133 {strides = array<i32>} : memref<128x128xf32, #tpu.memory_space<vmem>>, vector<128x128xf32>,
    %135 = vector.extract_strided_slice %128 {offsets = [1, 0, 0], sizes = [8, 16, 128], strides = [1, 1, 1]} : vector<10x16x128xbf16> to vector<8x16x128xbf16>
    %136 = vector.shape_cast %135 : vector<8x16x128xbf16> to vector<128x128xbf16>
    %c3_143 = arith.constant 3 : index
    %c0_144 = arith.constant 0 : index
    %c0_145 = arith.constant 0 : index
    %137 = vector.load %arg10[%c3_143, %c0_144, %c0_145] : memref<9x128x128xbf16, #tpu.memory_space<vmem>>, vector<1x128x128xbf16>
    %138 = vector.shape_cast %137 : vector<1x128x128xbf16> to vector<128x128xbf16>
    %cst_146 = arith.constant dense<0.000000e+00> : vector<128x128xf32>
    %139 = tpu.matmul %136, %138, %cst_146 {dimension_numbers = #tpu.dot_dimension_numbers<[1], [0], [0], [1], [0, 0, 1, 1], [], []>} : vector<128x128xbf16>, vector<128x128xbf16>, vector<128x128xf32> -> vector<128x128xf32>
    %c0_147 = arith.constant 0 : index
    %c0_148 = arith.constant 0 : index
    %140 = vector.load %arg16[%c0_147, %c0_148] : memref<128x128xf32, #tpu.memory_space<vmem>>, vector<128x128xf32>
    %141 = arith.addf %140, %139 : vector<128x128xf32>
    %c0_149 = arith.constant 0 : index
    %c0_150 = arith.constant 0 : index
    %142 = vector.load %arg16[%c0_149, %c0_150] : memref<128x128xf32, #tpu.memory_space<vmem>>, vector<128x128xf32>
    tpu.vector_store %arg16[%c0_149, %c0_150], %141 {strides = array<i32>} : memref<128x128xf32, #tpu.memory_space<vmem>>, vector<128x128xf32>,
    %143 = vector.extract_strided_slice %128 {offsets = [2, 0, 0], sizes = [8, 16, 128], strides = [1, 1, 1]} : vector<10x16x128xbf16> to vector<8x16x128xbf16>
    %144 = vector.shape_cast %143 : vector<8x16x128xbf16> to vector<128x128xbf16>
    %c6_151 = arith.constant 6 : index
    %c0_152 = arith.constant 0 : index
    %c0_153 = arith.constant 0 : index
    %145 = vector.load %arg10[%c6_151, %c0_152, %c0_153] : memref<9x128x128xbf16, #tpu.memory_space<vmem>>, vector<1x128x128xbf16>
    %146 = vector.shape_cast %145 : vector<1x128x128xbf16> to vector<128x128xbf16>
    %cst_154 = arith.constant dense<0.000000e+00> : vector<128x128xf32>
    %147 = tpu.matmul %144, %146, %cst_154 {dimension_numbers = #tpu.dot_dimension_numbers<[1], [0], [0], [1], [0, 0, 1, 1], [], []>} : vector<128x128xbf16>, vector<128x128xbf16>, vector<128x128xf32> -> vector<128x128xf32>
    %c0_155 = arith.constant 0 : index
    %c0_156 = arith.constant 0 : index
    %148 = vector.load %arg16[%c0_155, %c0_156] : memref<128x128xf32, #tpu.memory_space<vmem>>, vector<128x128xf32>
    %149 = arith.addf %148, %147 : vector<128x128xf32>
    %c0_157 = arith.constant 0 : index
    %c0_158 = arith.constant 0 : index
    %150 = vector.load %arg16[%c0_157, %c0_158] : memref<128x128xf32, #tpu.memory_space<vmem>>, vector<128x128xf32>
    tpu.vector_store %arg16[%c0_157, %c0_158], %149 {strides = array<i32>} : memref<128x128xf32, #tpu.memory_space<vmem>>, vector<128x128xf32>,
    %c0_159 = arith.constant 0 : index
    %c1_160 = arith.constant 1 : index
    %c0_161 = arith.constant 0 : index
    %151 = vector.load %arg14[%c0_159, %c1_160, %c0_161] : memref<10x18x128xbf16, #tpu.memory_space<vmem>>, vector<10x16x128xbf16>
    %152 = vector.extract_strided_slice %151 {offsets = [0, 0, 0], sizes = [8, 16, 128], strides = [1, 1, 1]} : vector<10x16x128xbf16> to vector<8x16x128xbf16>
    %153 = vector.shape_cast %152 : vector<8x16x128xbf16> to vector<128x128xbf16>
    %c1_162 = arith.constant 1 : index
    %c0_163 = arith.constant 0 : index
    %c0_164 = arith.constant 0 : index
    %154 = vector.load %arg10[%c1_162, %c0_163, %c0_164] : memref<9x128x128xbf16, #tpu.memory_space<vmem>>, vector<1x128x128xbf16>
    %155 = vector.shape_cast %154 : vector<1x128x128xbf16> to vector<128x128xbf16>
    %cst_165 = arith.constant dense<0.000000e+00> : vector<128x128xf32>
    %156 = tpu.matmul %153, %155, %cst_165 {dimension_numbers = #tpu.dot_dimension_numbers<[1], [0], [0], [1], [0, 0, 1, 1], [], []>} : vector<128x128xbf16>, vector<128x128xbf16>, vector<128x128xf32> -> vector<128x128xf32>
    %c0_166 = arith.constant 0 : index
    %c0_167 = arith.constant 0 : index
    %157 = vector.load %arg16[%c0_166, %c0_167] : memref<128x128xf32, #tpu.memory_space<vmem>>, vector<128x128xf32>
    %158 = arith.addf %157, %156 : vector<128x128xf32>
    %c0_168 = arith.constant 0 : index
    %c0_169 = arith.constant 0 : index
    %159 = vector.load %arg16[%c0_168, %c0_169] : memref<128x128xf32, #tpu.memory_space<vmem>>, vector<128x128xf32>
    tpu.vector_store %arg16[%c0_168, %c0_169], %158 {strides = array<i32>} : memref<128x128xf32, #tpu.memory_space<vmem>>, vector<128x128xf32>,
    %160 = vector.extract_strided_slice %151 {offsets = [1, 0, 0], sizes = [8, 16, 128], strides = [1, 1, 1]} : vector<10x16x128xbf16> to vector<8x16x128xbf16>
    %161 = vector.shape_cast %160 : vector<8x16x128xbf16> to vector<128x128xbf16>
    %c4_170 = arith.constant 4 : index
    %c0_171 = arith.constant 0 : index
    %c0_172 = arith.constant 0 : index
    %162 = vector.load %arg10[%c4_170, %c0_171, %c0_172] : memref<9x128x128xbf16, #tpu.memory_space<vmem>>, vector<1x128x128xbf16>
    %163 = vector.shape_cast %162 : vector<1x128x128xbf16> to vector<128x128xbf16>
    %cst_173 = arith.constant dense<0.000000e+00> : vector<128x128xf32>
    %164 = tpu.matmul %161, %163, %cst_173 {dimension_numbers = #tpu.dot_dimension_numbers<[1], [0], [0], [1], [0, 0, 1, 1], [], []>} : vector<128x128xbf16>, vector<128x128xbf16>, vector<128x128xf32> -> vector<128x128xf32>
    %c0_174 = arith.constant 0 : index
    %c0_175 = arith.constant 0 : index
    %165 = vector.load %arg16[%c0_174, %c0_175] : memref<128x128xf32, #tpu.memory_space<vmem>>, vector<128x128xf32>
    %166 = arith.addf %165, %164 : vector<128x128xf32>
    %c0_176 = arith.constant 0 : index
    %c0_177 = arith.constant 0 : index
    %167 = vector.load %arg16[%c0_176, %c0_177] : memref<128x128xf32, #tpu.memory_space<vmem>>, vector<128x128xf32>
    tpu.vector_store %arg16[%c0_176, %c0_177], %166 {strides = array<i32>} : memref<128x128xf32, #tpu.memory_space<vmem>>, vector<128x128xf32>,
    %168 = vector.extract_strided_slice %151 {offsets = [2, 0, 0], sizes = [8, 16, 128], strides = [1, 1, 1]} : vector<10x16x128xbf16> to vector<8x16x128xbf16>
    %169 = vector.shape_cast %168 : vector<8x16x128xbf16> to vector<128x128xbf16>
    %c7_178 = arith.constant 7 : index
    %c0_179 = arith.constant 0 : index
    %c0_180 = arith.constant 0 : index
    %170 = vector.load %arg10[%c7_178, %c0_179, %c0_180] : memref<9x128x128xbf16, #tpu.memory_space<vmem>>, vector<1x128x128xbf16>
    %171 = vector.shape_cast %170 : vector<1x128x128xbf16> to vector<128x128xbf16>
    %cst_181 = arith.constant dense<0.000000e+00> : vector<128x128xf32>
    %172 = tpu.matmul %169, %171, %cst_181 {dimension_numbers = #tpu.dot_dimension_numbers<[1], [0], [0], [1], [0, 0, 1, 1], [], []>} : vector<128x128xbf16>, vector<128x128xbf16>, vector<128x128xf32> -> vector<128x128xf32>
    %c0_182 = arith.constant 0 : index
    %c0_183 = arith.constant 0 : index
    %173 = vector.load %arg16[%c0_182, %c0_183] : memref<128x128xf32, #tpu.memory_space<vmem>>, vector<128x128xf32>
    %174 = arith.addf %173, %172 : vector<128x128xf32>
    %c0_184 = arith.constant 0 : index
    %c0_185 = arith.constant 0 : index
    %175 = vector.load %arg16[%c0_184, %c0_185] : memref<128x128xf32, #tpu.memory_space<vmem>>, vector<128x128xf32>
    tpu.vector_store %arg16[%c0_184, %c0_185], %174 {strides = array<i32>} : memref<128x128xf32, #tpu.memory_space<vmem>>, vector<128x128xf32>,
    %c0_186 = arith.constant 0 : index
    %c2_187 = arith.constant 2 : index
    %c0_188 = arith.constant 0 : index
    %176 = vector.load %arg14[%c0_186, %c2_187, %c0_188] : memref<10x18x128xbf16, #tpu.memory_space<vmem>>, vector<10x16x128xbf16>
    %177 = vector.extract_strided_slice %176 {offsets = [0, 0, 0], sizes = [8, 16, 128], strides = [1, 1, 1]} : vector<10x16x128xbf16> to vector<8x16x128xbf16>
    %178 = vector.shape_cast %177 : vector<8x16x128xbf16> to vector<128x128xbf16>
    %c2_189 = arith.constant 2 : index
    %c0_190 = arith.constant 0 : index
    %c0_191 = arith.constant 0 : index
    %179 = vector.load %arg10[%c2_189, %c0_190, %c0_191] : memref<9x128x128xbf16, #tpu.memory_space<vmem>>, vector<1x128x128xbf16>
    %180 = vector.shape_cast %179 : vector<1x128x128xbf16> to vector<128x128xbf16>
    %cst_192 = arith.constant dense<0.000000e+00> : vector<128x128xf32>
    %181 = tpu.matmul %178, %180, %cst_192 {dimension_numbers = #tpu.dot_dimension_numbers<[1], [0], [0], [1], [0, 0, 1, 1], [], []>} : vector<128x128xbf16>, vector<128x128xbf16>, vector<128x128xf32> -> vector<128x128xf32>
    %c0_193 = arith.constant 0 : index
    %c0_194 = arith.constant 0 : index
    %182 = vector.load %arg16[%c0_193, %c0_194] : memref<128x128xf32, #tpu.memory_space<vmem>>, vector<128x128xf32>
    %183 = arith.addf %182, %181 : vector<128x128xf32>
    %c0_195 = arith.constant 0 : index
    %c0_196 = arith.constant 0 : index
    %184 = vector.load %arg16[%c0_195, %c0_196] : memref<128x128xf32, #tpu.memory_space<vmem>>, vector<128x128xf32>
    tpu.vector_store %arg16[%c0_195, %c0_196], %183 {strides = array<i32>} : memref<128x128xf32, #tpu.memory_space<vmem>>, vector<128x128xf32>,
    %185 = vector.extract_strided_slice %176 {offsets = [1, 0, 0], sizes = [8, 16, 128], strides = [1, 1, 1]} : vector<10x16x128xbf16> to vector<8x16x128xbf16>
    %186 = vector.shape_cast %185 : vector<8x16x128xbf16> to vector<128x128xbf16>
    %c5_197 = arith.constant 5 : index
    %c0_198 = arith.constant 0 : index
    %c0_199 = arith.constant 0 : index
    %187 = vector.load %arg10[%c5_197, %c0_198, %c0_199] : memref<9x128x128xbf16, #tpu.memory_space<vmem>>, vector<1x128x128xbf16>
    %188 = vector.shape_cast %187 : vector<1x128x128xbf16> to vector<128x128xbf16>
    %cst_200 = arith.constant dense<0.000000e+00> : vector<128x128xf32>
    %189 = tpu.matmul %186, %188, %cst_200 {dimension_numbers = #tpu.dot_dimension_numbers<[1], [0], [0], [1], [0, 0, 1, 1], [], []>} : vector<128x128xbf16>, vector<128x128xbf16>, vector<128x128xf32> -> vector<128x128xf32>
    %c0_201 = arith.constant 0 : index
    %c0_202 = arith.constant 0 : index
    %190 = vector.load %arg16[%c0_201, %c0_202] : memref<128x128xf32, #tpu.memory_space<vmem>>, vector<128x128xf32>
    %191 = arith.addf %190, %189 : vector<128x128xf32>
    %c0_203 = arith.constant 0 : index
    %c0_204 = arith.constant 0 : index
    %192 = vector.load %arg16[%c0_203, %c0_204] : memref<128x128xf32, #tpu.memory_space<vmem>>, vector<128x128xf32>
    tpu.vector_store %arg16[%c0_203, %c0_204], %191 {strides = array<i32>} : memref<128x128xf32, #tpu.memory_space<vmem>>, vector<128x128xf32>,
    %193 = vector.extract_strided_slice %176 {offsets = [2, 0, 0], sizes = [8, 16, 128], strides = [1, 1, 1]} : vector<10x16x128xbf16> to vector<8x16x128xbf16>
    %194 = vector.shape_cast %193 : vector<8x16x128xbf16> to vector<128x128xbf16>
    %c8_205 = arith.constant 8 : index
    %c0_206 = arith.constant 0 : index
    %c0_207 = arith.constant 0 : index
    %195 = vector.load %arg10[%c8_205, %c0_206, %c0_207] : memref<9x128x128xbf16, #tpu.memory_space<vmem>>, vector<1x128x128xbf16>
    %196 = vector.shape_cast %195 : vector<1x128x128xbf16> to vector<128x128xbf16>
    %cst_208 = arith.constant dense<0.000000e+00> : vector<128x128xf32>
    %197 = tpu.matmul %194, %196, %cst_208 {dimension_numbers = #tpu.dot_dimension_numbers<[1], [0], [0], [1], [0, 0, 1, 1], [], []>} : vector<128x128xbf16>, vector<128x128xbf16>, vector<128x128xf32> -> vector<128x128xf32>
    %c0_209 = arith.constant 0 : index
    %c0_210 = arith.constant 0 : index
    %198 = vector.load %arg16[%c0_209, %c0_210] : memref<128x128xf32, #tpu.memory_space<vmem>>, vector<128x128xf32>
    %199 = arith.addf %198, %197 : vector<128x128xf32>
    %c0_211 = arith.constant 0 : index
    %c0_212 = arith.constant 0 : index
    %200 = vector.load %arg16[%c0_211, %c0_212] : memref<128x128xf32, #tpu.memory_space<vmem>>, vector<128x128xf32>
    tpu.vector_store %arg16[%c0_211, %c0_212], %199 {strides = array<i32>} : memref<128x128xf32, #tpu.memory_space<vmem>>, vector<128x128xf32>,
    %c0_213 = arith.constant 0 : index
    %c0_214 = arith.constant 0 : index
    %201 = vector.load %arg16[%c0_213, %c0_214] : memref<128x128xf32, #tpu.memory_space<vmem>>, vector<128x128xf32>
    %c0_215 = arith.constant 0 : index
    %c0_216 = arith.constant 0 : index
    %202 = vector.load %arg11[%c0_215, %c0_216] : memref<1x128xf32, #tpu.memory_space<vmem>>, vector<1x128xf32>
    %203 = vector.broadcast %202 : vector<1x128xf32> to vector<128x128xf32>
    %204 = arith.addf %201, %203 : vector<128x128xf32>
    %cst_217 = arith.constant 0.000000e+00 : f32
    %205 = vector.broadcast %cst_217 : f32 to vector<128x128xf32>
    %206 = arith.maximumf %204, %205 : vector<128x128xf32>
    %207 = arith.truncf %206 : vector<128x128xf32> to vector<128x128xbf16>
    %c0_218 = arith.constant 0 : index
    %c0_219 = arith.constant 0 : index
    %c0_220 = arith.constant 0 : index
    %208 = vector.load %arg12[%c0_218, %c0_219, %c0_220] : memref<1x128x128xbf16, #tpu.memory_space<vmem>>, vector<1x128x128xbf16>
    %209 = vector.shape_cast %208 : vector<1x128x128xbf16> to vector<128x128xbf16>
    %210 = vector.shape_cast %207 : vector<128x128xbf16> to vector<1x128x128xbf16>
    tpu.vector_store %arg12[%c0_218, %c0_219, %c0_220], %210 {strides = array<i32>} : memref<1x128x128xbf16, #tpu.memory_space<vmem>>, vector<1x128x128xbf16>,
    return
  }
  func.func @transform_0(%arg0: i32, %arg1: i32) -> (i32, i32, i32, i32) {
    %c4_i32 = arith.constant 4 : i32
    %0 = arith.muli %arg1, %c4_i32 : i32
    %c1_i32 = arith.constant 1 : i32
    %1 = arith.subi %0, %c1_i32 : i32
    %c0_i32 = arith.constant 0 : i32
    %2 = arith.maxsi %1, %c0_i32 : i32
    %c0_i32_0 = arith.constant 0 : i32
    %c0_i32_1 = arith.constant 0 : i32
    %c0_i32_2 = arith.constant 0 : i32
    return %arg0, %2, %c0_i32_0, %c0_i32_1 : i32, i32, i32, i32
  }
  func.func @transform_1(%arg0: i32, %arg1: i32) -> (i32, i32, i32, i32) {
    %c0_i32 = arith.constant 0 : i32
    %c0_i32_0 = arith.constant 0 : i32
    %c0_i32_1 = arith.constant 0 : i32
    return %arg0, %arg1, %c0_i32, %c0_i32_0 : i32, i32, i32, i32
  }
  func.func @transform_2(%arg0: i32, %arg1: i32) -> (i32, i32, i32, i32) {
    %c4_i32 = arith.constant 4 : i32
    %0 = arith.muli %arg1, %c4_i32 : i32
    %c4_i32_0 = arith.constant 4 : i32
    %1 = arith.addi %0, %c4_i32_0 : i32
    %c7_i32 = arith.constant 7 : i32
    %2 = arith.minsi %1, %c7_i32 : i32
    %c0_i32 = arith.constant 0 : i32
    %c0_i32_1 = arith.constant 0 : i32
    %c0_i32_2 = arith.constant 0 : i32
    return %arg0, %2, %c0_i32, %c0_i32_1 : i32, i32, i32, i32
  }
  func.func @transform_3(%arg0: i32, %arg1: i32) -> (i32, i32, i32, i32) {
    %c4_i32 = arith.constant 4 : i32
    %0 = arith.muli %arg1, %c4_i32 : i32
    %c1_i32 = arith.constant 1 : i32
    %1 = arith.subi %0, %c1_i32 : i32
    %c0_i32 = arith.constant 0 : i32
    %2 = arith.maxsi %1, %c0_i32 : i32
    %c0_i32_0 = arith.constant 0 : i32
    %c0_i32_1 = arith.constant 0 : i32
    %c0_i32_2 = arith.constant 0 : i32
    return %arg0, %2, %c0_i32_0, %c0_i32_1 : i32, i32, i32, i32
  }
  func.func @transform_4(%arg0: i32, %arg1: i32) -> (i32, i32, i32, i32) {
    %c0_i32 = arith.constant 0 : i32
    %c0_i32_0 = arith.constant 0 : i32
    %c0_i32_1 = arith.constant 0 : i32
    return %arg0, %arg1, %c0_i32, %c0_i32_0 : i32, i32, i32, i32
  }
  func.func @transform_5(%arg0: i32, %arg1: i32) -> (i32, i32, i32, i32) {
    %c4_i32 = arith.constant 4 : i32
    %0 = arith.muli %arg1, %c4_i32 : i32
    %c4_i32_0 = arith.constant 4 : i32
    %1 = arith.addi %0, %c4_i32_0 : i32
    %c7_i32 = arith.constant 7 : i32
    %2 = arith.minsi %1, %c7_i32 : i32
    %c0_i32 = arith.constant 0 : i32
    %c0_i32_1 = arith.constant 0 : i32
    %c0_i32_2 = arith.constant 0 : i32
    return %arg0, %2, %c0_i32, %c0_i32_1 : i32, i32, i32, i32
  }
  func.func @transform_6(%arg0: i32, %arg1: i32) -> (i32, i32, i32) {
    %c0_i32 = arith.constant 0 : i32
    %c0_i32_0 = arith.constant 0 : i32
    %c0_i32_1 = arith.constant 0 : i32
    %c0_i32_2 = arith.constant 0 : i32
    return %c0_i32, %c0_i32_0, %c0_i32_1 : i32, i32, i32
  }
  func.func @transform_7(%arg0: i32, %arg1: i32) -> (i32, i32) {
    %c0_i32 = arith.constant 0 : i32
    %c0_i32_0 = arith.constant 0 : i32
    %c0_i32_1 = arith.constant 0 : i32
    return %c0_i32, %c0_i32_0 : i32, i32
  }
  func.func @transform_8(%arg0: i32, %arg1: i32) -> (i32, i32, i32) {
    %c0_i32 = arith.constant 0 : i32
    %c0_i32_0 = arith.constant 0 : i32
    %c0_i32_1 = arith.constant 0 : i32
    %c0_i32_2 = arith.constant 0 : i32
    return %c0_i32, %c0_i32_0, %c0_i32_1 : i32, i32, i32
  }
  func.func @transform_9(%arg0: i32, %arg1: i32) -> (i32, i32) {
    %c0_i32 = arith.constant 0 : i32
    %c0_i32_0 = arith.constant 0 : i32
    %c0_i32_1 = arith.constant 0 : i32
    return %c0_i32, %c0_i32_0 : i32, i32
  }
  func.func @transform_10(%arg0: i32, %arg1: i32) -> (i32, i32, i32) {
    %c0_i32 = arith.constant 0 : i32
    %c0_i32_0 = arith.constant 0 : i32
    return %arg0, %arg1, %c0_i32 : i32, i32, i32
  }
}

</mosaic_0001>

<bundles_post_ra>
// kernel: up_forward.1
= control target key start
LH: loop header
LB: loop body
LE: loop exit
PB: predicated region body
PF: predicated region fallthrough
CT: control target
= control target key end

     0   :  { %s10842_s13 = smov 0   ;;  %s10844_s14 = smov 0   ;;  %s13501_s0 = inlined_call_operand.vmem [shape: bf16[2,16,16,128], index: 0, kind: input, shape index: {}, may-alias: {0,1,2}]   ;;  %s13502_s1 = inlined_call_operand.vmem [shape: bf16[2,16,16,128], index: 1, kind: input, shape index: {}, may-alias: {0,1,2}]   ;;  %s13503_s2 = inlined_call_operand.vmem [shape: bf16[2,16,16,128], index: 2, kind: input, shape index: {}, may-alias: {0,1,2}]   ;;  %s13504_s3 = inlined_call_operand.vmem [shape: bf16[2,16,16,128], index: 3, kind: input, shape index: {}, may-alias: {3,4,5}]   ;;  %s13505_s4 = inlined_call_operand.vmem [shape: bf16[2,16,16,128], index: 4, kind: input, shape index: {}, may-alias: {3,4,5}]   ;;  %s13506_s5 = inlined_call_operand.vmem [shape: bf16[2,16,16,128], index: 5, kind: input, shape index: {}, may-alias: {3,4,5}]   ;;  %s13507_s6 = inlined_call_operand.vmem [shape: bf16[9,256,128], index: 6, kind: input, shape index: {}]   ;;  %s13508_s7 = inlined_call_operand.vmem [shape: f32[1,128], index: 7, kind: input, shape index: {}]   ;;  %s13509_s8 = inlined_call_operand.vmem [shape: bf16[9,128,128], index: 8, kind: input, shape index: {}]   ;;  %s13510_s9 = inlined_call_operand.vmem [shape: f32[1,128], index: 9, kind: input, shape index: {}]   ;;  %s13511_s10 = inlined_call_operand.vmem [shape: bf16[2,256,128], index: 10, kind: output, shape index: {}]  }
   0x1   :  { %s10846_s15 = smov 0   ;;  %s10848_s16 = smov 0  }
   0x2   :  { %s10850_s17 = smov 0  }
   0x3 LB: > { %13537 = sst [smem:[#allocation6_spill]] %s10779_s16  ;;  %s29_s18 = sadd.s32 1, %s10775_s15  ;;  %s10783_s17 = sphi %s10850_s17, %s20_s17   ;;  %s10779_s16 = sphi %s10848_s16, %s13605_s16   ;;  %s10775_s15 = sphi %s10846_s15, %s13607_s15   ;;  %s10771_s14 = sphi %s10844_s14, %s13603_s14   ;;  %s10767_s13 = sphi %s10842_s13, %s13606_s13  }
   0x4   : > { %s32_s19 = sadd.s32 1, %s10779_s16  ;;  %p30_p0 = scmp.ge.s32.totalorder %s29_s18, 2 }
   0x5   : > { %p8283_p1 = scmp.ge.s32.totalorder %s10783_s17, 1  ;;  %p488_p2 = scmp.lt.s32.totalorder %s10783_s17, 5 }
   0x6   : > { %s13609_s18 = smov (%p30_p0, %s29_s18), 0  ;;  %s13611_s19 = smov (!%p30_p0, %s32_s19), %s10779_s16 }
   0x7   : > { %13538 = sst [smem:[#allocation7_spill]] %s13609_s18  ;;  %p489_p3 = pnand %p8283_p1, %p488_p2 }
   0x8   : > { %p34_p4 = scmp.ge.s32.totalorder %s13611_s19, 2 }
   0x9   : > { %492 = sbr.rel (%p489_p3) target bundleno = 1289 (0x509), region = 60 }
   0xa   : > { %s13613_s19 = smov (%p34_p4, %s13611_s19), 0 }
   0xb   : > { %13539 = sst [smem:[#allocation8_spill]] %s13613_s19 }
  0x10   : > { %v10468_v0 = vld [vmem:[%s13507_s6 + $0x40] sm:$0xff]   ;;  %s13512_s22 = sshll.u32 %s10767_s13, 2  ;;  %v10470_v2 = vld [vmem:[%s13507_s6 + $0x48] sm:$0xff]   ;;  %v10472_v4 = vld [vmem:[%s13507_s6 + $0x50] sm:$0xff]   ;;  %p606_p6 = scmp.lt.s32.totalorder %s10771_s14, 1  ;;  %vm710_vm0 = vcmask 1040384  }
  0x11   : > { %v10469_v1 = vld [vmem:[%s13507_s6] sm:$0xff]   ;;  %s8285_s25 = sadd.s32 4294967295, %s13512_s22  ;;  %9166 = vmatprep.subr.bf16.mxu0 %v10468_v0  ;;  %v10471_v3 = vld [vmem:[%s13507_s6 + $0x8] sm:$0xff]   ;;  %v10473_v5 = vld [vmem:[%s13507_s6 + $0x10] sm:$0xff]   ;;  %s8290_s26 = sshll.u32 %s10767_s13, 3  ;;  %vm713_vm2 = vcmask 1044484  }
  0x12   : > { %p603_p5 = scmp.gt.s32.totalorder %s8285_s25, 0  ;;  %9167 = vmatpush3.bf16.msra.mxu0 %v10469_v1  ;;  %v10474_v6 = vld [vmem:[%s13507_s6 + $0x58] sm:$0xff]   ;;  %s13617_s14 = smov (!%p606_p6, %s10771_s14), 1  ;;  %v10476_v8 = vld [vmem:[%s13507_s6 + $0x60] sm:$0xff]   ;;  %v10478_v10 = vld [vmem:[%s13507_s6 + $0x68] sm:$0xff]   ;;  %v13540_v11 = vmov 0 }
  0x13   : > { %9168 = vmatprep.subr.bf16.mxu0 %v10470_v2  ;;  %v10475_v7 = vld [vmem:[%s13507_s6 + $0x18] sm:$0xff]   ;;  %p623_p8 = scmp.lt.s32.totalorder %s8290_s26, 15  ;;  %s10911_s30 = sshll.u32 %s13617_s14, 5  ;;  %v10477_v9 = vld [vmem:[%s13507_s6 + $0x20] sm:$0xff]   ;;  %vm711_vm1 = vsmask.f32 256 }
  0x14   : > { %s13615_s25 = smov (!%p603_p5, %s8285_s25), 0  ;;  %s8314_s27 = sshll.u32 %s10767_s13, 4  ;;  %vm10923_vm3 = vmand %vm710_vm0, %vm711_vm1  ;;  %vm714_vm4 = vsmask.f32 4352  ;;  %v717_v12 = vld [vmem:[#allocation2] sm:$0x11] }
  0x15   : > { %s8286_s12 = sshll.u32 %s13615_s25, 1  ;;  %s13621_s26 = smov (!%p623_p8, %s8290_s26), 15  ;;  %v13541_v11 = vsel %vm10923_vm3, 4294967295, %v13540_v11  ;;  %vm715_vm5 = vmand %vm713_vm2, %vm714_vm4  ;;  %v10479_v13 = vld [vmem:[%s13507_s6 + $0x28] sm:$0xff]   ;;  %v13543_v14 = vmov 0  ;;  %v10480_v15 = vld [vmem:[%s13507_s6 + $0x70] sm:$0xff]  }
  0x16   : > { %9169 = vmatpush3.bf16.msra.mxu0 %v10471_v3  ;;  %p608_p7 = scmp.lt.s32.totalorder %s8286_s12, 15  ;;  %s8291_s14 = sshll.u32 %s13621_s26, 1  ;;  %13542 = vst [vmem:[#allocation9_spill] sm:$0xff] %v13541_v11  ;;  %vm10936_vm6 = vmor %vm715_vm5, %vm10923_vm3  ;;  %vm753_vm7 = vsmask.f32 7938  ;;  %v13546_v17 = vmov 0 }
  0x17   : > { %9170 = vmatprep.subr.bf16.mxu0 %v10472_v4  ;;  %s10928_s28 = sadd.s32 %s8291_s14, %s10911_s30  ;;  %p702_p9 = scmp.lt.s32.totalorder %s8314_s27, 31  ;;  %v13544_v14 = vsel %vm10936_vm6, 4294967295, %v13543_v14  ;;  %v718_v16 = vsel %vm10936_vm6, 0, %v717_v12  ;;  %vm10952_vm8 = vmand %vm710_vm0, %vm753_vm7  ;;  %v10481_v18 = vld [vmem:[%s13507_s6 + $0x30] sm:$0xff]   ;;  %v720_v19 = vld [vmem:[#allocation2 + $0x18] sm:$0x11] }
  0x18   : > { %s13619_s12 = smov (!%p608_p7, %s8286_s12), 15  ;;  %13545 = vst [vmem:[#allocation10_spill] sm:$0xff] %v13544_v14  ;;  %p794_p10 = scmp.gt.s32.totalorder %s10767_s13, 0  ;;  %v13547_v17 = vsel %vm10952_vm8, 4294967295, %v13546_v17  ;;  %719 = vst [vmem:[#allocation2] sm:$0x11] %v718_v16 }
  0x19   : > { %s8287_s24 = sshll.u32 %s13619_s12, 1  ;;  %s8293_s20 = sshll.u32 %s10928_s28, 2  ;;  %13548 = vst [vmem:[#allocation11_spill] sm:$0xff] %v13547_v17  ;;  %v10482_v20 = vld [vmem:[%s13507_s6 + $0x78] sm:$0xff]   ;;  %v721_v21 = vsel %vm10936_vm6, 0, %v720_v19  ;;  %v10487_v24 = vld [vmem:[%s13507_s6 + $0x1c0] sm:$0xff]  }
  0x1a   : > { %9171 = vmatpush3.bf16.msra.mxu0 %v10473_v5  ;;  %s10945_s11 = sadd.s32 %s10911_s30, %s8287_s24  ;;  %s13623_s27 = smov (!%p702_p9, %s8314_s27), 31  ;;  %722 = vst [vmem:[#allocation2 + $0x18] sm:$0x11] %v721_v21  ;;  %v10483_v22 = vld [vmem:[%s13507_s6 + $0x38] sm:$0xff]   ;;  %v723_v23 = vld [vmem:[#allocation2 + $0x30] sm:$0x11] }
  0x1b   : > { %9172 = vmatprep.subr.bf16.mxu0 %v10474_v6  ;;  %s795_s21 = scalar_select %p794_p10, 1, 0  ;;  %v724_v25 = vsel %vm10936_vm6, 0, %v723_v23  ;;  %vm832_vm9 = vsmask.f32 4368  ;;  %vm874_vm10 = vcmask 1043456  }
  0x1c   : > { %s8289_s24 = sshll.u32 %s10945_s11, 2  ;;  %s705_s12 = sadd.s32 %s10911_s30, %s13623_s27  ;;  %725 = vst [vmem:[#allocation2 + $0x30] sm:$0x11] %v724_v25  ;;  %vm11015_vm11 = vmor %vm711_vm1, %vm832_vm9  ;;  %v13549_v43 = vmov 0  ;;  %v13552_v12 = vmov 0  ;;  %vm3950_vm4 = vcmask 1042432  }
  0x1d   : > { %s8316_s26 = sshll.u32 %s705_s12, 2  ;;  %s796_s29 = scvt.s32.f32 %s795_s21  ;;  %v13550_v43 = vsel %vm11015_vm11, 4294967295, %v13549_v43  ;;  %vm11040_vm12 = vmand %vm874_vm10, %vm753_vm7  ;;  %vm755_vm13 = vsmask.f32 7954  ;;  %vm2591_vm0 = vsmask.f32 3328 }
  0x1e   : > { %9173 = vmatpush3.bf16.msra.mxu0 %v10475_v7  ;;  %s10969_s18 = scalar_lea.vmem %s13502_s1, %s8293_s20  ;;  %s10974_s27 = scalar_lea.vmem %s13511_s10, %s8316_s26  ;;  %13551 = vst [vmem:[#allocation12_spill] sm:$0xff] %v13550_v43  ;;  %v13553_v12 = vsel %vm11040_vm12, 4294967295, %v13552_v12  ;;  %vm756_vm14 = vmand %vm713_vm2, %vm755_vm13  ;;  %vm2592_vm1 = vsmask.f32 7440  ;;  %vm3951_vm5 = vcmask 1046532  }
  0x1f   : > { %9174 = vmatprep.subr.bf16.mxu0 %v10476_v8  ;;  %s10979_s12 = scalar_lea.vmem %s13505_s4, %s8293_s20  ;;  %s799_s21 = sshrl.u32 %s796_s29, 16  ;;  %v952_v26 = vld [vmem:[%s10969_s18] sm:$0xf]  ;;  %v953_v27 = vld [vmem:[%s10969_s18 + $0x4] sm:$0xf]  ;;  %13554 = vst [vmem:[#allocation13_spill] sm:$0xff] %v13553_v12  ;;  %vm11388_vm15 = vmor %vm756_vm14, %vm10952_vm8 }
  0x20   : > { %p798_p11 = scmp.ne.f32.partialorder %s796_s29, %s796_s29  ;;  %s800_s22 = sand.u32 1, %s799_s21  ;;  %v1185_v28 = vld [vmem:[%s10979_s12] sm:$0xf]  ;;  %v969_v29 = vshrl.u32 %v952_v26, 16  ;;  %v977_v30 = vshrl.u32 %v953_v27, 16  ;;  %v980_v31 = vshll.u32 %v953_v27, 16  ;;  %vm11506_vm2 = vmor %vm2591_vm0, %vm2592_vm1 }
  0x21   : > { %s10987_s23 = scalar_lea.vmem %s13501_s0, %s8289_s24  ;;  %s801_s16 = sadd.s32 32767, %s800_s22  ;;  %v11004_v32 = vld [vmem:[%s10979_s12 + $0x4] sm:$0xf]  ;;  %v1202_v33 = vshrl.u32 %v1185_v28, 16  ;;  %v972_v39 = vshll.u32 %v952_v26, 16  ;;  %v1205_v42 = vshll.u32 %v1185_v28, 16 }
  0x22   : > { %9175 = vmatpush3.bf16.msra.mxu0 %v10477_v9  ;;  %s10997_s21 = scalar_lea.vmem %s13504_s3, %s8289_s24  ;;  %s802_s19 = sadd.s32 %s801_s16, %s796_s29  ;;  %v820_v34 = vld [vmem:[%s10987_s23] sm:$0xf]  ;;  %v821_v35 = vld [vmem:[%s10987_s23 + $0x4] sm:$0xf]  ;;  %v971_v38 = vrot.slane %v969_v29, 7  ;;  %v11010_v40 = vrot.slane %v977_v30, 7 }
  0x23   : > { %9176 = vmatprep.subr.bf16.mxu0 %v10478_v10  ;;  %s803_s22 = sand.u32 4294901760, %s802_s19  ;;  %v890_v36 = vld [vmem:[%s10997_s21] sm:$0xf]  ;;  %v891_v37 = vld [vmem:[%s10997_s21 + $0x4] sm:$0xf]  ;;  %v11020_v46 = vrot.slane %v1202_v33, 7 }
  0x24   : > { %s13625_s22 = smov (%p798_p11, %s803_s22), 2143289344  ;;  %v822_v41 = vld [vmem:[%s10987_s23 + $0x8] sm:$0xf]  ;;  %v975_v44 = vrot.slane %v971_v38, 4  ;;  %v982_v45 = vor.u32 %v980_v31, %v11010_v40  ;;  %v1210_v47 = vshrl.u32 %v11004_v32, 16  ;;  %v11024_v50 = vor.u32 %v972_v39, %v971_v38  ;;  %s13555_s19 = sshll.u32 %s10767_s13, 2 }
  0x25   : > { %s806_s24 = sshrl.u32 %s13625_s22, 16  ;;  %v823_v48 = vld [vmem:[%s10987_s23 + $0xc] sm:$0xf]  ;;  %v1213_v52 = vshll.u32 %v11004_v32, 16  ;;  %v892_v57 = vld [vmem:[%s10997_s21 + $0x8] sm:$0xf]  ;;  %v11031_v60 = vor.u32 %v1205_v42, %v11020_v46 }
  0x26   : > { %9177 = vmatpush3.bf16.msra.mxu0 %v10479_v13  ;;  %s824_s29 = sshll.u32 %s806_s24, 16  ;;  %v983_v51 = vsel %vm11015_vm11, %v975_v44, %v982_v45  ;;  %v11033_v61 = vrot.slane %v1210_v47, 7  ;;  %v893_v9 = vld [vmem:[%s10997_s21 + $0xc] sm:$0xf]  ;;  %v876_v13 = vld [vmem:[#allocation2] sm:$0xf] }
  0x27   : > { %9178 = vmatprep.subr.bf16.mxu0 %v10480_v15  ;;  %s825_s25 = sor.u32 %s824_s29, %s806_s24  ;;  %1132 = vst [vmem:[#allocation2 + $0x38] sm:$0xf] %v983_v51  ;;  %v938_v23 = vld [vmem:[#allocation2 + $0x4] sm:$0xf]  ;;  %v726_v42 = vld [vmem:[#allocation2 + $0x48] sm:$0x11] }
  0x28   : > { %v826_v49 = vstv %s825_s25  ;;  %v954_v51 = vld [vmem:[%s10969_s18 + $0x8] sm:$0xf]  ;;  %v727_v32 = vsel %vm10936_vm6, 0, %v726_v42  ;;  %v10497_v42 = vld [vmem:[%s13507_s6 + $0x1d0] sm:$0xff]   ;;  %s11292_s22 = sadd.s32 4, %s13555_s19  ;;  %p807_p0 = scmp.lt.s32.totalorder %s10767_s13, 1 }
  0x29   : > { %v828_v53 = vmul.bf16 %v826_v49, %v820_v34  ;;  %v829_v54 = vmul.bf16 %v826_v49, %v821_v35  ;;  %v894_v55 = vmul.bf16 %v890_v36, %v826_v49  ;;  %v895_v56 = vmul.bf16 %v891_v37, %v826_v49  ;;  %v883_v34 = vld [vmem:[#allocation2 + $0x18] sm:$0xf]  ;;  %v1129_v35 = vld [vmem:[#allocation2 + $0x30] sm:$0xf]  ;;  %728 = vst [vmem:[#allocation2 + $0x48] sm:$0x11] %v727_v32 }
  0x2a   : > { %9179 = vmatpush3.bf16.msra.mxu0 %v10481_v18  ;;  %v830_v58 = vmul.bf16 %v826_v49, %v822_v41  ;;  %v831_v59 = vmul.bf16 %v826_v49, %v823_v48  ;;  %v896_v10 = vmul.bf16 %v892_v57, %v826_v49  ;;  %v897_v28 = vmul.bf16 %v893_v9, %v826_v49  ;;  %v1361_v41 = vld [vmem:[#allocation2 + $0x34] sm:$0xf]  ;;  %v945_v48 = vld [vmem:[#allocation2 + $0x1c] sm:$0xf]  ;;  %v956_v9 = vld [vmem:[%s10969_s18 + $0x10] sm:$0xf] }
  0x2b   : > { %9180 = vmatprep.subr.bf16.mxu0 %v10482_v20  ;;  %v835_v62 = vshrl.u32 %v828_v53, 16  ;;  %v838_v63 = vshll.u32 %v828_v53, 16  ;;  %v843_v0 = vshrl.u32 %v829_v54, 16  ;;  %v846_v1 = vshll.u32 %v829_v54, 16  ;;  %p633_p12 = scmp.lt.s32.totalorder %s11292_s22, 7  ;;  %p8822_p2 = scmp.ne.s32.totalorder %s10767_s13, 0 }
  0x2c   : > { %v899_v2 = vshrl.u32 %v894_v55, 16  ;;  %v902_v3 = vshll.u32 %v894_v55, 16  ;;  %v907_v4 = vshrl.u32 %v895_v56, 16  ;;  %v910_v5 = vshll.u32 %v895_v56, 16  ;;  %s808_s14 = scalar_select %p807_p0, 1, 0 }
  0x2d   : > { %v837_v6 = vrot.slane %v835_v62, 7  ;;  %v11035_v7 = vrot.slane %v843_v0, 7  ;;  %v852_v8 = vshrl.u32 %v830_v58, 16  ;;  %v855_v18 = vshll.u32 %v830_v58, 16  ;;  %s13627_s22 = smov (!%p633_p12, %s11292_s22), 7 }
  0x2e   : > { %9181 = vmatpush3.bf16.msra.mxu0 %v10483_v22  ;;  %v901_v15 = vrot.slane %v899_v2, 7  ;;  %v11044_v16 = vrot.slane %v907_v4, 7  ;;  %v860_v19 = vshrl.u32 %v831_v59, 16  ;;  %v916_v38 = vshrl.u32 %v896_v10, 16  ;;  %s8295_s20 = sshll.u32 %s13627_s22, 1  ;;  %s809_s11 = scvt.s32.f32 %s808_s14 }
  0x2f   : > { %9242 = vmatprep.subr.bf16.mxu0 %v10487_v24  ;;  %v840_v20 = vor.u32 %v838_v63, %v837_v6  ;;  %v841_v21 = vrot.slane %v837_v6, 4  ;;  %v848_v22 = vor.u32 %v846_v1, %v11035_v7  ;;  %v863_v24 = vshll.u32 %v831_v59, 16  ;;  %v955_v59 = vld [vmem:[%s10969_s18 + $0xc] sm:$0xf]  ;;  %v1187_v1 = vld [vmem:[%s10979_s12 + $0x8] sm:$0xf] }
  0x30   : > { %v904_v25 = vor.u32 %v902_v3, %v901_v15  ;;  %v905_v26 = vrot.slane %v901_v15, 4  ;;  %v912_v27 = vor.u32 %v910_v5, %v11044_v16  ;;  %v854_v31 = vrot.slane %v852_v8, 7  ;;  %v1188_v3 = vld [vmem:[%s10979_s12 + $0xc] sm:$0xf]  ;;  %v729_v8 = vld [vmem:[#allocation2 + $0x60] sm:$0x11]  ;;  %p811_p1 = scmp.ne.f32.partialorder %s809_s11, %s809_s11 }
  0x31   : > { %v849_v29 = vsel %vm11015_vm11, %v841_v21, %v848_v22  ;;  %v877_v30 = vsel %vm11040_vm12, %v840_v20, %v876_v13  ;;  %v11052_v33 = vrot.slane %v860_v19, 7  ;;  %v919_v39 = vshll.u32 %v896_v10, 16  ;;  %v957_v19 = vld [vmem:[%s10969_s18 + $0x14] sm:$0xf]  ;;  %p638_p13 = scmp.lt.s32.totalorder %s8295_s20, 15  ;;  %s812_s21 = sshrl.u32 %s809_s11, 16 }
  0x32   : > { %878 = vst [vmem:[#allocation2] sm:$0xf] %v877_v30  ;;  %879 = vst [vmem:[#allocation2 + $0x8] sm:$0xf] %v849_v29  ;;  %v913_v36 = vsel %vm11015_vm11, %v905_v26, %v912_v27  ;;  %v939_v37 = vsel %vm11040_vm12, %v904_v25, %v938_v23  ;;  %v857_v44 = vor.u32 %v855_v18, %v854_v31  ;;  %v858_v45 = vrot.slane %v854_v31, 4  ;;  %v10488_v25 = vld [vmem:[%s13507_s6 + $0x180] sm:$0xff]  }
  0x33   : > { %940 = vst [vmem:[#allocation2 + $0x4] sm:$0xf] %v939_v37  ;;  %941 = vst [vmem:[#allocation2 + $0xc] sm:$0xf] %v913_v36  ;;  %v865_v47 = vor.u32 %v863_v24, %v11052_v33  ;;  %v1208_v49 = vrot.slane %v11020_v46, 4  ;;  %v918_v53 = vrot.slane %v916_v38, 7  ;;  %v1130_v56 = vsel %vm11040_vm12, %v11024_v50, %v1129_v35 }
  0x34   : > { %v924_v54 = vshrl.u32 %v897_v28, 16  ;;  %v927_v55 = vshll.u32 %v897_v28, 16  ;;  %v884_v58 = vsel %vm11040_vm12, %v857_v44, %v883_v34  ;;  %1131 = vst [vmem:[#allocation2 + $0x30] sm:$0xf] %v1130_v56  ;;  %v1215_v46 = vor.u32 %v1213_v52, %v11033_v61  ;;  %v10492_v29 = vld [vmem:[%s13507_s6 + $0x1c8] sm:$0xff]   ;;  %s13629_s20 = smov (!%p638_p13, %s8295_s20), 15 }
  0x35   : > { %v866_v57 = vsel %vm11015_vm11, %v858_v45, %v865_v47  ;;  %885 = vst [vmem:[#allocation2 + $0x18] sm:$0xf] %v884_v58  ;;  %v921_v62 = vor.u32 %v919_v39, %v918_v53  ;;  %v922_v63 = vrot.slane %v918_v53, 4  ;;  %v1362_v50 = vsel %vm11040_vm12, %v11031_v60, %v1361_v41  ;;  %v10493_v36 = vld [vmem:[%s13507_s6 + $0x188] sm:$0xff]   ;;  %v732_v53 = vld [vmem:[#allocation2 + $0x78] sm:$0x11] }
  0x36   : > { %886 = vst [vmem:[#allocation2 + $0x20] sm:$0xf] %v866_v57  ;;  %v11072_v0 = vrot.slane %v924_v54, 7  ;;  %v1216_v2 = vsel %vm11015_vm11, %v1208_v49, %v1215_v46  ;;  %1363 = vst [vmem:[#allocation2 + $0x34] sm:$0xf] %v1362_v50  ;;  %v986_v52 = vshrl.u32 %v954_v51, 16 }
  0x37   : > { %v946_v5 = vsel %vm11040_vm12, %v921_v62, %v945_v48  ;;  %1364 = vst [vmem:[#allocation2 + $0x3c] sm:$0xf] %v1216_v2  ;;  %v989_v6 = vshll.u32 %v954_v51, 16  ;;  %v994_v60 = vshrl.u32 %v955_v59, 16  ;;  %v997_v13 = vshll.u32 %v955_v59, 16  ;;  %v10498_v58 = vld [vmem:[%s13507_s6 + $0x190] sm:$0xff]  }
  0x38   : > { %v929_v4 = vor.u32 %v927_v55, %v11072_v0  ;;  %947 = vst [vmem:[#allocation2 + $0x1c] sm:$0xf] %v946_v5  ;;  %v988_v10 = vrot.slane %v986_v52, 7  ;;  %v1219_v15 = vshrl.u32 %v1187_v1, 16  ;;  %v1222_v18 = vshll.u32 %v1187_v1, 16  ;;  %s8296_s24 = sshll.u32 %s13629_s20, 1 }
  0x39   : > { %v10484_v20 = vld [vmem:[#allocation2] ss:$8 sps:$4 sm:$0xff]   ;;  %v11090_v22 = vrot.slane %v994_v60, 7  ;;  %v1227_v23 = vshrl.u32 %v1188_v3, 16  ;;  %v1230_v28 = vshll.u32 %v1188_v3, 16  ;;  %v730_v35 = vsel %vm10936_vm6, 0, %v729_v8  ;;  %s642_s26 = sadd.s32 %s8296_s24, %s10911_s30 }
  0x3a   : > { %v930_v21 = vsel %vm11015_vm11, %v922_v63, %v929_v4  ;;  %v10486_v24 = vld [vmem:[#allocation2 + $0x4] ss:$8 sps:$4 sm:$0xff]   ;;  %v992_v26 = vrot.slane %v988_v10, 4  ;;  %v1221_v27 = vrot.slane %v1219_v15, 7  ;;  %v991_v30 = vor.u32 %v989_v6, %v988_v10  ;;  %731 = vst [vmem:[#allocation2 + $0x60] sm:$0x11] %v730_v35 }
  0x3b   : > { %948 = vst [vmem:[#allocation2 + $0x24] sm:$0xf] %v930_v21  ;;  %v999_v31 = vor.u32 %v997_v13, %v11090_v22  ;;  %v11099_v34 = vrot.slane %v1227_v23, 7  ;;  %1830 = vmatprep.mubr.bf16.mxu0 %v10486_v24  ;;  %v1003_v39 = vshrl.u32 %v956_v9, 16  ;;  %v1006_v41 = vshll.u32 %v956_v9, 16  ;;  %v10502_v4 = vld [vmem:[%s13507_s6 + $0x1d8] sm:$0xff]  }
  0x3c   : > { %v1224_v37 = vor.u32 %v1222_v18, %v1221_v27  ;;  %v1225_v38 = vrot.slane %v1221_v27, 4  ;;  %1831 = vmatmul.mubr.bf16.vlgmr.msra.gmra.mrb[0].mxu0 %v10484_v20  ;;  %v1011_v47 = vshrl.u32 %v957_v19, 16  ;;  %v1189_v48 = vld [vmem:[%s10979_s12 + $0x10] sm:$0xf]  ;;  %v1190_v51 = vld [vmem:[%s10979_s12 + $0x14] sm:$0xf] }
  0x3d   : > { %v1000_v44 = vsel %vm11015_vm11, %v992_v26, %v999_v31  ;;  %v1232_v45 = vor.u32 %v1230_v28, %v11099_v34  ;;  %9243 = vmatpush3.bf16.msra.mxu0 %v10488_v25  ;;  %v1005_v49 = vrot.slane %v1003_v39, 7  ;;  %v1136_v54 = vld [vmem:[#allocation2 + $0x48] sm:$0xf]  ;;  %v1368_v56 = vld [vmem:[#allocation2 + $0x4c] sm:$0xf]  ;;  %v1014_v52 = vshll.u32 %v957_v19, 16 }
  0x3e   : > { %1139 = vst [vmem:[#allocation2 + $0x50] sm:$0xf] %v1000_v44  ;;  %9244 = vmatprep.subr.bf16.mxu0 %v10492_v29  ;;  %v11116_v57 = vrot.slane %v1011_v47, 7  ;;  %v1137_v46 = vsel %vm11040_vm12, %v991_v30, %v1136_v54  ;;  %v1369_v59 = vsel %vm11040_vm12, %v1224_v37, %v1368_v56  ;;  %v958_v50 = vld [vmem:[%s10969_s18 + $0x18] sm:$0xf]  ;;  %v1236_v5 = vshrl.u32 %v1189_v48, 16 }
  0x3f   : > { %v1233_v55 = vsel %vm11015_vm11, %v1225_v38, %v1232_v45  ;;  %v1008_v62 = vor.u32 %v1006_v41, %v1005_v49  ;;  %v1009_v63 = vrot.slane %v1005_v49, 4  ;;  %v959_v1 = vld [vmem:[%s10969_s18 + $0x1c] sm:$0xf]  ;;  %v11129_v32 = vld [vmem:[#allocation2 + $0x18] ss:$8 sps:$4 sm:$0xff]   ;;  %v1239_v6 = vshll.u32 %v1189_v48, 16 }
  0x40   : > { %1371 = vst [vmem:[#allocation2 + $0x54] sm:$0xf] %v1233_v55  ;;  %1138 = vst [vmem:[#allocation2 + $0x48] sm:$0xf] %v1137_v46  ;;  %v11131_v3 = vld [vmem:[#allocation2 + $0x34] ss:$8 sps:$4 sm:$0xff]   ;;  %v1016_v8 = vor.u32 %v1014_v52, %v11116_v57 }
  0x41   : > { %1370 = vst [vmem:[#allocation2 + $0x4c] sm:$0xf] %v1369_v59  ;;  %9245 = vmatpush3.bf16.msra.mxu0 %v10493_v36  ;;  %v1244_v60 = vshrl.u32 %v1190_v51, 16  ;;  %v1143_v9 = vld [vmem:[#allocation2 + $0x60] sm:$0xf]  ;;  %v1247_v10 = vshll.u32 %v1190_v51, 16 }
  0x42   : > { %v11127_v2 = vld [vmem:[#allocation2 + $0x1c] ss:$8 sps:$4 sm:$0xff]   ;;  %9246 = vmatprep.subr.bf16.mxu0 %v10497_v42  ;;  %v733_v13 = vsel %vm10936_vm6, 0, %v732_v53  ;;  %v1191_v15 = vld [vmem:[%s10979_s12 + $0x18] sm:$0xf]  ;;  %v1144_v18 = vsel %vm11040_vm12, %v1008_v62, %v1143_v9  ;;  %v1238_v19 = vrot.slane %v1236_v5, 7  ;;  %v1017_v25 = vsel %vm11015_vm11, %v1009_v63, %v1016_v8 }
  0x43   : > { %1838 = vmatprep.mubr.bf16.mxu0 %v11127_v2  ;;  %v11143_v20 = vrot.slane %v1244_v60, 7  ;;  %734 = vst [vmem:[#allocation2 + $0x78] sm:$0x11] %v733_v13  ;;  %v1020_v21 = vshrl.u32 %v958_v50, 16  ;;  %v1192_v23 = vld [vmem:[%s10979_s12 + $0x1c] sm:$0xf] }
  0x44   : > { %1839 = vmatmul.mubr.bf16.gmra.mrb[4].mxu0 %v11129_v32  ;;  %v10503_v24 = vld [vmem:[%s13507_s6 + $0x198] sm:$0xff]   ;;  %1145 = vst [vmem:[#allocation2 + $0x60] sm:$0xf] %v1144_v18  ;;  %v1375_v26 = vld [vmem:[#allocation2 + $0x64] sm:$0xf]  ;;  %v1023_v27 = vshll.u32 %v958_v50, 16  ;;  %v1241_v31 = vor.u32 %v1239_v6, %v1238_v19 }
  0x45   : > { %v1028_v28 = vshrl.u32 %v959_v1, 16  ;;  %v1031_v29 = vshll.u32 %v959_v1, 16  ;;  %v735_v30 = vld [vmem:[#allocation2 + $0x90] sm:$0x11]  ;;  %1846 = vmatprep.mubr.bf16.mxu0 %v11131_v3  ;;  %9247 = vmatpush3.bf16.msra.mxu0 %v10498_v58  ;;  %1146 = vst [vmem:[#allocation2 + $0x68] sm:$0xf] %v1017_v25  ;;  %v1249_v36 = vor.u32 %v1247_v10, %v11143_v20 }
  0x46   : > { %v1242_v35 = vrot.slane %v1238_v19, 4  ;;  %v10509_v37 = vld [vmem:[%s13507_s6 + $0x1e0] sm:$0xff]   ;;  %9248 = vmatprep.subr.bf16.mxu0 %v10502_v4  ;;  %v1022_v38 = vrot.slane %v1020_v21, 7  ;;  %v1253_v41 = vshrl.u32 %v1191_v15, 16  ;;  %v11160_v44 = vld [vmem:[#allocation2 + $0x30] ss:$8 sps:$4 sm:$0xff]   ;;  %v1376_v47 = vsel %vm11040_vm12, %v1241_v31, %v1375_v26 }
  0x47   : > { %v11157_v39 = vrot.slane %v1028_v28, 7  ;;  %v960_v42 = vld [vmem:[%s10969_s18 + $0x20] sm:$0xf]  ;;  %v1256_v48 = vshll.u32 %v1191_v15, 16  ;;  %v1261_v49 = vshrl.u32 %v1192_v23, 16  ;;  %v10515_v46 = vld [vmem:[%s13507_s6 + $0x1e8] sm:$0xff]  }
  0x48   : > { %v1250_v45 = vsel %vm11015_vm11, %v1242_v35, %v1249_v36  ;;  %v10511_v51 = vld [vmem:[%s13507_s6 + $0x1a0] sm:$0xff]   ;;  %1377 = vst [vmem:[#allocation2 + $0x64] sm:$0xf] %v1376_v47  ;;  %v1025_v54 = vor.u32 %v1023_v27, %v1022_v38  ;;  %v1026_v55 = vrot.slane %v1022_v38, 4  ;;  %v11175_v59 = vld [vmem:[#allocation2 + $0x4c] ss:$8 sps:$4 sm:$0xff]  }
  0x49   : > { %v961_v53 = vld [vmem:[%s10969_s18 + $0x24] sm:$0xf]  ;;  %1378 = vst [vmem:[#allocation2 + $0x6c] sm:$0xf] %v1250_v45  ;;  %v1033_v56 = vor.u32 %v1031_v29, %v11157_v39  ;;  %v1193_v58 = vld [vmem:[%s10979_s12 + $0x20] sm:$0xf]  ;;  %9249 = vmatpush3.bf16.msra.mxu0 %v10503_v24 }
  0x4a   : > { %v1255_v62 = vrot.slane %v1253_v41, 7  ;;  %v11177_v63 = vrot.slane %v1261_v49, 7  ;;  %v1264_v50 = vshll.u32 %v1192_v23, 16  ;;  %v736_v1 = vsel %vm10936_vm6, 0, %v735_v30  ;;  %v1150_v4 = vld [vmem:[#allocation2 + $0x78] sm:$0xf]  ;;  %9250 = vmatprep.subr.bf16.mxu0 %v10509_v37 }
  0x4b   : > { %v1034_v52 = vsel %vm11015_vm11, %v1026_v55, %v1033_v56  ;;  %v1382_v5 = vld [vmem:[#allocation2 + $0x7c] sm:$0xf]  ;;  %737 = vst [vmem:[#allocation2 + $0x90] sm:$0x11] %v736_v1  ;;  %v1037_v6 = vshrl.u32 %v960_v42, 16  ;;  %v1040_v60 = vshll.u32 %v960_v42, 16  ;;  %v1151_v8 = vsel %vm11040_vm12, %v1025_v54, %v1150_v4 }
  0x4c   : > { %1153 = vst [vmem:[#allocation2 + $0x80] sm:$0xf] %v1034_v52  ;;  %v1258_v9 = vor.u32 %v1256_v48, %v1255_v62  ;;  %v1259_v10 = vrot.slane %v1255_v62, 4  ;;  %v1266_v13 = vor.u32 %v1264_v50, %v11177_v63  ;;  %v1194_v15 = vld [vmem:[%s10979_s12 + $0x24] sm:$0xf]  ;;  %1847 = vmatmul.mubr.bf16.gmra.mrb[8].mxu0 %v11160_v44  ;;  %v1045_v19 = vshrl.u32 %v961_v53, 16 }
  0x4d   : > { %1152 = vst [vmem:[#allocation2 + $0x78] sm:$0xf] %v1151_v8  ;;  %v1039_v18 = vrot.slane %v1037_v6, 7  ;;  %v1048_v21 = vshll.u32 %v961_v53, 16  ;;  %v10516_v23 = vld [vmem:[%s13507_s6 + $0x1a8] sm:$0xff]   ;;  %1854 = vmatprep.mubr.bf16.mxu0 %v11175_v59  ;;  %9251 = vmatpush3.bf16.msra.mxu0 %v10511_v51  ;;  %v1270_v27 = vshrl.u32 %v1193_v58, 16 }
  0x4e   : > { %v738_v24 = vld [vmem:[#allocation2 + $0xa8] sm:$0x11]  ;;  %v1267_v25 = vsel %vm11015_vm11, %v1259_v10, %v1266_v13  ;;  %v1383_v26 = vsel %vm11040_vm12, %v1258_v9, %v1382_v5  ;;  %v1273_v28 = vshll.u32 %v1193_v58, 16  ;;  %v11197_v35 = vrot.slane %v1045_v19, 7  ;;  %9252 = vmatprep.subr.bf16.mxu0 %v10515_v46  ;;  %v10520_v38 = vld [vmem:[%s13507_s6 + $0x1f0] sm:$0xff]   ;;  %v10525_v55 = vld [vmem:[%s13507_s6 + $0x1f8] sm:$0xff]  }
  0x4f   : > { %v962_v29 = vld [vmem:[%s10969_s18 + $0x28] sm:$0xf]  ;;  %1384 = vst [vmem:[#allocation2 + $0x7c] sm:$0xf] %v1383_v26  ;;  %1385 = vst [vmem:[#allocation2 + $0x84] sm:$0xf] %v1267_v25  ;;  %v1042_v30 = vor.u32 %v1040_v60, %v1039_v18 }
  0x50   : > { %v1043_v31 = vrot.slane %v1039_v18, 4  ;;  %v1278_v36 = vshrl.u32 %v1194_v15, 16  ;;  %v963_v37 = vld [vmem:[%s10969_s18 + $0x2c] sm:$0xf]  ;;  %v1272_v41 = vrot.slane %v1270_v27, 7  ;;  %v1281_v42 = vshll.u32 %v1194_v15, 16 }
  0x51   : > { %v1195_v45 = vld [vmem:[%s10979_s12 + $0x28] sm:$0xf]  ;;  %v10521_v47 = vld [vmem:[%s13507_s6 + $0x1b0] sm:$0xff]   ;;  %v11209_v49 = vld [vmem:[#allocation2 + $0x64] ss:$8 sps:$4 sm:$0xff]   ;;  %v1050_v51 = vor.u32 %v1048_v21, %v11197_v35  ;;  %v739_v54 = vsel %vm10936_vm6, 0, %v738_v24  ;;  %9253 = vmatpush3.bf16.msra.mxu0 %v10516_v23 }
  0x52   : > { %v11207_v48 = vld [vmem:[#allocation2 + $0x48] ss:$8 sps:$4 sm:$0xff]   ;;  %v11212_v53 = vrot.slane %v1278_v36, 7  ;;  %v1275_v58 = vor.u32 %v1273_v28, %v1272_v41  ;;  %v1276_v46 = vrot.slane %v1272_v41, 4  ;;  %v1389_v62 = vld [vmem:[#allocation2 + $0x94] sm:$0xf]  ;;  %9254 = vmatprep.subr.bf16.mxu0 %v10520_v38 }
  0x53   : > { %v1157_v56 = vld [vmem:[#allocation2 + $0x90] sm:$0xf]  ;;  %740 = vst [vmem:[#allocation2 + $0xa8] sm:$0x11] %v739_v54  ;;  %v1054_v50 = vshrl.u32 %v962_v29, 16  ;;  %v1051_v1 = vsel %vm11015_vm11, %v1043_v31, %v1050_v51  ;;  %v1057_v8 = vshll.u32 %v962_v29, 16 }
  0x54   : > { %v1158_v52 = vsel %vm11040_vm12, %v1042_v30, %v1157_v56  ;;  %v1283_v4 = vor.u32 %v1281_v42, %v11212_v53  ;;  %v1196_v5 = vld [vmem:[%s10979_s12 + $0x2c] sm:$0xf]  ;;  %1160 = vst [vmem:[#allocation2 + $0x98] sm:$0xf] %v1051_v1  ;;  %v1390_v6 = vsel %vm11040_vm12, %v1275_v58, %v1389_v62  ;;  %v1062_v9 = vshrl.u32 %v963_v37, 16  ;;  %1855 = vmatmul.mubr.bf16.gmra.mrb[12].mxu0 %v11207_v48  ;;  %v10526_v23 = vld [vmem:[%s13507_s6 + $0x1b8] sm:$0xff]  }
  0x55   : > { %1159 = vst [vmem:[#allocation2 + $0x90] sm:$0xf] %v1158_v52  ;;  %v1056_v60 = vrot.slane %v1054_v50, 7  ;;  %v741_v10 = vld [vmem:[#allocation2 + $0xc0] sm:$0x11]  ;;  %v1065_v15 = vshll.u32 %v963_v37, 16  ;;  %1862 = vmatprep.mubr.bf16.mxu0 %v11209_v49  ;;  %9255 = vmatpush3.bf16.msra.mxu0 %v10521_v47 }
  0x56   : > { %v1284_v13 = vsel %vm11015_vm11, %v1276_v46, %v1283_v4  ;;  %1391 = vst [vmem:[#allocation2 + $0x94] sm:$0xf] %v1390_v6  ;;  %v1287_v18 = vshrl.u32 %v1195_v45, 16  ;;  %v1290_v19 = vshll.u32 %v1195_v45, 16  ;;  %v964_v21 = vld [vmem:[%s10969_s18 + $0x30] sm:$0xf]  ;;  %9256 = vmatprep.subr.bf16.mxu0 %v10525_v55 }
  0x57   : > { %1392 = vst [vmem:[#allocation2 + $0x9c] sm:$0xf] %v1284_v13  ;;  %v1059_v24 = vor.u32 %v1057_v8, %v1056_v60  ;;  %v1060_v25 = vrot.slane %v1056_v60, 4  ;;  %v11235_v26 = vrot.slane %v1062_v9, 7  ;;  %v10530_v27 = vld [vmem:[%s13507_s6 + $0x340] sm:$0xff]   ;;  %v1295_v29 = vshrl.u32 %v1196_v5, 16 }
  0x58   : > { %v1289_v28 = vrot.slane %v1287_v18, 7  ;;  %v1298_v30 = vshll.u32 %v1196_v5, 16  ;;  %v742_v31 = vsel %vm10936_vm6, 0, %v741_v10  ;;  %v965_v36 = vld [vmem:[%s10969_s18 + $0x34] sm:$0xf]  ;;  %v1071_v41 = vshrl.u32 %v964_v21, 16 }
  0x59   : > { %v11243_v37 = vld [vmem:[#allocation2 + $0x60] ss:$8 sps:$4 sm:$0xff]   ;;  %v1067_v38 = vor.u32 %v1065_v15, %v11235_v26  ;;  %743 = vst [vmem:[#allocation2 + $0xc0] sm:$0x11] %v742_v31  ;;  %v1074_v42 = vshll.u32 %v964_v21, 16  ;;  %v11247_v56 = vrot.slane %v1295_v29, 7  ;;  %9257 = vmatpush3.bf16.msra.mxu0 %v10526_v23 }
  0x5a   : > { %v1197_v45 = vld [vmem:[%s10979_s12 + $0x30] sm:$0xf]  ;;  %v1164_v47 = vld [vmem:[#allocation2 + $0xa8] sm:$0xf]  ;;  %v1292_v51 = vor.u32 %v1290_v19, %v1289_v28  ;;  %v1293_v54 = vrot.slane %v1289_v28, 4  ;;  %v1073_v1 = vrot.slane %v1071_v41, 7  ;;  %9318 = vmatprep.subr.bf16.mxu0 %v10530_v27 }
  0x5b   : > { %v1396_v58 = vld [vmem:[#allocation2 + $0xac] sm:$0xf]  ;;  %v1198_v46 = vld [vmem:[%s10979_s12 + $0x34] sm:$0xf]  ;;  %v11250_v62 = vld [vmem:[#allocation2 + $0x7c] ss:$8 sps:$4 sm:$0xff]   ;;  %v1068_v55 = vsel %vm11015_vm11, %v1060_v25, %v1067_v38  ;;  %v1165_v50 = vsel %vm11040_vm12, %v1059_v24, %v1164_v47  ;;  %v1300_v5 = vor.u32 %v1298_v30, %v11247_v56 }
  0x5c   : > { %v1079_v52 = vshrl.u32 %v965_v36, 16  ;;  %v744_v4 = vld [vmem:[#allocation2 + $0xd8] sm:$0x11]  ;;  %1166 = vst [vmem:[#allocation2 + $0xa8] sm:$0xf] %v1165_v50  ;;  %v1397_v6 = vsel %vm11040_vm12, %v1292_v51, %v1396_v58  ;;  %v1082_v60 = vshll.u32 %v965_v36, 16  ;;  %v1076_v8 = vor.u32 %v1074_v42, %v1073_v1  ;;  %1863 = vmatmul.mubr.bf16.gmra.mrb[16].mxu0 %v11243_v37 }
  0x5d   : > { %1167 = vst [vmem:[#allocation2 + $0xb0] sm:$0xf] %v1068_v55  ;;  %1398 = vst [vmem:[#allocation2 + $0xac] sm:$0xf] %v1397_v6  ;;  %v1077_v9 = vrot.slane %v1073_v1, 4  ;;  %v1304_v13 = vshrl.u32 %v1197_v45, 16  ;;  %v1301_v15 = vsel %vm11015_vm11, %v1293_v54, %v1300_v5  ;;  %1870 = vmatprep.mubr.bf16.mxu0 %v11250_v62 }
  0x5e   : > { %v11259_v10 = vrot.slane %v1079_v52, 7  ;;  %v1307_v18 = vshll.u32 %v1197_v45, 16  ;;  %v966_v19 = vld [vmem:[%s10969_s18 + $0x38] sm:$0xf]  ;;  %v967_v21 = vld [vmem:[%s10969_s18 + $0x3c] sm:$0xf] }
  0x5f   : > { %1399 = vst [vmem:[#allocation2 + $0xb4] sm:$0xf] %v1301_v15  ;;  %v1306_v24 = vrot.slane %v1304_v13, 7  ;;  %v1312_v25 = vshrl.u32 %v1198_v46, 16  ;;  %v1199_v27 = vld [vmem:[%s10979_s12 + $0x38] sm:$0xf] }
  0x60   : > { %v1084_v23 = vor.u32 %v1082_v60, %v11259_v10  ;;  %v11269_v28 = vld [vmem:[#allocation2 + $0x78] ss:$8 sps:$4 sm:$0xff]   ;;  %v1315_v30 = vshll.u32 %v1198_v46, 16  ;;  %v1403_v31 = vld [vmem:[#allocation2 + $0xc4] sm:$0xf]  ;;  %v745_v36 = vsel %vm10936_vm6, 0, %v744_v4 }
  0x61   : > { %v1171_v29 = vld [vmem:[#allocation2 + $0xc0] sm:$0xf]  ;;  %v1200_v38 = vld [vmem:[%s10979_s12 + $0x3c] sm:$0xf]  ;;  %v1309_v47 = vor.u32 %v1307_v18, %v1306_v24  ;;  %v1310_v51 = vrot.slane %v1306_v24, 4  ;;  %v11283_v58 = vrot.slane %v1312_v25, 7 }
  0x62   : > { %v11274_v41 = vld [vmem:[#allocation2 + $0x94] ss:$8 sps:$4 sm:$0xff]   ;;  %v1085_v42 = vsel %vm11015_vm11, %v1077_v9, %v1084_v23  ;;  %v1172_v45 = vsel %vm11040_vm12, %v1076_v8, %v1171_v29  ;;  %746 = vst [vmem:[#allocation2 + $0xd8] sm:$0x11] %v745_v36  ;;  %v10542_v54 = vld [vmem:[%s13507_s6 + $0xc0] sm:$0xff]   ;;  %v1088_v46 = vshrl.u32 %v966_v19, 16 }
  0x63   : > { %1173 = vst [vmem:[#allocation2 + $0xc0] sm:$0xf] %v1172_v45  ;;  %1174 = vst [vmem:[#allocation2 + $0xc8] sm:$0xf] %v1085_v42  ;;  %v1091_v55 = vshll.u32 %v966_v19, 16  ;;  %v1096_v50 = vshrl.u32 %v967_v21, 16  ;;  %v1404_v1 = vsel %vm11040_vm12, %v1309_v47, %v1403_v31  ;;  %9394 = vmatprep.subr.bf16.mxu1 %v10542_v54  ;;  %v1317_v60 = vor.u32 %v1315_v30, %v11283_v58 }
  0x64   : > { %v1099_v52 = vshll.u32 %v967_v21, 16  ;;  %v1321_v4 = vshrl.u32 %v1199_v27, 16  ;;  %v1324_v5 = vshll.u32 %v1199_v27, 16  ;;  %v10543_v6 = vld [vmem:[%s13507_s6 + $0x80] sm:$0xff]   ;;  %1405 = vst [vmem:[#allocation2 + $0xc4] sm:$0xf] %v1404_v1  ;;  %1871 = vmatmul.mubr.bf16.gmra.mrb[20].mxu0 %v11269_v28 }
  0x65   : > { %v1090_v8 = vrot.slane %v1088_v46, 7  ;;  %v11295_v9 = vrot.slane %v1096_v50, 7  ;;  %v1329_v15 = vshrl.u32 %v1200_v38, 16  ;;  %v1332_v18 = vshll.u32 %v1200_v38, 16  ;;  %9395 = vmatpush3.bf16.msra.mxu1 %v10543_v6  ;;  %v10544_v19 = vld [vmem:[%s13507_s6 + $0xc8] sm:$0xff]   ;;  %1878 = vmatprep.mubr.bf16.mxu0 %v11274_v41  ;;  %s8298_s20 = sshll.u32 %s642_s26, 2 }
  0x66   : > { %v1323_v13 = vrot.slane %v1321_v4, 7  ;;  %v1318_v21 = vsel %vm11015_vm11, %v1310_v51, %v1317_v60  ;;  %9396 = vmatprep.subr.bf16.mxu1 %v10544_v19  ;;  %v10545_v31 = vld [vmem:[%s13507_s6 + $0x88] sm:$0xff]   ;;  %v11311_v36 = vld [vmem:[#allocation2 + $0x90] ss:$8 sps:$4 sm:$0xff]   ;;  %s813_s19 = sand.u32 1, %s812_s21  ;;  %s11372_s29 = scalar_lea.vmem %s13503_s2, %s8298_s20 }
  0x67   : > { %13556 = vst [vmem:[#allocation14_spill] sm:$0xff] %v11295_v9  ;;  %v1093_v23 = vor.u32 %v1091_v55, %v1090_v8  ;;  %v1094_v24 = vrot.slane %v1090_v8, 4  ;;  %v1101_v25 = vor.u32 %v1099_v52, %v11295_v9  ;;  %1406 = vst [vmem:[#allocation2 + $0xcc] sm:$0xf] %v1318_v21  ;;  %v11306_v30 = vrot.slane %v1329_v15, 7  ;;  %v10546_v55 = vld [vmem:[%s13507_s6 + $0xd0] sm:$0xff]   ;;  %s11381_s18 = scalar_lea.vmem %s13506_s5, %s8298_s20 }
  0x68   : > { %v1326_v27 = vor.u32 %v1324_v5, %v1323_v13  ;;  %v1327_v29 = vrot.slane %v1323_v13, 4  ;;  %v11315_v47 = vld [vmem:[#allocation2 + $0xac] ss:$8 sps:$4 sm:$0xff]   ;;  %v11332_v1 = vld [vmem:[#allocation2 + $0xa8] ss:$8 sps:$4 sm:$0xff]   ;;  %v10550_v5 = vld [vmem:[%s13507_s6 + $0xd8] sm:$0xff]  }
  0x69   : > { %13557 = vst [vmem:[#allocation15_spill] sm:$0xff] %v11306_v30  ;;  %v1102_v38 = vsel %vm11015_vm11, %v1094_v24, %v1101_v25  ;;  %v1178_v42 = vld [vmem:[#allocation2 + $0xd8] sm:$0xf]  ;;  %v1410_v45 = vld [vmem:[#allocation2 + $0xdc] sm:$0xf]  ;;  %v1334_v54 = vor.u32 %v1332_v18, %v11306_v30  ;;  %9397 = vmatpush3.bf16.msra.mxu1 %v10545_v31  ;;  %13558 = vst [vmem:[#allocation16_spill] sm:$0xff] %v11332_v1 }
  0x6a   : > { %v1179_v51 = vsel %vm11040_vm12, %v1093_v23, %v1178_v42  ;;  %1181 = vst [vmem:[#allocation2 + $0xe0] sm:$0xf] %v1102_v38  ;;  %v1411_v46 = vsel %vm11040_vm12, %v1326_v27, %v1410_v45  ;;  %9398 = vmatprep.subr.bf16.mxu1 %v10546_v55  ;;  %v10548_v4 = vld [vmem:[%s13507_s6 + $0x90] sm:$0xff]   ;;  %v10524_v6 = vld [vmem:[#allocation2 + $0xc0] ss:$8 sps:$4 sm:$0xff]   ;;  %v10551_v60 = vld [vmem:[%s13507_s6 + $0x98] sm:$0xff]  }
  0x6b   : > { %1180 = vst [vmem:[#allocation2 + $0xd8] sm:$0xf] %v1179_v51  ;;  %1412 = vst [vmem:[#allocation2 + $0xdc] sm:$0xf] %v1411_v46  ;;  %v1335_v50 = vsel %vm11015_vm11, %v1327_v29, %v1334_v54  ;;  %v10552_v8 = vld [vmem:[%s13507_s6 + $0xe0] sm:$0xff]   ;;  %v10556_v18 = vld [vmem:[%s13507_s6 + $0xe8] sm:$0xff]  }
  0x6c   : > { %1413 = vst [vmem:[#allocation2 + $0xe4] sm:$0xf] %v1335_v50  ;;  %1879 = vmatmul.mubr.bf16.gmra.mrb[24].mxu0 %v11311_v36  ;;  %v10553_v15 = vld [vmem:[%s13507_s6 + $0xa0] sm:$0xff]   ;;  %v747_v19 = vld [vmem:[#allocation2 + $0xf0] sm:$0x11]  ;;  %v10559_v23 = vld [vmem:[%s13507_s6 + $0xa8] sm:$0xff]  }
  0x6d   : > { %1886 = vmatprep.mubr.bf16.mxu0 %v11315_v47  ;;  %9399 = vmatpush3.bf16.msra.mxu1 %v10548_v4  ;;  %v748_v21 = vsel %vm10936_vm6, 0, %v747_v19  ;;  %v10561_v24 = vld [vmem:[%s13507_s6 + $0xf0] sm:$0xff]   ;;  %s814_s25 = sadd.s32 32767, %s813_s19  ;;  %v10563_v42 = vld [vmem:[%s13507_s6 + $0xf8] sm:$0xff]   ;;  %v2555_v4 = vld [vmem:[#allocation2] sm:$0xff]  ;;  %v13563_v9 = vrot.slane %v11035_v7, 4 }
  0x6e   : > { %v11334_v52 = vld [vmem:[#allocation2 + $0xc4] ss:$8 sps:$4 sm:$0xff]   ;;  %9400 = vmatprep.subr.bf16.mxu1 %v10550_v5  ;;  %749 = vst [vmem:[#allocation2 + $0xf0] sm:$0x11] %v748_v21  ;;  %v10562_v31 = vld [vmem:[%s13507_s6 + $0xb0] sm:$0xff]   ;;  %s815_s28 = sadd.s32 %s814_s25, %s809_s11  ;;  %v2595_v19 = vshrl.u32 %v2555_v4, 16 }
  0x6f   : > { %13559 = vst [vmem:[#allocation17_spill] sm:$0xff] %v11334_v52  ;;  %s816_s21 = sand.u32 4294901760, %s815_s28  ;;  %v1485_v21 = vld [vmem:[%s11381_s18 + $0x4] sm:$0xf]  ;;  %v761_v5 = vld [vmem:[#allocation2 + $0x28] sm:$0x11] }
  0x70   : > { %s13631_s21 = smov (%p811_p1, %s816_s21), 2143289344  ;;  %v2558_v50 = vld [vmem:[#allocation2 + $0x18] sm:$0xff]  ;;  %v10531_v46 = vld [vmem:[%s13507_s6 + $0x300] sm:$0xff]   ;;  %v10533_v29 = vld [vmem:[%s13507_s6 + $0x308] sm:$0xff]  }
  0x71   : > { %9401 = vmatpush3.bf16.msra.mxu1 %v10551_v60  ;;  %v1418_v60 = vld [vmem:[%s11372_s29 + $0x4] sm:$0xf]  ;;  %s819_s22 = sshrl.u32 %s13631_s21, 16  ;;  %v10589_v45 = vld [vmem:[%s13507_s6 + $0x278] sm:$0xff]  }
  0x72   : > { %9402 = vmatprep.subr.bf16.mxu1 %v10552_v8  ;;  %v10529_v25 = vld [vmem:[#allocation2 + $0xd8] ss:$8 sps:$4 sm:$0xff]   ;;  %s1421_s11 = sshll.u32 %s819_s22, 16 }
  0x73   : > { %v10527_v13 = vld [vmem:[#allocation2 + $0xdc] ss:$8 sps:$4 sm:$0xff]   ;;  %v1484_v8 = vld [vmem:[%s11381_s18] sm:$0xf]  ;;  %s1422_s26 = sor.u32 %s1421_s11, %s819_s22 }
  0x74   : > { %1887 = vmatmul.mubr.bf16.gmra.mrb[28].mxu0 %v11332_v1  ;;  %v3911_v43 = vld [vmem:[#allocation2 + $0xd8] sm:$0xee] }
  0x75   : > { %1894 = vmatprep.mubr.bf16.mxu0 %v11334_v52  ;;  %9403 = vmatpush3.bf16.msra.mxu1 %v10553_v15  ;;  %v758_v15 = vld [vmem:[#allocation2 + $0x10] sm:$0x11] }
  0x76   : > { %9404 = vmatprep.subr.bf16.mxu1 %v10556_v18  ;;  %v2556_v18 = vld [vmem:[#allocation2 + $0x8] sm:$0xff] }
  0x79   : > { %9405 = vmatpush3.bf16.msra.mxu1 %v10559_v23  ;;  %v759_v23 = vsel %vm11388_vm15, 0, %v758_v15  ;;  %v11418_v15 = vld [vmem:[#allocation2 + $0x20] sm:$0xff] }
  0x7a   : > { %9406 = vmatprep.subr.bf16.mxu1 %v10561_v24  ;;  %v2598_v24 = vshll.u32 %v2555_v4, 16  ;;  %760 = vst [vmem:[#allocation2 + $0x10] sm:$0x11] %v759_v23  ;;  %v762_v4 = vsel %vm11388_vm15, 0, %v761_v5  ;;  %v11423_v23 = vstv %s1422_s26 }
  0x7b   : > { %13562 = vst [vmem:[#allocation18_spill] sm:$0xff] %v11423_v23  ;;  %763 = vst [vmem:[#allocation2 + $0x28] sm:$0x11] %v762_v4  ;;  %v1426_v5 = vmul.bf16 %v11423_v23, %v1418_v60  ;;  %v1488_v51 = vmul.bf16 %v1484_v8, %v11423_v23  ;;  %v1489_v38 = vmul.bf16 %v1485_v21, %v11423_v23 }
  0x7c   : > { %1895 = vmatmul.mubr.bf16.gmra.mrb[32].mxu0 %v10524_v6  ;;  %v1417_v6 = vld [vmem:[%s11372_s29] sm:$0xf]  ;;  %v11425_v55 = vrot.slane %v2598_v24, 5 }
  0x7d   : > { %1902 = vmatprep.mubr.bf16.mxu0 %v10527_v13  ;;  %9407 = vmatpush3.bf16.msra.mxu1 %v10562_v31  ;;  %v10564_v13 = vld [vmem:[%s13507_s6 + $0xb8] sm:$0xff]   ;;  %v2608_v31 = vshrl.u32 %v2556_v18, 16  ;;  %v1425_v54 = vmul.bf16 %v11423_v23, %v1417_v6  ;;  %v10534_v6 = vld [vmem:[%s13507_s6 + $0x350] sm:$0xff]   ;;  %v1438_v21 = vshrl.u32 %v1426_v5, 16  ;;  %v1496_v4 = vshll.u32 %v1488_v51, 16 }
  0x7e   : > { %9408 = vmatprep.subr.bf16.mxu1 %v10563_v42  ;;  %v11414_v42 = vrot.slane %v2595_v19, 4  ;;  %v2622_v19 = vshll.u32 %v2558_v50, 16  ;;  %v1504_v30 = vshll.u32 %v1489_v38, 16 }
  0x7f   : > { %v11436_v17 = vrot.slane %v2608_v31, 4  ;;  %v1430_v60 = vshrl.u32 %v1425_v54, 16  ;;  %v1433_v8 = vshll.u32 %v1425_v54, 16  ;;  %v1493_v31 = vshrl.u32 %v1488_v51, 16  ;;  %v10535_v51 = vld [vmem:[%s13507_s6 + $0x310] sm:$0xff]  }
  0x80   : > { %v11440_v24 = vrot.slane %v2622_v19, 5  ;;  %v1501_v19 = vshrl.u32 %v1489_v38, 16  ;;  %v11448_v23 = vrot.slane %v1438_v21, 7  ;;  %v2601_v7 = vor.u32 %v11425_v55, %v11414_v42  ;;  %v2561_v42 = vld [vmem:[#allocation2 + $0x30] sm:$0xff] }
  0x81   : > { %9409 = vmatpush3.bf16.msra.mxu1 %v10564_v13  ;;  %v880_v14 = vld [vmem:[#allocation2 + $0x10] sm:$0x1]  ;;  %v942_v52 = vld [vmem:[#allocation2 + $0x14] sm:$0x1]  ;;  %v1495_v1 = vrot.slane %v1493_v31, 7 }
  0x82   : > { %v11450_v54 = vrot.slane %v1501_v19, 7  ;;  %v887_v31 = vld [vmem:[#allocation2 + $0x28] sm:$0x1] }
  0x84   : > { %1903 = vmatmul.mubr.bf16.gmra.mrb[36].mxu0 %v10529_v25  ;;  %v2604_v25 = vshll.u32 %v2556_v18, 16  ;;  %v10532_v18 = vld [vmem:[%s13507_s6 + $0x348] sm:$0xff]   ;;  %v1506_v19 = vor.u32 %v1504_v30, %v11450_v54 }
  0x85   : > { %2102 = vmatprep.mubr.bf16.mxu0 %v11127_v2  ;;  %v2619_v2 = vshrl.u32 %v2558_v50, 16  ;;  %v2628_v50 = vshll.u32 %v11418_v15, 16 }
  0x86   : > { %v11427_v27 = vrot.slane %v2604_v25, 5  ;;  %v1441_v25 = vshll.u32 %v1426_v5, 16  ;;  %v1532_v5 = vld [vmem:[#allocation2 + $0xf4] sm:$0xf] }
  0x87   : > { %v11438_v13 = vrot.slane %v2619_v2, 4  ;;  %v1470_v2 = vld [vmem:[#allocation2 + $0xf0] sm:$0xf] }
  0x88   : > { %v1443_v21 = vor.u32 %v1441_v25, %v11448_v23  ;;  %v2611_v55 = vor.u32 %v11436_v17, %v11427_v27  ;;  %v13566_v17 = vrot.slane %v11072_v0, 4  ;;  %v10537_v0 = vld [vmem:[%s13507_s6 + $0x318] sm:$0xff]  }
  0x8c   : > { %2103 = vmatmul.mubr.bf16.vlgmr.msra.gmra.mrb[40].mxu0 %v11129_v32  ;;  %v1432_v32 = vrot.slane %v1430_v60, 7 }
  0x8d   : > { %9319 = vmatpush3.bf16.msra.mxu0 %v10531_v46  ;;  %2110 = vmatprep.mubr.bf16.mxu0 %v11131_v3  ;;  %v881_v3 = vsel %vm10923_vm3, %v13563_v9, %v880_v14  ;;  %v13564_v46 = vrot.slane %v11044_v16, 4  ;;  %v949_v14 = vld [vmem:[#allocation2 + $0x2c] sm:$0x1]  ;;  %v10536_v16 = vld [vmem:[%s13507_s6 + $0x358] sm:$0xff]   ;;  %v1498_v9 = vor.u32 %v1496_v4, %v1495_v1  ;;  %v1268_v4 = vrot.slane %v11177_v63, 4 }
  0x8e   : > { %9320 = vmatprep.subr.bf16.mxu0 %v10532_v18  ;;  %v1435_v18 = vor.u32 %v1433_v8, %v1432_v32  ;;  %v1436_v60 = vrot.slane %v1432_v32, 4  ;;  %882 = vst [vmem:[#allocation2 + $0x10] sm:$0x1] %v881_v3  ;;  %v764_v8 = vld [vmem:[#allocation2 + $0x40] sm:$0x11]  ;;  %v2562_v3 = vld [vmem:[#allocation2 + $0x38] sm:$0xff] }
  0x8f   : > { %v943_v38 = vsel %vm10923_vm3, %v13564_v46, %v942_v52  ;;  %v1499_v52 = vrot.slane %v1495_v1, 4  ;;  %v1533_v1 = vsel %vm11040_vm12, %v1498_v9, %v1532_v5  ;;  %v2602_v46 = vrot.slane %v2601_v7, 4 }
  0x90   : > { %944 = vst [vmem:[#allocation2 + $0x14] sm:$0x1] %v943_v38  ;;  %v1444_v25 = vsel %vm11015_vm11, %v1436_v60, %v1443_v21  ;;  %v1471_v32 = vsel %vm11040_vm12, %v1435_v18, %v1470_v2  ;;  %1534 = vst [vmem:[#allocation2 + $0xf4] sm:$0xf] %v1533_v1  ;;  %v2630_v5 = vrot.slane %v2628_v50, 5  ;;  %v765_v38 = vsel %vm11388_vm15, 0, %v764_v8 }
  0x91   : > { %9321 = vmatpush3.bf16.msra.mxu0 %v10533_v29  ;;  %v2625_v29 = vor.u32 %v11440_v24, %v11438_v13  ;;  %1472 = vst [vmem:[#allocation2 + $0xf0] sm:$0xf] %v1471_v32  ;;  %1473 = vst [vmem:[#allocation2 + $0xf8] sm:$0xf] %v1444_v25  ;;  %v1507_v30 = vsel %vm11015_vm11, %v1499_v52, %v1506_v19  ;;  %v950_v13 = vsel %vm10923_vm3, %v13566_v17, %v949_v14  ;;  %v767_v24 = vld [vmem:[#allocation2 + $0x58] sm:$0x11] }
  0x92   : > { %9322 = vmatprep.subr.bf16.mxu0 %v10534_v6  ;;  %v13565_v6 = vrot.slane %v11052_v33, 4  ;;  %1535 = vst [vmem:[#allocation2 + $0xfc] sm:$0xf] %v1507_v30  ;;  %951 = vst [vmem:[#allocation2 + $0x2c] sm:$0x1] %v950_v13  ;;  %v2632_v33 = vshrl.u32 %v11418_v15, 16 }
  0x93   : > { %v2643_v18 = vshrl.u32 %v2561_v42, 16  ;;  %v2652_v60 = vshll.u32 %v2562_v3, 16  ;;  %v2564_v21 = vld [vmem:[#allocation2 + $0x48] sm:$0xff]  ;;  %v10538_v50 = vld [vmem:[%s13507_s6 + $0x360] sm:$0xff]   ;;  %v2612_v15 = vrot.slane %v2611_v55, 4  ;;  %v13567_v14 = vmov 0 }
  0x94   : > { %v888_v2 = vsel %vm10923_vm3, %v13565_v6, %v887_v31  ;;  %2111 = vmatmul.mubr.bf16.gmra.mrb[44].mxu0 %v11160_v44  ;;  %v2646_v44 = vshll.u32 %v2561_v42, 16  ;;  %v2634_v7 = vrot.slane %v2632_v33, 4  ;;  %766 = vst [vmem:[#allocation2 + $0x40] sm:$0x11] %v765_v38  ;;  %v13568_v14 = vsel %vm11506_vm2, 4294967295, %v13567_v14  ;;  %v2565_v19 = vld [vmem:[#allocation2 + $0x50] sm:$0xff] }
  0x95   : > { %889 = vst [vmem:[#allocation2 + $0x28] sm:$0x1] %v888_v2  ;;  %2118 = vmatprep.mubr.bf16.mxu0 %v11175_v59  ;;  %9323 = vmatpush3.bf16.msra.mxu0 %v10535_v51  ;;  %v2656_v59 = vshrl.u32 %v2562_v3, 16  ;;  %v768_v51 = vsel %vm11388_vm15, 0, %v767_v24  ;;  %13569 = vst [vmem:[#allocation19_spill] sm:$0xff] %v13568_v14  ;;  %v2626_v9 = vrot.slane %v2625_v29, 4  ;;  %v2607_v6 = vsel %vm11506_vm2, %v2602_v46, %v11427_v27 }
  0x96   : > { %9324 = vmatprep.subr.bf16.mxu0 %v10536_v16  ;;  %v11510_v16 = vrot.slane %v2643_v18, 4  ;;  %v11512_v52 = vrot.slane %v2646_v44, 5  ;;  %769 = vst [vmem:[#allocation2 + $0x58] sm:$0x11] %v768_v51  ;;  %v2635_v25 = vor.u32 %v2634_v7, %v2630_v5  ;;  %v2667_v32 = vshrl.u32 %v2564_v21, 16  ;;  %v10539_v3 = vld [vmem:[%s13507_s6 + $0x320] sm:$0xff]  }
  0x97   : > { %v2557_v31 = vld [vmem:[#allocation2 + $0x10] sm:$0x11]  ;;  %v2670_v55 = vshll.u32 %v2564_v21, 16  ;;  %v1052_v42 = vrot.slane %v11197_v35, 4  ;;  %v11518_v30 = vrot.slane %v2652_v60, 5  ;;  %v11520_v29 = vrot.slane %v2656_v59, 4 }
  0x98   : > { %v2614_v8 = vshll.u32 %v2557_v31, 16  ;;  %v10540_v1 = vld [vmem:[%s13507_s6 + $0x368] sm:$0xff]   ;;  %v2676_v17 = vshll.u32 %v2565_v19, 16  ;;  %v2680_v13 = vshrl.u32 %v2565_v19, 16  ;;  %v1285_v24 = vrot.slane %v11212_v53, 4  ;;  %v10547_v27 = vld [vmem:[%s13507_s6 + $0x370] sm:$0xff]  }
  0x99   : > { %9325 = vmatpush3.bf16.msra.mxu0 %v10537_v0  ;;  %v1069_v33 = vrot.slane %v11235_v26, 4  ;;  %v10541_v0 = vld [vmem:[%s13507_s6 + $0x328] sm:$0xff]   ;;  %v11535_v38 = vsel %vm11506_vm2, %v2626_v9, %v2630_v5  ;;  %v2649_v18 = vor.u32 %v11512_v52, %v11510_v16  ;;  %v770_v44 = vld [vmem:[#allocation2 + $0x70] sm:$0x11]  ;;  %v2636_v21 = vrot.slane %v2635_v25, 4  ;;  %v2567_v59 = vld [vmem:[#allocation2 + $0x60] sm:$0xff] }
  0x9a   : > { %9326 = vmatprep.subr.bf16.mxu0 %v10538_v50  ;;  %v2616_v2 = vrot.slane %v2614_v8, 5  ;;  %v2669_v50 = vrot.slane %v2667_v32, 4  ;;  %v2672_v7 = vrot.slane %v2670_v55, 5  ;;  %v2659_v16 = vor.u32 %v11520_v29, %v11518_v30  ;;  %v2568_v52 = vld [vmem:[#allocation2 + $0x68] sm:$0xff] }
  0x9b   : > { %v1133_v9 = vld [vmem:[#allocation2 + $0x40] sm:$0x1]  ;;  %v13571_v8 = vrot.slane %v11033_v61, 4  ;;  %v11556_v55 = vrot.slane %v2676_v17, 5  ;;  %v13572_v29 = vrot.slane %v11090_v22, 4 }
  0x9c   : > { %2119 = vmatmul.mubr.bf16.gmra.mrb[48].mxu0 %v11207_v48  ;;  %v2617_v46 = vsel %vm11506_vm2, %v2612_v15, %v2616_v2  ;;  %v2560_v60 = vld [vmem:[#allocation2 + $0x28] sm:$0x11]  ;;  %v1365_v48 = vld [vmem:[#allocation2 + $0x44] sm:$0x1]  ;;  %v13570_v15 = vrot.slane %v11010_v40, 4  ;;  %v771_v2 = vsel %vm11388_vm15, 0, %v770_v44  ;;  %v2673_v22 = vor.u32 %v2672_v7, %v2669_v50 }
  0x9d   : > { %2126 = vmatprep.mubr.bf16.mxu0 %v11209_v49  ;;  %9327 = vmatpush3.bf16.msra.mxu0 %v10539_v3  ;;  %v8485_v5 = vcombine.low %v2607_v6, %v2617_v46  ;;  %v8486_v51 = vcombine.high %v2607_v6, %v2617_v46  ;;  %v2638_v31 = vshll.u32 %v2560_v60, 16  ;;  %v1366_v49 = vsel %vm10923_vm3, %v13571_v8, %v1365_v48  ;;  %v1140_v25 = vld [vmem:[#allocation2 + $0x58] sm:$0x1]  ;;  %v1372_v32 = vld [vmem:[#allocation2 + $0x5c] sm:$0x1] }
  0x9e   : > { %9328 = vmatprep.subr.bf16.mxu0 %v10540_v1  ;;  %v1134_v19 = vsel %vm10923_vm3, %v13570_v15, %v1133_v9  ;;  %v2682_v3 = vrot.slane %v2680_v13, 4  ;;  %1367 = vst [vmem:[#allocation2 + $0x44] sm:$0x1] %v1366_v49  ;;  %v1141_v40 = vsel %vm10923_vm3, %v13572_v29, %v1140_v25  ;;  %v13573_v1 = vrot.slane %v11099_v34, 4  ;;  %v773_v17 = vld [vmem:[#allocation2 + $0x88] sm:$0x11] }
  0x9f   : > { %3075 = vmatprep.mubr.bf16.mxu1 %v8486_v51  ;;  %v2640_v6 = vrot.slane %v2638_v31, 5  ;;  %1135 = vst [vmem:[#allocation2 + $0x40] sm:$0x1] %v1134_v19  ;;  %v10549_v13 = vld [vmem:[%s13507_s6 + $0x330] sm:$0xff]   ;;  %1142 = vst [vmem:[#allocation2 + $0x58] sm:$0x1] %v1141_v40 }
  0xa0   : > { %v1373_v61 = vsel %vm10923_vm3, %v13573_v1, %v1372_v32  ;;  %3076 = vmatmul.mubr.bf16.vlgmr.msra.gmra.mrb[0].mxu1 %v8485_v5  ;;  %772 = vst [vmem:[#allocation2 + $0x70] sm:$0x11] %v771_v2  ;;  %v2691_v46 = vshrl.u32 %v2567_v59, 16  ;;  %v2694_v60 = vshll.u32 %v2567_v59, 16  ;;  %v2570_v51 = vld [vmem:[#allocation2 + $0x78] sm:$0xff]  ;;  %v2700_v9 = vshll.u32 %v2568_v52, 16 }
  0xa1   : > { %1374 = vst [vmem:[#allocation2 + $0x5c] sm:$0x1] %v1373_v61  ;;  %v776_v34 = vld [vmem:[#allocation2 + $0xa0] sm:$0x11]  ;;  %9329 = vmatpush3.bf16.msra.mxu0 %v10541_v0  ;;  %v10554_v31 = vld [vmem:[%s13507_s6 + $0x378] sm:$0xff]   ;;  %v2641_v44 = vsel %vm11506_vm2, %v2636_v21, %v2640_v6  ;;  %v2704_v48 = vshrl.u32 %v2568_v52, 16  ;;  %v2683_v0 = vor.u32 %v2682_v3, %v11556_v55 }
  0xa2   : > { %v774_v5 = vsel %vm11388_vm15, 0, %v773_v17  ;;  %v1302_v50 = vrot.slane %v11247_v56, 4  ;;  %9330 = vmatprep.subr.bf16.mxu0 %v10547_v27  ;;  %v11580_v7 = vcombine.high %v11535_v38, %v2641_v44  ;;  %v2571_v59 = vld [vmem:[#allocation2 + $0x80] sm:$0xff]  ;;  %v10555_v15 = vld [vmem:[%s13507_s6 + $0x338] sm:$0xff]   ;;  %v2650_v21 = vrot.slane %v2649_v18, 4 }
  0xa3   : > { %775 = vst [vmem:[#allocation2 + $0x88] sm:$0x11] %v774_v5  ;;  %v2660_v19 = vrot.slane %v2659_v16, 4  ;;  %v2715_v52 = vshrl.u32 %v2570_v51, 16  ;;  %v2718_v8 = vshll.u32 %v2570_v51, 16  ;;  %v10565_v27 = vld [vmem:[%s13507_s6 + $0x240] sm:$0xff]   ;;  %v11592_v49 = vcombine.low %v11535_v38, %v2641_v44 }
  0xa4   : > { %2127 = vmatmul.mubr.bf16.gmra.mrb[52].mxu0 %v11243_v37  ;;  %3083 = vmatprep.mubr.bf16.mxu1 %v11580_v7  ;;  %v2674_v25 = vrot.slane %v2673_v22, 4  ;;  %v11594_v32 = vrot.slane %v2691_v46, 4  ;;  %v777_v18 = vsel %vm11388_vm15, 0, %v776_v34  ;;  %v10577_v16 = vld [vmem:[%s13507_s6 + $0x3c0] sm:$0xff]   ;;  %v11602_v37 = vrot.slane %v2694_v60, 5  ;;  %v11608_v38 = vld [vmem:[#allocation2 + $0x90] sm:$0xff] }
  0xa5   : > { %2134 = vmatprep.mubr.bf16.mxu0 %v11250_v62  ;;  %9331 = vmatpush3.bf16.msra.mxu0 %v10549_v13  ;;  %v11604_v3 = vrot.slane %v2700_v9, 5  ;;  %v11606_v6 = vrot.slane %v2704_v48, 4  ;;  %778 = vst [vmem:[#allocation2 + $0xa0] sm:$0x11] %v777_v18  ;;  %v10578_v29 = vld [vmem:[%s13507_s6 + $0x380] sm:$0xff]   ;;  %v2684_v1 = vrot.slane %v2683_v0, 4  ;;  %v2655_v60 = vsel %vm11506_vm2, %v2650_v21, %v11518_v30 }
  0xa6   : > { %9332 = vmatprep.subr.bf16.mxu0 %v10554_v31  ;;  %v2563_v40 = vld [vmem:[#allocation2 + $0x40] sm:$0x11]  ;;  %v11613_v61 = vrot.slane %v2715_v52, 4  ;;  %v2724_v62 = vshll.u32 %v2571_v59, 16  ;;  %v2728_v2 = vshrl.u32 %v2571_v59, 16  ;;  %9546 = vmatprep.subr.bf16.mxu1 %v10577_v16  ;;  %v2720_v46 = vrot.slane %v2718_v8, 5 }
  0xa7   : > { %v2662_v17 = vshll.u32 %v2563_v40, 16  ;;  %v1147_v22 = vld [vmem:[#allocation2 + $0x70] sm:$0x1]  ;;  %9547 = vmatpush3.bf16.msra.mxu1 %v10578_v29  ;;  %v11622_v51 = vsel %vm11506_vm2, %v2674_v25, %v11556_v55  ;;  %v13574_v31 = vrot.slane %v11116_v57, 4  ;;  %v1379_v9 = vld [vmem:[#allocation2 + $0x74] sm:$0x1]  ;;  %v2697_v0 = vor.u32 %v11602_v37, %v11594_v32 }
  0xa8   : > { %v2566_v13 = vld [vmem:[#allocation2 + $0x58] sm:$0x11]  ;;  %3084 = vmatmul.mubr.bf16.gmra.mrb[4].mxu1 %v11592_v49  ;;  %v10579_v48 = vld [vmem:[%s13507_s6 + $0x3c8] sm:$0xff]   ;;  %v13575_v30 = vrot.slane %v11143_v20, 4  ;;  %v2707_v57 = vor.u32 %v11606_v6, %v11604_v3  ;;  %v2739_v32 = vshrl.u32 %v11608_v38, 16  ;;  %v11651_v16 = vrot.slane %v2724_v62, 5 }
  0xa9   : > { %v2686_v34 = vshll.u32 %v2566_v13, 16  ;;  %v1148_v44 = vsel %vm10923_vm3, %v13574_v31, %v1147_v22  ;;  %9333 = vmatpush3.bf16.msra.mxu0 %v10555_v15  ;;  %v2664_v5 = vrot.slane %v2662_v17, 5  ;;  %v2574_v52 = vld [vmem:[#allocation2 + $0x98] sm:$0xff]  ;;  %v13576_v15 = vrot.slane %v11157_v39, 4  ;;  %9548 = vmatprep.subr.bf16.mxu1 %v10579_v48  ;;  %v10580_v40 = vld [vmem:[%s13507_s6 + $0x388] sm:$0xff]  }
  0xaa   : > { %1149 = vst [vmem:[#allocation2 + $0x70] sm:$0x1] %v1148_v44  ;;  %v1380_v55 = vsel %vm10923_vm3, %v13575_v30, %v1379_v9  ;;  %v1154_v59 = vld [vmem:[#allocation2 + $0x88] sm:$0x1]  ;;  %v1386_v21 = vld [vmem:[#allocation2 + $0x8c] sm:$0x1]  ;;  %9470 = vmatprep.subr.bf16.mxu0 %v10565_v27  ;;  %v2721_v27 = vor.u32 %v2720_v46, %v11613_v61 }
  0xab   : > { %v2688_v8 = vrot.slane %v2686_v34, 5  ;;  %1381 = vst [vmem:[#allocation2 + $0x74] sm:$0x1] %v1380_v55  ;;  %v1155_v20 = vsel %vm10923_vm3, %v13576_v15, %v1154_v59  ;;  %v1387_v25 = vsel %vm10923_vm3, %v1268_v4, %v1386_v21  ;;  %v2665_v18 = vsel %vm11506_vm2, %v2660_v19, %v2664_v5  ;;  %v779_v62 = vld [vmem:[#allocation2 + $0xb8] sm:$0x11]  ;;  %9549 = vmatpush3.bf16.msra.mxu1 %v10580_v40  ;;  %v10581_v44 = vld [vmem:[%s13507_s6 + $0x3d0] sm:$0xff]  }
  0xac   : > { %1156 = vst [vmem:[#allocation2 + $0x88] sm:$0x1] %v1155_v20  ;;  %1388 = vst [vmem:[#allocation2 + $0x8c] sm:$0x1] %v1387_v25  ;;  %v2730_v39 = vrot.slane %v2728_v2, 4  ;;  %2135 = vmatmul.mubr.bf16.gmra.mrb[56].mxu0 %v11269_v28  ;;  %v11654_v37 = vcombine.high %v2655_v60, %v2665_v18  ;;  %v11656_v63 = vcombine.low %v2655_v60, %v2665_v18  ;;  %v2742_v19 = vshll.u32 %v11608_v38, 16 }
  0xad   : > { %v2689_v4 = vsel %vm11506_vm2, %v2684_v1, %v2688_v8  ;;  %v1161_v6 = vld [vmem:[#allocation2 + $0xa0] sm:$0x1]  ;;  %v1393_v29 = vld [vmem:[#allocation2 + $0xa4] sm:$0x1]  ;;  %2142 = vmatprep.mubr.bf16.mxu0 %v11274_v41  ;;  %v2748_v38 = vshll.u32 %v2574_v52, 16  ;;  %v2576_v2 = vld [vmem:[#allocation2 + $0xa8] sm:$0xff]  ;;  %9550 = vmatprep.subr.bf16.mxu1 %v10581_v44 }
  0xae   : > { %v11666_v61 = vcombine.high %v11622_v51, %v2689_v4  ;;  %v1162_v28 = vsel %vm10923_vm3, %v1052_v42, %v1161_v6  ;;  %v1394_v1 = vsel %vm10923_vm3, %v1285_v24, %v1393_v29  ;;  %v1086_v17 = vrot.slane %v11259_v10, 4  ;;  %3091 = vmatprep.mubr.bf16.mxu1 %v11654_v37  ;;  %v2577_v42 = vld [vmem:[#allocation2 + $0xb0] sm:$0xff] }
  0xaf   : > { %1163 = vst [vmem:[#allocation2 + $0xa0] sm:$0x1] %v1162_v28  ;;  %1395 = vst [vmem:[#allocation2 + $0xa4] sm:$0x1] %v1394_v1  ;;  %v2752_v41 = vshrl.u32 %v2574_v52, 16  ;;  %v780_v35 = vsel %vm11388_vm15, 0, %v779_v62  ;;  %v2731_v46 = vor.u32 %v2730_v39, %v11651_v16  ;;  %v11693_v8 = vcombine.low %v11622_v51, %v2689_v4 }
  0xb0   : > { %v2698_v13 = vrot.slane %v2697_v0, 4  ;;  %v2708_v53 = vrot.slane %v2707_v57, 4  ;;  %v2722_v22 = vrot.slane %v2721_v27, 4  ;;  %781 = vst [vmem:[#allocation2 + $0xb8] sm:$0x11] %v780_v35  ;;  %v2763_v24 = vshrl.u32 %v2576_v2, 16  ;;  %3092 = vmatmul.mubr.bf16.gmra.mrb[8].mxu1 %v11656_v63 }
  0xb1   : > { %v2741_v60 = vrot.slane %v2739_v32, 4  ;;  %v2744_v34 = vrot.slane %v2742_v19, 5  ;;  %v2766_v31 = vshll.u32 %v2576_v2, 16  ;;  %3099 = vmatprep.mubr.bf16.mxu1 %v11666_v61  ;;  %v11686_v48 = vrot.slane %v2748_v38, 5  ;;  %v10583_v59 = vld [vmem:[%s13507_s6 + $0x390] sm:$0xff]   ;;  %v13577_v35 = vld [vmem:[#allocation14_spill] sm:$0xff] }
  0xb2   : > { %v2569_v9 = vld [vmem:[#allocation2 + $0x70] sm:$0x11]  ;;  %v2754_v5 = vrot.slane %v2752_v41, 4  ;;  %v2772_v30 = vshll.u32 %v2577_v42, 16  ;;  %v2776_v55 = vshrl.u32 %v2577_v42, 16  ;;  %v2765_v52 = vrot.slane %v2763_v24, 4  ;;  %9551 = vmatpush3.bf16.msra.mxu1 %v10583_v59 }
  0xb3   : > { %v2710_v0 = vshll.u32 %v2569_v9, 16  ;;  %v2572_v57 = vld [vmem:[#allocation2 + $0x88] sm:$0x11]  ;;  %v2703_v15 = vsel %vm11506_vm2, %v2698_v13, %v11604_v3  ;;  %v2768_v25 = vrot.slane %v2766_v31, 5  ;;  %v2732_v32 = vrot.slane %v2731_v46, 4  ;;  %v2579_v41 = vld [vmem:[#allocation2 + $0xc0] sm:$0xff] }
  0xb4   : > { %v2734_v21 = vshll.u32 %v2572_v57, 16  ;;  %2143 = vmatmul.mubr.bf16.gmra.mrb[60].mxu0 %v11311_v36  ;;  %v11699_v27 = vrot.slane %v2772_v30, 5  ;;  %v2778_v39 = vrot.slane %v2776_v55, 4  ;;  %v10585_v36 = vld [vmem:[%s13507_s6 + $0x3d8] sm:$0xff]   ;;  %v2745_v6 = vor.u32 %v2744_v34, %v2741_v60  ;;  %v782_v2 = vld [vmem:[#allocation2 + $0xd0] sm:$0x11] }
  0xb5   : > { %v2712_v20 = vrot.slane %v2710_v0, 5  ;;  %2150 = vmatprep.mubr.bf16.mxu0 %v11315_v47  ;;  %v10586_v47 = vld [vmem:[%s13507_s6 + $0x398] sm:$0xff]   ;;  %v2755_v40 = vor.u32 %v2754_v5, %v11686_v48  ;;  %9552 = vmatprep.subr.bf16.mxu1 %v10585_v36  ;;  %v1319_v1 = vrot.slane %v11283_v58, 4  ;;  %v2769_v62 = vor.u32 %v2768_v25, %v2765_v52  ;;  %v2580_v13 = vld [vmem:[#allocation2 + $0xc8] sm:$0xff]  ;;  %v10587_v46 = vld [vmem:[%s13507_s6 + $0x3e0] sm:$0xff]  }
  0xb6   : > { %v2575_v18 = vld [vmem:[#allocation2 + $0xa0] sm:$0x11]  ;;  %v2736_v4 = vrot.slane %v2734_v21, 5  ;;  %v1103_v42 = vrot.slane %v13577_v35, 4  ;;  %9553 = vmatpush3.bf16.msra.mxu1 %v10586_v47  ;;  %v783_v58 = vsel %vm11388_vm15, 0, %v782_v2  ;;  %v2727_v56 = vsel %vm11506_vm2, %v2722_v22, %v11651_v16  ;;  %v13578_v44 = vld [vmem:[#allocation16_spill] sm:$0xff] }
  0xb7   : > { %v2713_v51 = vsel %vm11506_vm2, %v2708_v53, %v2712_v20  ;;  %v1168_v3 = vld [vmem:[#allocation2 + $0xb8] sm:$0x1]  ;;  %v1400_v29 = vld [vmem:[#allocation2 + $0xbc] sm:$0x1]  ;;  %v2758_v26 = vshll.u32 %v2575_v18, 16  ;;  %v2746_v53 = vrot.slane %v2745_v6, 4  ;;  %9554 = vmatprep.subr.bf16.mxu1 %v10587_v46 }
  0xb8   : > { %v11709_v19 = vcombine.high %v2703_v15, %v2713_v51  ;;  %v1169_v28 = vsel %vm10923_vm3, %v1069_v33, %v1168_v3  ;;  %3100 = vmatmul.mubr.bf16.gmra.mrb[12].mxu1 %v11693_v8  ;;  %v1401_v38 = vsel %vm10923_vm3, %v1302_v50, %v1400_v29  ;;  %v2779_v33 = vor.u32 %v2778_v39, %v11699_v27  ;;  %v10588_v60 = vld [vmem:[%s13507_s6 + $0x3a0] sm:$0xff]   ;;  %v13579_v5 = vld [vmem:[#allocation17_spill] sm:$0xff]  ;;  %v10591_v52 = vld [vmem:[%s13507_s6 + $0x3e8] sm:$0xff]  }
  0xb9   : > { %1170 = vst [vmem:[#allocation2 + $0xb8] sm:$0x1] %v1169_v28  ;;  %1402 = vst [vmem:[#allocation2 + $0xbc] sm:$0x1] %v1401_v38  ;;  %v2737_v50 = vsel %vm11506_vm2, %v2732_v32, %v2736_v4  ;;  %v2787_v24 = vshrl.u32 %v2579_v41, 16  ;;  %v2756_v34 = vrot.slane %v2755_v40, 4  ;;  %v11739_v16 = vcombine.low %v2703_v15, %v2713_v51 }
  0xba   : > { %3107 = vmatprep.mubr.bf16.mxu1 %v11709_v19  ;;  %784 = vst [vmem:[#allocation2 + $0xd0] sm:$0x11] %v783_v58  ;;  %v2790_v31 = vshll.u32 %v2579_v41, 16  ;;  %v2770_v22 = vrot.slane %v2769_v62, 4  ;;  %v2796_v9 = vshll.u32 %v2580_v13, 16  ;;  %v11742_v30 = vcombine.high %v2727_v56, %v2737_v50  ;;  %9555 = vmatpush3.bf16.msra.mxu1 %v10588_v60  ;;  %v13581_v51 = vld [vmem:[#allocation18_spill] sm:$0xff] }
  0xbb   : > { %v2760_v55 = vrot.slane %v2758_v26, 5  ;;  %v11744_v0 = vrot.slane %v2779_v33, 4  ;;  %v11746_v57 = vrot.slane %v2787_v24, 4  ;;  %v2800_v59 = vshrl.u32 %v2580_v13, 16  ;;  %v750_v15 = vld [vmem:[#allocation2 + $0x108] sm:$0x11]  ;;  %9556 = vmatprep.subr.bf16.mxu1 %v10591_v52 }
  0xbc   : > { %2151 = vmatmul.mubr.bf16.gmra.mrb[64].mxu0 %v13578_v44  ;;  %v11748_v21 = vrot.slane %v2790_v31, 5  ;;  %v1419_v20 = vld [vmem:[%s11372_s29 + $0x8] sm:$0xf]  ;;  %v11755_v32 = vrot.slane %v2796_v9, 5  ;;  %v751_v39 = vsel %vm10936_vm6, 0, %v750_v15  ;;  %v11765_v6 = vsel %vm11506_vm2, %v2746_v53, %v11686_v48  ;;  %v10596_v52 = vld [vmem:[%s13507_s6 + $0x3b0] sm:$0xff]   ;;  %vm12076_vm6 = vmor %vm3950_vm4, %vm3951_vm5 }
  0xbd   : > { %2158 = vmatprep.mubr.bf16.mxu0 %v13579_v5  ;;  %v1420_v36 = vld [vmem:[%s11372_s29 + $0xc] sm:$0xf]  ;;  %v1427_v4 = vmul.bf16 %v13581_v51, %v1419_v20  ;;  %v11769_v3 = vsel %vm11506_vm2, %v2756_v34, %v2760_v55  ;;  %752 = vst [vmem:[#allocation2 + $0x108] sm:$0x11] %v751_v39  ;;  %v1486_v26 = vld [vmem:[%s11381_s18 + $0x8] sm:$0xf]  ;;  %v11787_v10 = vcombine.low %v2727_v56, %v2737_v50 }
  0xbe   : > { %v1428_v28 = vmul.bf16 %v13581_v51, %v1420_v36  ;;  %v10593_v38 = vld [vmem:[%s13507_s6 + $0x3a8] sm:$0xff]   ;;  %v2802_v58 = vrot.slane %v2800_v59, 4  ;;  %v1490_v24 = vmul.bf16 %v1486_v26, %v13581_v51  ;;  %v11790_v31 = vld [vmem:[#allocation2 + $0xdc] ss:$8 sps:$4 sm:$0xff]   ;;  %v11795_v44 = vcombine.high %v11765_v6, %v11769_v3  ;;  %v10595_v56 = vld [vmem:[%s13507_s6 + $0x3f0] sm:$0xff]  }
  0xbf   : > { %v1447_v2 = vshrl.u32 %v1427_v4, 16  ;;  %v1450_v41 = vshll.u32 %v1427_v4, 16  ;;  %v1487_v33 = vld [vmem:[%s11381_s18 + $0xc] sm:$0xf]  ;;  %9557 = vmatpush3.bf16.msra.mxu1 %v10593_v38  ;;  %v11784_v46 = vld [vmem:[#allocation2 + $0xc0] ss:$8 sps:$4 sm:$0xff]   ;;  %v11810_v20 = vsel %vm11506_vm2, %v2770_v22, %v11699_v27  ;;  %v2793_v4 = vor.u32 %v11748_v21, %v11746_v57 }
  0xc0   : > { %3108 = vmatmul.mubr.bf16.gmra.mrb[16].mxu1 %v11739_v16  ;;  %v2578_v25 = vld [vmem:[#allocation2 + $0xb8] sm:$0x11]  ;;  %v1455_v13 = vshrl.u32 %v1428_v28, 16  ;;  %v1458_v53 = vshll.u32 %v1428_v28, 16  ;;  %v1491_v60 = vmul.bf16 %v1487_v33, %v13581_v51  ;;  %v785_v34 = vld [vmem:[#allocation2 + $0xe8] sm:$0x11]  ;;  %9558 = vmatprep.subr.bf16.mxu1 %v10595_v56 }
  0xc1   : > { %3115 = vmatprep.mubr.bf16.mxu1 %v11742_v30  ;;  %v2782_v29 = vshll.u32 %v2578_v25, 16  ;;  %v1175_v47 = vld [vmem:[#allocation2 + $0xd0] sm:$0x1]  ;;  %v1407_v40 = vld [vmem:[#allocation2 + $0xd4] sm:$0x1]  ;;  %v1510_v5 = vshrl.u32 %v1490_v24, 16 }
  0xc2   : > { %v1176_v48 = vsel %vm10923_vm3, %v1086_v17, %v1175_v47  ;;  %v1408_v62 = vsel %vm10923_vm3, %v1319_v1, %v1407_v40  ;;  %v1449_v1 = vrot.slane %v1447_v2, 7  ;;  %v11797_v9 = vrot.slane %v1455_v13, 7  ;;  %v11805_v15 = vld [vmem:[#allocation2 + $0xf4] ss:$8 sps:$4 sm:$0xff]   ;;  %v13582_v28 = vld [vmem:[#allocation15_spill] sm:$0xff] }
  0xc3   : > { %1177 = vst [vmem:[#allocation2 + $0xd0] sm:$0x1] %v1176_v48  ;;  %1409 = vst [vmem:[#allocation2 + $0xd4] sm:$0x1] %v1408_v62  ;;  %v2784_v17 = vrot.slane %v2782_v29, 5  ;;  %v1513_v55 = vshll.u32 %v1490_v24, 16  ;;  %v2803_v29 = vor.u32 %v2802_v58, %v11755_v32  ;;  %9559 = vmatpush3.bf16.msra.mxu1 %v10596_v52 }
  0xc4   : > { %2159 = vmatmul.mubr.bf16.gmra.mrb[68].mxu0 %v11784_v46  ;;  %v1452_v50 = vor.u32 %v1450_v41, %v1449_v1  ;;  %v1453_v59 = vrot.slane %v1449_v1, 4  ;;  %v1460_v25 = vor.u32 %v1458_v53, %v11797_v9  ;;  %v1512_v18 = vrot.slane %v1510_v5, 7  ;;  %v2582_v36 = vld [vmem:[#allocation2 + $0xd8] sm:$0xff]  ;;  %v1477_v47 = vld [vmem:[#allocation2 + $0x108] sm:$0xf]  ;;  %v2583_v58 = vld [vmem:[#allocation2 + $0xe0] sm:$0xff] }
  0xc5   : > { %2166 = vmatprep.mubr.bf16.mxu0 %v11790_v31  ;;  %v1518_v39 = vshrl.u32 %v1491_v60, 16  ;;  %v10597_v51 = vld [vmem:[%s13507_s6 + $0x3f8] sm:$0xff]   ;;  %v1521_v27 = vshll.u32 %v1491_v60, 16  ;;  %v1539_v22 = vld [vmem:[#allocation2 + $0x10c] sm:$0xf]  ;;  %v786_v40 = vsel %vm11388_vm15, 0, %v785_v34  ;;  %v2785_v21 = vsel %vm11506_vm2, %v11744_v0, %v2784_v17 }
  0xc6   : > { %v1336_v38 = vrot.slane %v13582_v28, 4  ;;  %v1461_v48 = vsel %vm11015_vm11, %v1453_v59, %v1460_v25  ;;  %v1478_v62 = vsel %vm11040_vm12, %v1452_v50, %v1477_v47  ;;  %v1515_v2 = vor.u32 %v1513_v55, %v1512_v18  ;;  %787 = vst [vmem:[#allocation2 + $0xe8] sm:$0x11] %v786_v40  ;;  %v10598_v57 = vld [vmem:[%s13507_s6 + $0x3b8] sm:$0xff]   ;;  %9560 = vmatprep.subr.bf16.mxu1 %v10597_v51 }
  0xc7   : > { %1479 = vst [vmem:[#allocation2 + $0x108] sm:$0xf] %v1478_v62  ;;  %1480 = vst [vmem:[#allocation2 + $0x110] sm:$0xf] %v1461_v48  ;;  %v1516_v26 = vrot.slane %v1512_v18, 4  ;;  %v11834_v33 = vrot.slane %v1518_v39, 7  ;;  %v11843_v0 = vcombine.low %v11765_v6, %v11769_v3  ;;  %v11848_v55 = vcombine.high %v11810_v20, %v2785_v21  ;;  %9561 = vmatpush3.bf16.msra.mxu1 %v10598_v57 }
  0xc8   : > { %3116 = vmatmul.mubr.bf16.gmra.mrb[20].mxu1 %v11787_v10  ;;  %v2811_v13 = vshrl.u32 %v2582_v36, 16  ;;  %v1540_v24 = vsel %vm11040_vm12, %v1515_v2, %v1539_v22  ;;  %v2814_v1 = vshll.u32 %v2582_v36, 16  ;;  %v11838_v60 = vld [vmem:[#allocation2 + $0xd8] ss:$8 sps:$4 sm:$0xff]   ;;  %v2794_v17 = vrot.slane %v2793_v4, 4  ;;  %v10567_v48 = vld [vmem:[%s13507_s6 + $0x248] sm:$0xff]  }
  0xc9   : > { %3123 = vmatprep.mubr.bf16.mxu1 %v11795_v44  ;;  %v2804_v34 = vrot.slane %v2803_v29, 4  ;;  %v1523_v5 = vor.u32 %v1521_v27, %v11834_v33  ;;  %1541 = vst [vmem:[#allocation2 + $0x10c] sm:$0xf] %v1540_v24  ;;  %v2820_v50 = vshll.u32 %v2583_v58, 16  ;;  %v2824_v59 = vshrl.u32 %v2583_v58, 16  ;;  %v10569_v24 = vld [vmem:[%s13507_s6 + $0x250] sm:$0xff]  }
  0xca   : > { %v2581_v41 = vld [vmem:[#allocation2 + $0xd0] sm:$0x11]  ;;  %v2813_v6 = vrot.slane %v2811_v13, 4  ;;  %v2816_v3 = vrot.slane %v2814_v1, 5  ;;  %v2799_v47 = vsel %vm11506_vm2, %v2794_v17, %v11755_v32  ;;  %v11869_v35 = vcombine.low %v11810_v20, %v2785_v21  ;;  %v10566_v32 = vld [vmem:[%s13507_s6 + $0x200] sm:$0xff]   ;;  %v10568_v21 = vld [vmem:[%s13507_s6 + $0x208] sm:$0xff]  }
  0xcb   : > { %v2806_v53 = vshll.u32 %v2581_v41, 16  ;;  %v1524_v52 = vsel %vm11015_vm11, %v1516_v26, %v1523_v5  ;;  %v11852_v25 = vld [vmem:[#allocation2 + $0xf0] ss:$8 sps:$4 sm:$0xff]   ;;  %v2822_v4 = vrot.slane %v2820_v50, 5  ;;  %v2826_v29 = vrot.slane %v2824_v59, 4  ;;  %v10611_v13 = vld [vmem:[%s13507_s6 + $0x2c0] sm:$0xff]  }
  0xcc   : > { %2167 = vmatmul.mubr.bf16.gmra.mrb[72].mxu0 %v11838_v60  ;;  %1542 = vst [vmem:[#allocation2 + $0x114] sm:$0xf] %v1524_v52  ;;  %v2817_v22 = vor.u32 %v2816_v3, %v2813_v6  ;;  %v10651_v57 = vld [vmem:[#allocation2 + $0x30] ss:$8 sps:$4 sm:$0xff]   ;;  %9698 = vmatprep.subr.bf16.mxu1 %v10611_v13  ;;  %v10654_v6 = vld [vmem:[#allocation2 + $0x64] ss:$8 sps:$4 sm:$0xff]  }
  0xcd   : > { %2174 = vmatprep.mubr.bf16.mxu0 %v11805_v15  ;;  %v2808_v56 = vrot.slane %v2806_v53, 5  ;;  %v1182_v18 = vld [vmem:[#allocation2 + $0xe8] sm:$0x1]  ;;  %v1414_v39 = vld [vmem:[#allocation2 + $0xec] sm:$0x1]  ;;  %v2827_v28 = vor.u32 %v2826_v29, %v2822_v4  ;;  %v10571_v5 = vld [vmem:[%s13507_s6 + $0x258] sm:$0xff]  }
  0xce   : > { %v1183_v36 = vsel %vm10923_vm3, %v1103_v42, %v1182_v18  ;;  %v1415_v51 = vsel %vm10923_vm3, %v1336_v38, %v1414_v39  ;;  %v10650_v42 = vld [vmem:[#allocation2 + $0x34] ss:$8 sps:$4 sm:$0xff]   ;;  %v2818_v38 = vrot.slane %v2817_v22, 4  ;;  %v10653_v59 = vld [vmem:[#allocation2 + $0x48] ss:$8 sps:$4 sm:$0xff]   ;;  %v10573_v18 = vld [vmem:[%s13507_s6 + $0x260] sm:$0xff]  }
  0xcf   : > { %v2809_v27 = vsel %vm11506_vm2, %v2804_v34, %v2808_v56  ;;  %1184 = vst [vmem:[#allocation2 + $0xe8] sm:$0x1] %v1183_v36  ;;  %1416 = vst [vmem:[#allocation2 + $0xec] sm:$0x1] %v1415_v51  ;;  %v2828_v62 = vrot.slane %v2827_v28, 4  ;;  %v10570_v34 = vld [vmem:[%s13507_s6 + $0x210] sm:$0xff]  }
  0xd0   : > { %3124 = vmatmul.mubr.bf16.gmra.mrb[24].mxu1 %v11843_v0  ;;  %v11871_v40 = vcombine.high %v2799_v47, %v2809_v27  ;;  %v11884_v41 = vcombine.low %v2799_v47, %v2809_v27  ;;  %v2823_v26 = vsel %vm11506_vm2, %v2818_v38, %v2822_v4  ;;  %v10652_v53 = vld [vmem:[#allocation2 + $0x4c] ss:$8 sps:$4 sm:$0xff]   ;;  %v788_v56 = vld [vmem:[#allocation2 + $0x100] sm:$0x11]  ;;  %v10572_v3 = vld [vmem:[%s13507_s6 + $0x218] sm:$0xff]   ;;  %v1445_v39 = vrot.slane %v11448_v23, 4 }
  0xd1   : > { %3131 = vmatprep.mubr.bf16.mxu1 %v11848_v55  ;;  %v789_v50 = vsel %vm11388_vm15, 0, %v788_v56  ;;  %v1508_v36 = vrot.slane %v11450_v54, 4  ;;  %v10574_v51 = vld [vmem:[%s13507_s6 + $0x220] sm:$0xff]   ;;  %v10575_v4 = vld [vmem:[%s13507_s6 + $0x268] sm:$0xff]   ;;  %v791_v22 = vld [vmem:[#allocation2 + $0x118] sm:$0x11] }
  0xd2   : > { %790 = vst [vmem:[#allocation2 + $0x100] sm:$0x11] %v789_v50  ;;  %v10655_v27 = vld [vmem:[#allocation2 + $0x60] ss:$8 sps:$4 sm:$0xff]   ;;  %v792_v38 = vsel %vm11388_vm15, 0, %v791_v22  ;;  %v10619_v56 = vld [vmem:[%s13507_s6 + $0x2d8] sm:$0xff]  }
  0xd3   : > { %v10576_v28 = vld [vmem:[%s13507_s6 + $0x228] sm:$0xff]   ;;  %793 = vst [vmem:[#allocation2 + $0x118] sm:$0x11] %v792_v38  ;;  %v10658_v13 = vld [vmem:[#allocation2 + $0x94] ss:$8 sps:$4 sm:$0xff]  }
  0xd4   : > { %2175 = vmatmul.mubr.bf16.gmra.mrb[76].mxu0 %v11852_v25  ;;  %v10620_v50 = vld [vmem:[%s13507_s6 + $0x298] sm:$0xff]  }
  0xd5   : > { %2414 = vmatprep.mubr.bf16.mxu0 %v10650_v42  ;;  %v10656_v42 = vld [vmem:[#allocation2 + $0x7c] ss:$8 sps:$4 sm:$0xff]  }
  0xd6   : > { %v2584_v20 = vld [vmem:[#allocation2 + $0xe8] sm:$0x11]  ;;  %v12011_v22 = vld [vmem:[#allocation2 + $0xf8] sm:$0xff] }
  0xd7   : > { %v2830_v2 = vshll.u32 %v2584_v20, 16  ;;  %v10613_v20 = vld [vmem:[%s13507_s6 + $0x2c8] sm:$0xff]  }
  0xd8   : > { %3132 = vmatmul.mubr.bf16.gmra.mrb[28].mxu1 %v11869_v35 }
  0xd9   : > { %3139 = vmatprep.mubr.bf16.mxu1 %v11871_v40  ;;  %v2832_v58 = vrot.slane %v2830_v2, 5  ;;  %v1474_v29 = vld [vmem:[#allocation2 + $0x100] sm:$0x1]  ;;  %v1536_v47 = vld [vmem:[#allocation2 + $0x104] sm:$0x1]  ;;  %v1462_v2 = vrot.slane %v11797_v9, 4 }
  0xda   : > { %v1475_v23 = vsel %vm10923_vm3, %v1445_v39, %v1474_v29  ;;  %v1537_v54 = vsel %vm10923_vm3, %v1508_v36, %v1536_v47  ;;  %v10590_v9 = vld [vmem:[%s13507_s6 + $0x238] sm:$0xff]   ;;  %v10625_v39 = vld [vmem:[%s13507_s6 + $0x2e8] sm:$0xff]   ;;  %v10628_v47 = vld [vmem:[%s13507_s6 + $0x2b0] sm:$0xff]  }
  0xdb   : > { %v2833_v1 = vsel %vm11506_vm2, %v2828_v62, %v2832_v58  ;;  %1476 = vst [vmem:[#allocation2 + $0x100] sm:$0x1] %v1475_v23  ;;  %1538 = vst [vmem:[#allocation2 + $0x104] sm:$0x1] %v1537_v54  ;;  %v10584_v62 = vld [vmem:[%s13507_s6 + $0x230] sm:$0xff]   ;;  %v10626_v36 = vld [vmem:[%s13507_s6 + $0x2a8] sm:$0xff]  }
  0xdc   : > { %2415 = vmatmul.mubr.bf16.vlgmr.msra.gmra.mrb[80].mxu0 %v10651_v57  ;;  %v11896_v17 = vcombine.high %v2823_v26, %v2833_v1  ;;  %v11908_v52 = vcombine.low %v2823_v26, %v2833_v1  ;;  %v1525_v57 = vrot.slane %v11834_v33, 4  ;;  %v10615_v26 = vld [vmem:[%s13507_s6 + $0x2d0] sm:$0xff]   ;;  %v10657_v58 = vld [vmem:[#allocation2 + $0x78] ss:$8 sps:$4 sm:$0xff]   ;;  %v10662_v29 = vld [vmem:[#allocation2 + $0xc4] ss:$8 sps:$4 sm:$0xff]  }
  0xdd   : > { %9471 = vmatpush3.bf16.msra.mxu0 %v10566_v32  ;;  %2422 = vmatprep.mubr.bf16.mxu0 %v10652_v53  ;;  %v10582_v32 = vld [vmem:[%s13507_s6 + $0x270] sm:$0xff]   ;;  %v1481_v33 = vld [vmem:[#allocation2 + $0x118] sm:$0x1]  ;;  %v1543_v53 = vld [vmem:[#allocation2 + $0x11c] sm:$0x1] }
  0xde   : > { %9472 = vmatprep.subr.bf16.mxu0 %v10567_v48  ;;  %v10612_v48 = vld [vmem:[%s13507_s6 + $0x280] sm:$0xff]   ;;  %v10617_v1 = vld [vmem:[%s13507_s6 + $0x290] sm:$0xff]   ;;  %v10630_v23 = vld [vmem:[%s13507_s6 + $0x2b8] sm:$0xff]  }
  0xdf   : > { %v2585_v54 = vld [vmem:[#allocation2 + $0xf0] sm:$0xff] }
  0xe0   : > { %3140 = vmatmul.mubr.bf16.gmra.mrb[32].mxu1 %v11884_v41 }
  0xe1   : > { %9473 = vmatpush3.bf16.msra.mxu0 %v10568_v21  ;;  %3147 = vmatprep.mubr.bf16.mxu1 %v11896_v17  ;;  %v10614_v21 = vld [vmem:[%s13507_s6 + $0x288] sm:$0xff]  }
  0xe2   : > { %9474 = vmatprep.subr.bf16.mxu0 %v10569_v24  ;;  %v10599_v24 = vld [vmem:[%s13507_s6 + $0x140] sm:$0xff]  }
  0xe4   : > { %2423 = vmatmul.mubr.bf16.gmra.mrb[84].mxu0 %v10653_v59  ;;  %v10621_v59 = vld [vmem:[%s13507_s6 + $0x2e0] sm:$0xff]  }
  0xe5   : > { %2430 = vmatprep.mubr.bf16.mxu0 %v10654_v6  ;;  %9475 = vmatpush3.bf16.msra.mxu0 %v10570_v34  ;;  %v1482_v34 = vsel %vm10923_vm3, %v1462_v2, %v1481_v33  ;;  %v10659_v6 = vld [vmem:[#allocation2 + $0x90] ss:$8 sps:$4 sm:$0xff]   ;;  %v1568_v2 = vld [vmem:[#allocation2 + $0x108] sm:$0xff]  ;;  %v2587_v33 = vld [vmem:[#allocation2 + $0x100] sm:$0x11] }
  0xe6   : > { %9476 = vmatprep.subr.bf16.mxu0 %v10571_v5  ;;  %v1544_v5 = vsel %vm10923_vm3, %v1525_v57, %v1543_v53  ;;  %1483 = vst [vmem:[#allocation2 + $0x118] sm:$0x1] %v1482_v34  ;;  %v1569_v57 = vld [vmem:[#allocation2 + $0x110] sm:$0xff] }
  0xe7   : > { %1545 = vst [vmem:[#allocation2 + $0x11c] sm:$0x1] %v1544_v5 }
  0xe8   : > { %3148 = vmatmul.mubr.bf16.gmra.mrb[36].mxu1 %v11908_v52 }
  0xe9   : > { %9477 = vmatpush3.bf16.msra.mxu0 %v10572_v3  ;;  %3743 = vmatprep.mubr.bf16.mxu1 %v11654_v37  ;;  %v10660_v3 = vld [vmem:[#allocation2 + $0xac] ss:$8 sps:$4 sm:$0xff]  }
  0xea   : > { %9478 = vmatprep.subr.bf16.mxu0 %v10573_v18  ;;  %v10622_v18 = vld [vmem:[%s13507_s6 + $0x2a0] sm:$0xff]  }
  0xec   : > { %2431 = vmatmul.mubr.bf16.gmra.mrb[88].mxu0 %v10655_v27  ;;  %v10629_v27 = vld [vmem:[%s13507_s6 + $0x2f8] sm:$0xff]  }
  0xed   : > { %2438 = vmatprep.mubr.bf16.mxu0 %v10656_v42  ;;  %9479 = vmatpush3.bf16.msra.mxu0 %v10574_v51  ;;  %v10627_v51 = vld [vmem:[%s13507_s6 + $0x2f0] sm:$0xff]  }
  0xee   : > { %9480 = vmatprep.subr.bf16.mxu0 %v10575_v4  ;;  %v10661_v4 = vld [vmem:[#allocation2 + $0xa8] ss:$8 sps:$4 sm:$0xff]  }
  0xf0   : > { %3744 = vmatmul.mubr.bf16.vlgmr.msra.gmra.mrb[40].mxu1 %v11656_v63 }
  0xf1   : > { %9481 = vmatpush3.bf16.msra.mxu0 %v10576_v28  ;;  %3751 = vmatprep.mubr.bf16.mxu1 %v11666_v61 }
  0xf2   : > { %9482 = vmatprep.subr.bf16.mxu0 %v10582_v32  ;;  %9699 = vmatpush3.bf16.msra.mxu1 %v10612_v48  ;;  %v3217_v32 = vshrl.u32 %v2585_v54, 16 }
  0xf3   : > { %9700 = vmatprep.subr.bf16.mxu1 %v10613_v20  ;;  %v3220_v20 = vshll.u32 %v2585_v54, 16  ;;  %v2590_v54 = vld [vmem:[#allocation2 + $0x118] sm:$0x11] }
  0xf4   : > { %2439 = vmatmul.mubr.bf16.gmra.mrb[92].mxu0 %v10657_v58 }
  0xf5   : > { %2446 = vmatprep.mubr.bf16.mxu0 %v10658_v13  ;;  %9483 = vmatpush3.bf16.msra.mxu0 %v10584_v62  ;;  %v3226_v62 = vshll.u32 %v12011_v22, 16 }
  0xf6   : > { %9484 = vmatprep.subr.bf16.mxu0 %v10589_v45  ;;  %9701 = vmatpush3.bf16.msra.mxu1 %v10614_v21  ;;  %v3219_v21 = vrot.slane %v3217_v32, 4 }
  0xf7   : > { %9702 = vmatprep.subr.bf16.mxu1 %v10615_v26  ;;  %v3222_v26 = vrot.slane %v3220_v20, 5  ;;  %v3228_v58 = vrot.slane %v3226_v62, 5 }
  0xf8   : > { %3752 = vmatmul.mubr.bf16.gmra.mrb[44].mxu1 %v11693_v8 }
  0xf9   : > { %9485 = vmatpush3.bf16.msra.mxu0 %v10590_v9  ;;  %3759 = vmatprep.mubr.bf16.mxu1 %v11709_v19 }
  0xfa   : > { %9622 = vmatprep.subr.bf16.mxu0 %v10599_v24  ;;  %9703 = vmatpush3.bf16.msra.mxu1 %v10617_v1  ;;  %v8436_v24 = vcombine.high %v1568_v2, %v1569_v57 }
  0xfb   : > { %9704 = vmatprep.subr.bf16.mxu1 %v10619_v56 }
  0xfc   : > { %2447 = vmatmul.mubr.bf16.gmra.mrb[96].mxu0 %v10659_v6  ;;  %v3560_v6 = vshll.u32 %v1569_v57, 16 }
  0xfd   : > { %2454 = vmatprep.mubr.bf16.mxu0 %v10660_v3  ;;  %v3564_v3 = vshrl.u32 %v1569_v57, 16 }
  0xfe   : > { %9705 = vmatpush3.bf16.msra.mxu1 %v10620_v50  ;;  %v3236_v50 = vshll.u32 %v2587_v33, 16 }
  0xff   : > { %9706 = vmatprep.subr.bf16.mxu1 %v10621_v59  ;;  %v3554_v59 = vshll.u32 %v1568_v2, 16 }
 0x100   : > { %3760 = vmatmul.mubr.bf16.gmra.mrb[48].mxu1 %v11739_v16 }
 0x101   : > { %3767 = vmatprep.mubr.bf16.mxu1 %v11742_v30 }
 0x102   : > { %9707 = vmatpush3.bf16.msra.mxu1 %v10622_v18 }
 0x103   : > { %9708 = vmatprep.subr.bf16.mxu1 %v10625_v39 }
 0x104   : > { %2455 = vmatmul.mubr.bf16.gmra.mrb[100].mxu0 %v10661_v4  ;;  %v3238_v4 = vrot.slane %v3236_v50, 5 }
 0x105   : > { %2462 = vmatprep.mubr.bf16.mxu0 %v10662_v29  ;;  %v3556_v29 = vrot.slane %v3554_v59, 5 }
 0x106   : > { %9709 = vmatpush3.bf16.msra.mxu1 %v10626_v36 }
 0x107   : > { %9710 = vmatprep.subr.bf16.mxu1 %v10627_v51 }
 0x108   : > { %3768 = vmatmul.mubr.bf16.gmra.mrb[52].mxu1 %v11787_v10 }
 0x109   : > { %3775 = vmatprep.mubr.bf16.mxu1 %v11795_v44 }
 0x10a   : > { %9711 = vmatpush3.bf16.msra.mxu1 %v10628_v47  ;;  %v3562_v47 = vrot.slane %v3560_v6, 5  ;;  %v3887_v6 = vld [vmem:[#allocation2 + $0x18] sm:$0xee] }
 0x10b   : > { %9712 = vmatprep.subr.bf16.mxu1 %v10629_v27  ;;  %v3566_v27 = vrot.slane %v3564_v3, 4  ;;  %v3889_v3 = vld [vmem:[#allocation2 + $0x28] sm:$0x11] }
 0x10c   : > { %2463 = vmatmul.mubr.bf16.gmra.mrb[104].mxu0 %v11784_v46  ;;  %v3230_v46 = vshrl.u32 %v12011_v22, 16 }
 0x10d   : > { %2470 = vmatprep.mubr.bf16.mxu0 %v11790_v31 }
 0x10e   : > { %9713 = vmatpush3.bf16.msra.mxu1 %v10630_v23  ;;  %v3232_v13 = vrot.slane %v3230_v46, 4 }
 0x10f   : > { %v9182_v42 = vpop.f32.mrb[0].mxu0 }
 0x110   : > { %v9183_v28 = vpop.f32.mrb[1].mxu0  ;;  %3776 = vmatmul.mubr.bf16.gmra.mrb[56].mxu1 %v11843_v0  ;;  %v3233_v5 = vor.u32 %v3232_v13, %v3228_v58 }
 0x111   : > { %v12014_v38 = vadd.f32 %v9183_v28, %v9182_v42  ;;  %v9185_v48 = vpop.f32.mrb[2].mxu0  ;;  %3783 = vmatprep.mubr.bf16.mxu1 %v11848_v55  ;;  %v8435_v28 = vcombine.low %v1568_v2, %v1569_v57 }
 0x112   : > { %v9186_v31 = vpop.f32.mrb[3].mxu0  ;;  %v3234_v36 = vrot.slane %v3233_v5, 4  ;;  %v10601_v5 = vld [vmem:[%s13507_s6 + $0x148] sm:$0xff]  }
 0x113   : > { %v12019_v45 = vadd.f32 %v9186_v31, %v9185_v48  ;;  %v3567_v31 = vor.u32 %v3566_v27, %v3562_v47 }
 0x114   : > { %2471 = vmatmul.mubr.bf16.gmra.mrb[108].mxu0 %v11838_v60  ;;  %v3223_v60 = vor.u32 %v3222_v26, %v3219_v21  ;;  %v3239_v62 = vsel %vm11506_vm2, %v3234_v36, %v3238_v4  ;;  %v3570_v21 = vshll.u32 %v2590_v54, 16  ;;  %v10602_v36 = vld [vmem:[%s13507_s6 + $0x108] sm:$0xff]   ;;  %v10603_v4 = vld [vmem:[%s13507_s6 + $0x150] sm:$0xff]  }
 0x115   : > { %2478 = vmatprep.mubr.bf16.mxu0 %v11805_v15  ;;  %v3551_v15 = vshrl.u32 %v1568_v2, 16  ;;  %v3568_v13 = vrot.slane %v3567_v31, 4 }
 0x116   : > { %v3224_v39 = vrot.slane %v3223_v60, 4  ;;  %v10600_v60 = vld [vmem:[%s13507_s6 + $0x100] sm:$0xff]  }
 0x117   : > { %v9188_v9 = vpop.f32.mrb[4].mxu0  ;;  %v3553_v51 = vrot.slane %v3551_v15, 4 }
 0x118   : > { %v9189_v53 = vpop.f32.mrb[5].mxu0  ;;  %3784 = vmatmul.mubr.bf16.gmra.mrb[60].mxu1 %v11869_v35 }
 0x119   : > { %v12024_v1 = vadd.f32 %v9189_v53, %v9188_v9  ;;  %v9191_v34 = vpop.f32.mrb[6].mxu0  ;;  %3791 = vmatprep.mubr.bf16.mxu1 %v11871_v40  ;;  %v3557_v46 = vor.u32 %v3556_v29, %v3553_v51  ;;  %v3572_v9 = vrot.slane %v3570_v21, 5  ;;  %v3888_v53 = vld [vmem:[#allocation2 + $0x20] sm:$0xff]  ;;  %v8622_v29 = vrot.slane %v3887_v6, 9 }
 0x11a   : > { %v9192_v56 = vpop.f32.mrb[7].mxu0  ;;  %v3962_v50 = vrot.slane %v3888_v53, 5 }
 0x11b   : > { %v12027_v18 = vadd.f32 %v9192_v56, %v9191_v34  ;;  %v3558_v57 = vrot.slane %v3557_v46, 4  ;;  %v3573_v56 = vsel %vm11506_vm2, %v3568_v13, %v3572_v9  ;;  %v3892_v13 = vld [vmem:[#allocation2 + $0x40] sm:$0x11] }
 0x11c   : > { %2479 = vmatmul.mubr.bf16.gmra.mrb[112].mxu0 %v11852_v25  ;;  %v3229_v25 = vsel %vm11506_vm2, %v3224_v39, %v3228_v58 }
 0x11d   : > { %2486 = vmatprep.mubr.bf16.mxu0 %v8436_v24  ;;  %v12041_v2 = vcombine.high %v3229_v25, %v3239_v62  ;;  %v3563_v15 = vsel %vm11506_vm2, %v3558_v57, %v3562_v47  ;;  %v12060_v39 = vcombine.low %v3229_v25, %v3239_v62  ;;  %v3964_v47 = vrot.slane %v3962_v50, 4  ;;  %v3890_v57 = vld [vmem:[#allocation2 + $0x30] sm:$0xee] }
 0x11e   : > { %v8604_v51 = vcombine.high %v3563_v15, %v3573_v56  ;;  %v3963_v62 = vsel %vm12076_vm6, %v8622_v29, %v3962_v50  ;;  %v8603_v9 = vcombine.low %v3563_v15, %v3573_v56  ;;  %v10608_v50 = vld [vmem:[%s13507_s6 + $0x120] sm:$0xff]  }
 0x11f   : > { %v9194_v23 = vpop.f32.mrb[8].mxu0 }
 0x120   : > { %v9195_v42 = vpop.f32.mrb[9].mxu0  ;;  %3792 = vmatmul.mubr.bf16.gmra.mrb[64].mxu1 %v11884_v41 }
 0x121   : > { %v12031_v32 = vadd.f32 %v9195_v42, %v9194_v23  ;;  %v9197_v48 = vpop.f32.mrb[10].mxu0  ;;  %3799 = vmatprep.mubr.bf16.mxu1 %v11896_v17  ;;  %v3891_v23 = vld [vmem:[#allocation2 + $0x38] sm:$0xff] }
 0x122   : > { %v9198_v20 = vpop.f32.mrb[11].mxu0  ;;  %v3969_v31 = vrot.slane %v3891_v23, 5  ;;  %v10610_v23 = vld [vmem:[%s13507_s6 + $0x128] sm:$0xff]  }
 0x123   : > { %v12038_v26 = vadd.f32 %v9198_v20, %v9197_v48  ;;  %v13583_v48 = vmov 0  ;;  %v10605_v20 = vld [vmem:[%s13507_s6 + $0x158] sm:$0xff]  }
 0x124   : > { %2487 = vmatmul.mubr.bf16.gmra.mrb[116].mxu0 %v8435_v28  ;;  %v10604_v28 = vld [vmem:[%s13507_s6 + $0x110] sm:$0xff]   ;;  %v13584_v48 = vsel %vm12076_vm6, 4294967295, %v13583_v48 }
 0x125   : > { %3409 = vmatprep.mubr.bf16.mxu0 %v11580_v7  ;;  %13585 = vst [vmem:[#allocation14_spill] sm:$0xff] %v13584_v48 }
 0x127   : > { %v9200_v33 = vpop.f32.mrb[12].mxu0 }
 0x128   : > { %v9201_v58 = vpop.f32.mrb[13].mxu0  ;;  %3800 = vmatmul.mubr.bf16.gmra.mrb[68].mxu1 %v11908_v52 }
 0x129   : > { %v12044_v24 = vadd.f32 %v9201_v58, %v9200_v33  ;;  %v9203_v34 = vpop.f32.mrb[14].mxu0  ;;  %3807 = vmatprep.mubr.bf16.mxu1 %v12041_v2  ;;  %v10606_v33 = vld [vmem:[%s13507_s6 + $0x118] sm:$0xff]   ;;  %v10607_v58 = vld [vmem:[%s13507_s6 + $0x160] sm:$0xff]  }
 0x12a   : > { %v9204_v7 = vpop.f32.mrb[15].mxu0 }
 0x12b   : > { %v12057_v59 = vadd.f32 %v9204_v7, %v9203_v34  ;;  %v8623_v34 = vrot.slane %v3890_v57, 9  ;;  %v3972_v7 = vrot.slane %v3892_v13, 5  ;;  %v10618_v57 = vld [vmem:[%s13507_s6 + $0x130] sm:$0xff]  }
 0x12c   : > { %3410 = vmatmul.mubr.bf16.vlgmr.msra.gmra.mrb[120].mxu0 %v11592_v49  ;;  %v3965_v49 = vrot.slane %v3889_v3, 5  ;;  %v10609_v3 = vld [vmem:[%s13507_s6 + $0x168] sm:$0xff]  }
 0x12d   : > { %9623 = vmatpush3.bf16.msra.mxu0 %v10600_v60  ;;  %3417 = vmatprep.mubr.bf16.mxu0 %v11654_v37  ;;  %v3971_v60 = vrot.slane %v3969_v31, 4 }
 0x12e   : > { %9624 = vmatprep.subr.bf16.mxu0 %v10601_v5  ;;  %v3966_v46 = vsel %vm12076_vm6, %v3964_v47, %v3965_v49  ;;  %v3893_v47 = vld [vmem:[#allocation2 + $0x48] sm:$0xee]  ;;  %v3895_v49 = vld [vmem:[#allocation2 + $0x58] sm:$0x11] }
 0x12f   : > { %v9206_v27 = vpop.f32.mrb[16].mxu0  ;;  %v12094_v53 = vcombine.high %v3963_v62, %v3966_v46 }
 0x130   : > { %v9207_v54 = vpop.f32.mrb[17].mxu0  ;;  %3808 = vmatmul.mubr.bf16.gmra.mrb[72].mxu1 %v12060_v39 }
 0x131   : > { %v12070_v37 = vadd.f32 %v9207_v54, %v9206_v27  ;;  %v9209_v42 = vpop.f32.mrb[18].mxu0  ;;  %9625 = vmatpush3.bf16.msra.mxu0 %v10602_v36  ;;  %3815 = vmatprep.mubr.bf16.mxu1 %v8604_v51  ;;  %v3970_v36 = vsel %vm12076_vm6, %v8623_v34, %v3969_v31  ;;  %v3973_v51 = vsel %vm12076_vm6, %v3971_v60, %v3972_v7  ;;  %v3896_v7 = vld [vmem:[#allocation2 + $0x60] sm:$0xee] }
 0x132   : > { %v9210_v25 = vpop.f32.mrb[19].mxu0  ;;  %9626 = vmatprep.subr.bf16.mxu0 %v10603_v4  ;;  %v12115_v27 = vcombine.low %v3963_v62, %v3966_v46  ;;  %v12121_v54 = vcombine.high %v3970_v36, %v3973_v51  ;;  %v3897_v62 = vld [vmem:[#allocation2 + $0x68] sm:$0xff] }
 0x133   : > { %v12087_v21 = vadd.f32 %v9210_v25, %v9209_v42  ;;  %v10616_v42 = vld [vmem:[%s13507_s6 + $0x170] sm:$0xff]   ;;  %v3983_v34 = vrot.slane %v3897_v62, 5 }
 0x134   : > { %3418 = vmatmul.mubr.bf16.gmra.mrb[124].mxu0 %v11656_v63  ;;  %v3894_v63 = vld [vmem:[#allocation2 + $0x50] sm:$0xff] }
 0x135   : > { %3425 = vmatprep.mubr.bf16.mxu0 %v11666_v61  ;;  %9627 = vmatpush3.bf16.msra.mxu0 %v10604_v28  ;;  %v3976_v4 = vrot.slane %v3894_v63, 5  ;;  %v8624_v28 = vrot.slane %v3893_v47, 9  ;;  %v12143_v63 = vcombine.low %v3970_v36, %v3973_v51  ;;  %v3900_v36 = vld [vmem:[#allocation2 + $0x80] sm:$0xff] }
 0x136   : > { %9628 = vmatprep.subr.bf16.mxu0 %v10605_v20  ;;  %v3979_v20 = vrot.slane %v3895_v49, 5 }
 0x137   : > { %v9212_v5 = vpop.f32.mrb[20].mxu0  ;;  %v3978_v25 = vrot.slane %v3976_v4, 4 }
 0x138   : > { %v9213_v15 = vpop.f32.mrb[21].mxu0  ;;  %3816 = vmatmul.mubr.bf16.gmra.mrb[76].mxu1 %v8603_v9  ;;  %v10623_v9 = vld [vmem:[%s13507_s6 + $0x178] sm:$0xff]  }
 0x139   : > { %v12099_v61 = vadd.f32 %v9213_v15, %v9212_v5  ;;  %v9215_v56 = vpop.f32.mrb[22].mxu0  ;;  %9629 = vmatpush3.bf16.msra.mxu0 %v10606_v33  ;;  %4584 = vmatprep.mubr.bf16.mxu1 %v12094_v53  ;;  %v3977_v33 = vsel %vm12076_vm6, %v8624_v28, %v3976_v4  ;;  %v3898_v5 = vld [vmem:[#allocation2 + $0x70] sm:$0x11]  ;;  %v10624_v15 = vld [vmem:[%s13507_s6 + $0x138] sm:$0xff]   ;;  %v3990_v28 = vrot.slane %v3900_v36, 5 }
 0x13a   : > { %v9216_v6 = vpop.f32.mrb[23].mxu0  ;;  %9630 = vmatprep.subr.bf16.mxu0 %v10607_v58  ;;  %v3980_v58 = vsel %vm12076_vm6, %v3978_v25, %v3979_v20  ;;  %v3986_v4 = vrot.slane %v3898_v5, 5  ;;  %v3899_v20 = vld [vmem:[#allocation2 + $0x78] sm:$0xee] }
 0x13b   : > { %v12112_v29 = vadd.f32 %v9216_v6, %v9215_v56  ;;  %v12149_v56 = vcombine.high %v3977_v33, %v3980_v58  ;;  %v8625_v6 = vrot.slane %v3896_v7, 9  ;;  %v12165_v62 = vcombine.low %v3977_v33, %v3980_v58 }
 0x13c   : > { %3426 = vmatmul.mubr.bf16.gmra.mrb[128].mxu0 %v11693_v8 }
 0x13d   : > { %3433 = vmatprep.mubr.bf16.mxu0 %v11709_v19  ;;  %9631 = vmatpush3.bf16.msra.mxu0 %v10608_v50  ;;  %v10631_v50 = vld [vmem:[%s13507_s6 + $0x440] sm:$0xff]  }
 0x13e   : > { %9632 = vmatprep.subr.bf16.mxu0 %v10609_v3  ;;  %v3985_v3 = vrot.slane %v3983_v34, 4 }
 0x13f   : > { %v9218_v8 = vpop.f32.mrb[24].mxu0 }
 0x140   : > { %v9219_v46 = vpop.f32.mrb[25].mxu0  ;;  %4585 = vmatmul.mubr.bf16.vlgmr.msra.gmra.mrb[80].mxu1 %v12115_v27 }
 0x141   : > { %v12127_v19 = vadd.f32 %v9219_v46, %v9218_v8  ;;  %v9221_v31 = vpop.f32.mrb[26].mxu0  ;;  %9633 = vmatpush3.bf16.msra.mxu0 %v10610_v23  ;;  %4592 = vmatprep.mubr.bf16.mxu1 %v12121_v54  ;;  %v3984_v23 = vsel %vm12076_vm6, %v8625_v6, %v3983_v34  ;;  %v3901_v8 = vld [vmem:[#allocation2 + $0x88] sm:$0x11]  ;;  %v3903_v34 = vld [vmem:[#allocation2 + $0x98] sm:$0xff]  ;;  %v3902_v6 = vld [vmem:[#allocation2 + $0x90] sm:$0xee] }
 0x142   : > { %v9222_v13 = vpop.f32.mrb[27].mxu0  ;;  %9634 = vmatprep.subr.bf16.mxu0 %v10616_v42  ;;  %v3987_v42 = vsel %vm12076_vm6, %v3985_v3, %v3986_v4  ;;  %v3997_v58 = vrot.slane %v3903_v34, 5  ;;  %v3904_v3 = vld [vmem:[#allocation2 + $0xa0] sm:$0x11]  ;;  %v8627_v36 = vrot.slane %v3902_v6, 9 }
 0x143   : > { %v12140_v60 = vadd.f32 %v9222_v13, %v9221_v31  ;;  %v12168_v46 = vcombine.high %v3984_v23, %v3987_v42  ;;  %v8626_v31 = vrot.slane %v3899_v20, 9  ;;  %v3993_v13 = vrot.slane %v3901_v8, 5 }
 0x144   : > { %3434 = vmatmul.mubr.bf16.gmra.mrb[132].mxu0 %v11739_v16  ;;  %v12181_v4 = vcombine.low %v3984_v23, %v3987_v42  ;;  %v3998_v23 = vsel %vm12076_vm6, %v8627_v36, %v3997_v58 }
 0x145   : > { %3441 = vmatprep.mubr.bf16.mxu0 %v11742_v30  ;;  %9635 = vmatpush3.bf16.msra.mxu0 %v10618_v57  ;;  %v3992_v57 = vrot.slane %v3990_v28, 4  ;;  %v3991_v33 = vsel %vm12076_vm6, %v8626_v31, %v3990_v28  ;;  %v3906_v28 = vld [vmem:[#allocation2 + $0xb0] sm:$0xff] }
 0x146   : > { %9636 = vmatprep.subr.bf16.mxu0 %v10623_v9  ;;  %v4004_v42 = vrot.slane %v3906_v28, 5 }
 0x147   : > { %v9224_v16 = vpop.f32.mrb[28].mxu0 }
 0x148   : > { %v9225_v51 = vpop.f32.mrb[29].mxu0  ;;  %4593 = vmatmul.mubr.bf16.gmra.mrb[84].mxu1 %v12143_v63 }
 0x149   : > { %v12155_v30 = vadd.f32 %v9225_v51, %v9224_v16  ;;  %v9227_v47 = vpop.f32.mrb[30].mxu0  ;;  %9637 = vmatpush3.bf16.msra.mxu0 %v10624_v15  ;;  %4600 = vmatprep.mubr.bf16.mxu1 %v12149_v56  ;;  %v3999_v51 = vrot.slane %v3997_v58, 4 }
 0x14a   : > { %v9228_v49 = vpop.f32.mrb[31].mxu0  ;;  %9774 = vmatprep.subr.bf16.mxu0 %v10631_v50 }
 0x14b   : > { %v12162_v25 = vadd.f32 %v9228_v49, %v9227_v47  ;;  %v4000_v47 = vrot.slane %v3904_v3, 5  ;;  %v3909_v3 = vld [vmem:[#allocation2 + $0xc8] sm:$0xff] }
 0x14c   : > { %3442 = vmatmul.mubr.bf16.gmra.mrb[136].mxu0 %v11787_v10 }
 0x14d   : > { %3449 = vmatprep.mubr.bf16.mxu0 %v11795_v44  ;;  %v3994_v44 = vsel %vm12076_vm6, %v3992_v57, %v3993_v13  ;;  %v3905_v13 = vld [vmem:[#allocation2 + $0xa8] sm:$0xee] }
 0x14e   : > { %v12184_v16 = vcombine.high %v3991_v33, %v3994_v44  ;;  %v12197_v34 = vcombine.low %v3991_v33, %v3994_v44  ;;  %v4011_v44 = vrot.slane %v3909_v3, 5 }
 0x14f   : > { %v9230_v9 = vpop.f32.mrb[32].mxu0 }
 0x150   : > { %v9231_v7 = vpop.f32.mrb[33].mxu0  ;;  %4601 = vmatmul.mubr.bf16.gmra.mrb[88].mxu1 %v12165_v62 }
 0x151   : > { %v12171_v5 = vadd.f32 %v9231_v7, %v9230_v9  ;;  %v9233_v15 = vpop.f32.mrb[34].mxu0  ;;  %4608 = vmatprep.mubr.bf16.mxu1 %v12168_v46  ;;  %v3907_v9 = vld [vmem:[#allocation2 + $0xb8] sm:$0x11] }
 0x152   : > { %v9234_v10 = vpop.f32.mrb[35].mxu0  ;;  %v4007_v6 = vrot.slane %v3907_v9, 5 }
 0x153   : > { %v12178_v50 = vadd.f32 %v9234_v10, %v9233_v15  ;;  %v8628_v15 = vrot.slane %v3905_v13, 9  ;;  %v4006_v10 = vrot.slane %v4004_v42, 4 }
 0x154   : > { %3450 = vmatmul.mubr.bf16.gmra.mrb[140].mxu0 %v11843_v0 }
 0x155   : > { %3457 = vmatprep.mubr.bf16.mxu0 %v11848_v55  ;;  %v4001_v55 = vsel %vm12076_vm6, %v3999_v51, %v4000_v47  ;;  %v4005_v33 = vsel %vm12076_vm6, %v8628_v15, %v4004_v42 }
 0x156   : > { %v12200_v7 = vcombine.high %v3998_v23, %v4001_v55  ;;  %v12212_v13 = vcombine.low %v3998_v23, %v4001_v55 }
 0x157   : > { %v9236_v49 = vpop.f32.mrb[36].mxu0 }
 0x158   : > { %v9237_v20 = vpop.f32.mrb[37].mxu0  ;;  %4609 = vmatmul.mubr.bf16.gmra.mrb[92].mxu1 %v12181_v4 }
 0x159   : > { %v12187_v8 = vadd.f32 %v9237_v20, %v9236_v49  ;;  %v9239_v31 = vpop.f32.mrb[38].mxu0  ;;  %4616 = vmatprep.mubr.bf16.mxu1 %v12184_v16 }
 0x15a   : > { %v9240_v0 = vpop.f32.mrb[39].mxu0 }
 0x15b   : > { %v12194_v57 = vadd.f32 %v9240_v0, %v9239_v31  ;;  %v3908_v31 = vld [vmem:[#allocation2 + $0xc0] sm:$0xee]  ;;  %v3910_v0 = vld [vmem:[#allocation2 + $0xd0] sm:$0x11] }
 0x15c   : > { %3458 = vmatmul.mubr.bf16.gmra.mrb[144].mxu0 %v11869_v35  ;;  %v3885_v35 = vld [vmem:[#allocation2 + $0x8] sm:$0xff] }
 0x15d   : > { %3465 = vmatprep.mubr.bf16.mxu0 %v11871_v40  ;;  %v4008_v40 = vsel %vm12076_vm6, %v4006_v10, %v4007_v6  ;;  %v3955_v42 = vrot.slane %v3885_v35, 5  ;;  %v3884_v10 = vld [vmem:[#allocation2] sm:$0xee]  ;;  %v8629_v6 = vrot.slane %v3908_v31, 9 }
 0x15e   : > { %v12218_v15 = vcombine.high %v4005_v33, %v4008_v40  ;;  %v8621_v55 = vrot.slane %v3884_v10, 9  ;;  %v12230_v10 = vcombine.low %v4005_v33, %v4008_v40 }
 0x15f   : > { %v9258_v58 = vpop.f32.mrb[40].mxu0  ;;  %v4012_v35 = vsel %vm12076_vm6, %v8629_v6, %v4011_v44 }
 0x160   : > { %v9259_v36 = vpop.f32.mrb[41].mxu0  ;;  %4617 = vmatmul.mubr.bf16.gmra.mrb[96].mxu1 %v12197_v34 }
 0x161   : > { %v9260_v51 = vadd.f32 %v9259_v36, %v9258_v58  ;;  %v9261_v47 = vpop.f32.mrb[42].mxu0  ;;  %4624 = vmatprep.mubr.bf16.mxu1 %v12200_v7  ;;  %v4013_v58 = vrot.slane %v4011_v44, 4  ;;  %v3886_v36 = vld [vmem:[#allocation2 + $0x10] sm:$0x11]  ;;  %v3956_v44 = vsel %vm12076_vm6, %v8621_v55, %v3955_v42 }
 0x162   : > { %v9262_v49 = vpop.f32.mrb[43].mxu0 }
 0x163   : > { %v12209_v28 = vadd.f32 %v9260_v51, %v12014_v38  ;;  %v9263_v20 = vadd.f32 %v9262_v49, %v9261_v47  ;;  %v4014_v38 = vrot.slane %v3910_v0, 5  ;;  %v3912_v51 = vld [vmem:[#allocation2 + $0xe0] sm:$0xff]  ;;  %v3958_v49 = vrot.slane %v3886_v36, 5 }
 0x164   : > { %3466 = vmatmul.mubr.bf16.gmra.mrb[148].mxu0 %v11884_v41  ;;  %v4018_v31 = vrot.slane %v3912_v51, 5 }
 0x165   : > { %v12215_v9 = vadd.f32 %v9263_v20, %v12019_v45  ;;  %3473 = vmatprep.mubr.bf16.mxu0 %v11896_v17  ;;  %v3957_v45 = vrot.slane %v3955_v42, 4  ;;  %v4015_v20 = vsel %vm12076_vm6, %v4013_v58, %v4014_v38  ;;  %v8630_v58 = vrot.slane %v3911_v43, 9 }
 0x166   : > { %v12238_v6 = vcombine.high %v4012_v35, %v4015_v20  ;;  %v4020_v38 = vrot.slane %v4018_v31, 4  ;;  %v4410_v43 = vrot.slane %v12011_v22, 5 }
 0x167   : > { %v9264_v3 = vpop.f32.mrb[44].mxu0  ;;  %v4019_v40 = vsel %vm12076_vm6, %v8630_v58, %v4018_v31 }
 0x168   : > { %v9265_v47 = vpop.f32.mrb[45].mxu0  ;;  %4625 = vmatmul.mubr.bf16.gmra.mrb[100].mxu1 %v12212_v13 }
 0x169   : > { %v9266_v41 = vadd.f32 %v9265_v47, %v9264_v3  ;;  %v9267_v23 = vpop.f32.mrb[46].mxu0  ;;  %4632 = vmatprep.mubr.bf16.mxu1 %v12218_v15  ;;  %v3913_v3 = vld [vmem:[#allocation2 + $0xe8] sm:$0x11] }
 0x16a   : > { %v9268_v17 = vpop.f32.mrb[47].mxu0  ;;  %v4021_v36 = vrot.slane %v3913_v3, 5  ;;  %v12253_v3 = vcombine.low %v4012_v35, %v4015_v20  ;;  %v10632_v20 = vld [vmem:[%s13507_s6 + $0x400] sm:$0xff]  }
 0x16b   : > { %v12227_v0 = vadd.f32 %v9266_v41, %v12024_v1  ;;  %v9269_v14 = vadd.f32 %v9268_v17, %v9267_v23  ;;  %v3959_v1 = vsel %vm12076_vm6, %v3957_v45, %v3958_v49  ;;  %v3914_v45 = vld [vmem:[#allocation2 + $0xf0] sm:$0xee]  ;;  %v3916_v17 = vld [vmem:[#allocation2 + $0x100] sm:$0x11] }
 0x16c   : > { %3474 = vmatmul.mubr.bf16.gmra.mrb[152].mxu0 %v11908_v52  ;;  %v4022_v42 = vsel %vm12076_vm6, %v4020_v38, %v4021_v36  ;;  %v8699_v38 = vrot.slane %v3914_v45, 9  ;;  %v4412_v36 = vrot.slane %v4410_v43, 4 }
 0x16d   : > { %v12233_v47 = vadd.f32 %v9269_v14, %v12027_v18  ;;  %3481 = vmatprep.mubr.bf16.mxu0 %v12041_v2  ;;  %v8664_v18 = vcombine.high %v3956_v44, %v3959_v1  ;;  %v12260_v22 = vcombine.high %v4019_v40, %v4022_v42 }
 0x16f   : > { %v9270_v51 = vpop.f32.mrb[48].mxu0 }
 0x170   : > { %v9271_v52 = vpop.f32.mrb[49].mxu0  ;;  %4633 = vmatmul.mubr.bf16.gmra.mrb[104].mxu1 %v12230_v10 }
 0x171   : > { %v9272_v33 = vadd.f32 %v9271_v52, %v9270_v51  ;;  %v9273_v14 = vpop.f32.mrb[50].mxu0  ;;  %4640 = vmatprep.mubr.bf16.mxu1 %v12238_v6  ;;  %v4413_v52 = vrot.slane %v3916_v17, 5 }
 0x172   : > { %v9274_v2 = vpop.f32.mrb[51].mxu0 }
 0x173   : > { %v12250_v41 = vadd.f32 %v9272_v33, %v12031_v32  ;;  %v9275_v23 = vadd.f32 %v9274_v2, %v9273_v14  ;;  %v9410_v55 = vpop.f32.mrb[0].mxu1  ;;  %v8663_v2 = vcombine.low %v3956_v44, %v3959_v1  ;;  %v4414_v44 = vsel %vm12076_vm6, %v4412_v36, %v4413_v52 }
 0x174   : > { %3482 = vmatmul.mubr.bf16.gmra.mrb[156].mxu0 %v12060_v39  ;;  %v9411_v49 = vpop.f32.mrb[1].mxu1 }
 0x175   : > { %v12256_v51 = vadd.f32 %v9275_v23, %v12038_v26  ;;  %4264 = vmatprep.mubr.bf16.mxu0 %v8664_v18  ;;  %v12258_v31 = vadd.f32 %v9411_v49, %v9410_v55  ;;  %v9413_v58 = vpop.f32.mrb[2].mxu1  ;;  %v10633_v23 = vld [vmem:[%s13507_s6 + $0x448] sm:$0xff]   ;;  %v4411_v55 = vsel %vm12076_vm6, %v8699_v38, %v4410_v43 }
 0x176   : > { %v9414_v32 = vpop.f32.mrb[3].mxu1  ;;  %v10634_v43 = vld [vmem:[%s13507_s6 + $0x408] sm:$0xff]   ;;  %v12290_v36 = vcombine.high %v4411_v55, %v4414_v44 }
 0x177   : > { %v9276_v33 = vpop.f32.mrb[52].mxu0  ;;  %v12262_v14 = vadd.f32 %v9414_v32, %v9413_v58  ;;  %v12279_v58 = vcombine.low %v4019_v40, %v4022_v42  ;;  %v10635_v40 = vld [vmem:[%s13507_s6 + $0x450] sm:$0xff]  }
 0x178   : > { %v9277_v39 = vpop.f32.mrb[53].mxu0  ;;  %4641 = vmatmul.mubr.bf16.gmra.mrb[108].mxu1 %v12253_v3  ;;  %13586 = vst [vmem:[#allocation16_spill] sm:$0xff] %v12290_v36 }
 0x179   : > { %v9278_v35 = vadd.f32 %v9277_v39, %v9276_v33  ;;  %v9279_v26 = vpop.f32.mrb[54].mxu0  ;;  %4648 = vmatprep.mubr.bf16.mxu1 %v12260_v22 }
 0x17a   : > { %v9280_v18 = vpop.f32.mrb[55].mxu0 }
 0x17b   : > { %v12277_v1 = vadd.f32 %v9278_v35, %v12044_v24  ;;  %v9281_v45 = vadd.f32 %v9280_v18, %v9279_v26  ;;  %v9416_v17 = vpop.f32.mrb[4].mxu1  ;;  %v10637_v26 = vld [vmem:[%s13507_s6 + $0x458] sm:$0xff]  }
 0x17c   : > { %4265 = vmatmul.mubr.bf16.vlgmr.msra.gmra.mrb[160].mxu0 %v8663_v2  ;;  %v9417_v49 = vpop.f32.mrb[5].mxu1  ;;  %v10636_v2 = vld [vmem:[%s13507_s6 + $0x410] sm:$0xff]  }
 0x17d   : > { %v12282_v32 = vadd.f32 %v9281_v45, %v12057_v59  ;;  %9775 = vmatpush3.bf16.msra.mxu0 %v10632_v20  ;;  %4272 = vmatprep.mubr.bf16.mxu0 %v12094_v53  ;;  %v12288_v38 = vadd.f32 %v9417_v49, %v9416_v17  ;;  %v9419_v24 = vpop.f32.mrb[6].mxu1  ;;  %v12309_v17 = vcombine.low %v4411_v55, %v4414_v44 }
 0x17e   : > { %9776 = vmatprep.subr.bf16.mxu0 %v10633_v23  ;;  %v9420_v42 = vpop.f32.mrb[7].mxu1 }
 0x17f   : > { %v9282_v59 = vpop.f32.mrb[56].mxu0  ;;  %v12295_v52 = vadd.f32 %v9420_v42, %v9419_v24  ;;  %13587 = vst [vmem:[#allocation17_spill] sm:$0xff] %v12309_v17 }
 0x180   : > { %v9283_v33 = vpop.f32.mrb[57].mxu0  ;;  %4649 = vmatmul.mubr.bf16.gmra.mrb[112].mxu1 %v12279_v58 }
 0x181   : > { %v9284_v53 = vadd.f32 %v9283_v33, %v9282_v59  ;;  %v9285_v39 = vpop.f32.mrb[58].mxu0  ;;  %9777 = vmatpush3.bf16.msra.mxu0 %v10634_v43  ;;  %4656 = vmatprep.mubr.bf16.mxu1 %v12290_v36  ;;  %v10638_v43 = vld [vmem:[%s13507_s6 + $0x418] sm:$0xff]   ;;  %v10640_v33 = vld [vmem:[%s13507_s6 + $0x420] sm:$0xff]  }
 0x182   : > { %v9286_v35 = vpop.f32.mrb[59].mxu0  ;;  %9778 = vmatprep.subr.bf16.mxu0 %v10635_v40 }
 0x183   : > { %v12306_v20 = vadd.f32 %v9284_v53, %v12070_v37  ;;  %v9287_v18 = vadd.f32 %v9286_v35, %v9285_v39  ;;  %v9422_v23 = vpop.f32.mrb[8].mxu1  ;;  %v10641_v39 = vld [vmem:[%s13507_s6 + $0x468] sm:$0xff]  }
 0x184   : > { %4273 = vmatmul.mubr.bf16.gmra.mrb[164].mxu0 %v12115_v27  ;;  %v9423_v45 = vpop.f32.mrb[9].mxu1  ;;  %v10639_v27 = vld [vmem:[%s13507_s6 + $0x460] sm:$0xff]  }
 0x185   : > { %v12312_v49 = vadd.f32 %v9287_v18, %v12087_v21  ;;  %4280 = vmatprep.mubr.bf16.mxu0 %v12121_v54  ;;  %9779 = vmatpush3.bf16.msra.mxu0 %v10636_v2  ;;  %v12318_v24 = vadd.f32 %v9423_v45, %v9422_v23  ;;  %v9425_v37 = vpop.f32.mrb[10].mxu1  ;;  %v10642_v45 = vld [vmem:[%s13507_s6 + $0x428] sm:$0xff]  }
 0x186   : > { %9780 = vmatprep.subr.bf16.mxu0 %v10637_v26  ;;  %v9426_v55 = vpop.f32.mrb[11].mxu1 }
 0x187   : > { %v9288_v44 = vpop.f32.mrb[60].mxu0  ;;  %v12323_v40 = vadd.f32 %v9426_v55, %v9425_v37 }
 0x188   : > { %v9289_v21 = vpop.f32.mrb[61].mxu0  ;;  %4657 = vmatmul.mubr.bf16.gmra.mrb[116].mxu1 %v12309_v17 }
 0x189   : > { %v9290_v42 = vadd.f32 %v9289_v21, %v9288_v44  ;;  %v9291_v59 = vpop.f32.mrb[62].mxu0  ;;  %9781 = vmatpush3.bf16.msra.mxu0 %v10638_v43 }
 0x18a   : > { %v9292_v53 = vpop.f32.mrb[63].mxu0  ;;  %9782 = vmatprep.subr.bf16.mxu0 %v10639_v27 }
 0x18b   : > { %v12333_v2 = vadd.f32 %v9290_v42, %v12099_v61  ;;  %v9293_v35 = vadd.f32 %v9292_v53, %v9291_v59  ;;  %v9428_v26 = vpop.f32.mrb[12].mxu1  ;;  %v10643_v61 = vld [vmem:[%s13507_s6 + $0x470] sm:$0xff]   ;;  %v10645_v53 = vld [vmem:[%s13507_s6 + $0x478] sm:$0xff]  }
 0x18c   : > { %4281 = vmatmul.mubr.bf16.gmra.mrb[168].mxu0 %v12143_v63  ;;  %v9429_v18 = vpop.f32.mrb[13].mxu1  ;;  %v10644_v59 = vld [vmem:[%s13507_s6 + $0x430] sm:$0xff]  }
 0x18d   : > { %v12337_v23 = vadd.f32 %v9293_v35, %v12112_v29  ;;  %4288 = vmatprep.mubr.bf16.mxu0 %v12149_v56  ;;  %9783 = vmatpush3.bf16.msra.mxu0 %v10640_v33  ;;  %v12343_v43 = vadd.f32 %v9429_v18, %v9428_v26  ;;  %v9431_v37 = vpop.f32.mrb[14].mxu1 }
 0x18e   : > { %9784 = vmatprep.subr.bf16.mxu0 %v10641_v39  ;;  %v9432_v27 = vpop.f32.mrb[15].mxu1 }
 0x18f   : > { %v9294_v55 = vpop.f32.mrb[64].mxu0  ;;  %v12348_v44 = vadd.f32 %v9432_v27, %v9431_v37  ;;  %v10646_v37 = vld [vmem:[%s13507_s6 + $0x438] sm:$0xff]  }
 0x190   : > { %v9295_v29 = vpop.f32.mrb[65].mxu0 }
 0x191   : > { %v9296_v21 = vadd.f32 %v9295_v29, %v9294_v55  ;;  %v9297_v42 = vpop.f32.mrb[66].mxu0  ;;  %9785 = vmatpush3.bf16.msra.mxu0 %v10642_v45 }
 0x192   : > { %v9298_v33 = vpop.f32.mrb[67].mxu0  ;;  %9786 = vmatprep.subr.bf16.mxu0 %v10643_v61 }
 0x193   : > { %v12357_v39 = vadd.f32 %v9296_v21, %v12127_v19  ;;  %v9299_v35 = vadd.f32 %v9298_v33, %v9297_v42  ;;  %v9434_v26 = vpop.f32.mrb[16].mxu1 }
 0x194   : > { %4289 = vmatmul.mubr.bf16.gmra.mrb[172].mxu0 %v12165_v62  ;;  %v9435_v18 = vpop.f32.mrb[17].mxu1 }
 0x195   : > { %v12361_v45 = vadd.f32 %v9299_v35, %v12140_v60  ;;  %4296 = vmatprep.mubr.bf16.mxu0 %v12168_v46  ;;  %9787 = vmatpush3.bf16.msra.mxu0 %v10644_v59  ;;  %v12367_v61 = vadd.f32 %v9435_v18, %v9434_v26  ;;  %v9437_v27 = vpop.f32.mrb[18].mxu1 }
 0x196   : > { %9788 = vmatprep.subr.bf16.mxu0 %v10645_v53  ;;  %v9438_v19 = vpop.f32.mrb[19].mxu1 }
 0x197   : > { %v9300_v55 = vpop.f32.mrb[68].mxu0  ;;  %v12369_v29 = vadd.f32 %v9438_v19, %v9437_v27 }
 0x198   : > { %v9301_v21 = vpop.f32.mrb[69].mxu0 }
 0x199   : > { %v9302_v42 = vadd.f32 %v9301_v21, %v9300_v55  ;;  %v9303_v33 = vpop.f32.mrb[70].mxu0  ;;  %9789 = vmatpush3.bf16.msra.mxu0 %v10646_v37 }
 0x19a   : > { %v9304_v60 = vpop.f32.mrb[71].mxu0 }
 0x19b   : > { %v12372_v35 = vadd.f32 %v9302_v42, %v12155_v30  ;;  %v9305_v59 = vadd.f32 %v9304_v60, %v9303_v33  ;;  %v9440_v12 = vpop.f32.mrb[20].mxu1 }
 0x19c   : > { %4297 = vmatmul.mubr.bf16.gmra.mrb[176].mxu0 %v12181_v4  ;;  %v9441_v26 = vpop.f32.mrb[21].mxu1 }
 0x19d   : > { %v12376_v18 = vadd.f32 %v9305_v59, %v12162_v25  ;;  %4304 = vmatprep.mubr.bf16.mxu0 %v12184_v16  ;;  %v12379_v53 = vadd.f32 %v9441_v26, %v9440_v12  ;;  %v9443_v27 = vpop.f32.mrb[22].mxu1 }
 0x19e   : > { %v9444_v19 = vpop.f32.mrb[23].mxu1 }
 0x19f   : > { %v9306_v55 = vpop.f32.mrb[72].mxu0  ;;  %v12381_v37 = vadd.f32 %v9444_v19, %v9443_v27 }
 0x1a0   : > { %v9307_v21 = vpop.f32.mrb[73].mxu0 }
 0x1a1   : > { %v9308_v30 = vadd.f32 %v9307_v21, %v9306_v55  ;;  %v9309_v42 = vpop.f32.mrb[74].mxu0 }
 0x1a2   : > { %v9310_v33 = vpop.f32.mrb[75].mxu0 }
 0x1a3   : > { %v12384_v60 = vadd.f32 %v9308_v30, %v12171_v5  ;;  %v9311_v11 = vadd.f32 %v9310_v33, %v9309_v42  ;;  %v9446_v17 = vpop.f32.mrb[24].mxu1 }
 0x1a4   : > { %4305 = vmatmul.mubr.bf16.gmra.mrb[180].mxu0 %v12197_v34  ;;  %v9447_v25 = vpop.f32.mrb[25].mxu1 }
 0x1a5   : > { %v12388_v12 = vadd.f32 %v9311_v11, %v12178_v50  ;;  %4312 = vmatprep.mubr.bf16.mxu0 %v12200_v7  ;;  %v12391_v59 = vadd.f32 %v9447_v25, %v9446_v17  ;;  %v9449_v26 = vpop.f32.mrb[26].mxu1 }
 0x1a6   : > { %v9450_v27 = vpop.f32.mrb[27].mxu1 }
 0x1a7   : > { %13588 = vst [vmem:[#allocation10_spill] sm:$0xff] %v12388_v12  ;;  %v9312_v19 = vpop.f32.mrb[76].mxu0  ;;  %v12393_v55 = vadd.f32 %v9450_v27, %v9449_v26 }
 0x1a8   : > { %v9313_v21 = vpop.f32.mrb[77].mxu0 }
 0x1a9   : > { %v9314_v5 = vadd.f32 %v9313_v21, %v9312_v19  ;;  %v9315_v30 = vpop.f32.mrb[78].mxu0 }
 0x1aa   : > { %v9316_v42 = vpop.f32.mrb[79].mxu0 }
 0x1ab   : > { %v12396_v33 = vadd.f32 %v9314_v5, %v12187_v8  ;;  %v9317_v48 = vadd.f32 %v9316_v42, %v9315_v30  ;;  %v9452_v36 = vpop.f32.mrb[28].mxu1 }
 0x1ac   : > { %4313 = vmatmul.mubr.bf16.gmra.mrb[184].mxu0 %v12212_v13  ;;  %v9453_v11 = vpop.f32.mrb[29].mxu1 }
 0x1ad   : > { %13589 = vst [vmem:[#allocation18_spill] sm:$0xff] %v12396_v33  ;;  %v12400_v50 = vadd.f32 %v9317_v48, %v12194_v57  ;;  %4320 = vmatprep.mubr.bf16.mxu0 %v12218_v15  ;;  %v12403_v17 = vadd.f32 %v9453_v11, %v9452_v36  ;;  %v9455_v25 = vpop.f32.mrb[30].mxu1 }
 0x1ae   : > { %v9456_v26 = vpop.f32.mrb[31].mxu1 }
 0x1af   : > { %13590 = vst [vmem:[#allocation15_spill] sm:$0xff] %v12400_v50  ;;  %v9334_v27 = vpop.f32.mrb[80].mxu0  ;;  %v12405_v19 = vadd.f32 %v9456_v26, %v9455_v25 }
 0x1b0   : > { %v9335_v21 = vpop.f32.mrb[81].mxu0 }
 0x1b1   : > { %v9336_v8 = vadd.f32 %v9335_v21, %v9334_v27  ;;  %v9337_v5 = vpop.f32.mrb[82].mxu0 }
 0x1b2   : > { %v9338_v30 = vpop.f32.mrb[83].mxu0 }
 0x1b3   : > { %v2515_v42 = vadd.f32 %v9336_v8, %v12209_v28  ;;  %v9339_v33 = vadd.f32 %v9338_v30, %v9337_v5  ;;  %v9458_v12 = vpop.f32.mrb[32].mxu1 }
 0x1b4   : > { %4321 = vmatmul.mubr.bf16.gmra.mrb[188].mxu0 %v12230_v10  ;;  %v9459_v48 = vpop.f32.mrb[33].mxu1 }
 0x1b5   : > { %v2516_v57 = vadd.f32 %v9339_v33, %v12215_v9  ;;  %v12411_v36 = vadd.f32 %v12258_v31, %v2515_v42  ;;  %4328 = vmatprep.mubr.bf16.mxu0 %v12238_v6  ;;  %v12414_v11 = vadd.f32 %v9459_v48, %v9458_v12  ;;  %v9461_v25 = vpop.f32.mrb[34].mxu1 }
 0x1b6   : > { %v9462_v26 = vpop.f32.mrb[35].mxu1 }
 0x1b7   : > { %v12417_v27 = vadd.f32 %v12262_v14, %v2516_v57  ;;  %v9340_v28 = vpop.f32.mrb[84].mxu0  ;;  %v12419_v21 = vadd.f32 %v9462_v26, %v9461_v25 }
 0x1b8   : > { %v9341_v8 = vpop.f32.mrb[85].mxu0 }
 0x1b9   : > { %v9342_v5 = vadd.f32 %v9341_v8, %v9340_v28  ;;  %v9343_v30 = vpop.f32.mrb[86].mxu0 }
 0x1ba   : > { %v9344_v50 = vpop.f32.mrb[87].mxu0 }
 0x1bb   : > { %v2517_v9 = vadd.f32 %v9342_v5, %v12227_v0  ;;  %v9345_v31 = vadd.f32 %v9344_v50, %v9343_v30  ;;  %v9464_v33 = vpop.f32.mrb[36].mxu1 }
 0x1bc   : > { %4329 = vmatmul.mubr.bf16.gmra.mrb[192].mxu0 %v12253_v3  ;;  %v9465_v12 = vpop.f32.mrb[37].mxu1 }
 0x1bd   : > { %v2518_v42 = vadd.f32 %v9345_v31, %v12233_v47  ;;  %v12425_v48 = vadd.f32 %v12288_v38, %v2517_v9  ;;  %4336 = vmatprep.mubr.bf16.mxu0 %v12260_v22  ;;  %v12428_v14 = vadd.f32 %v9465_v12, %v9464_v33  ;;  %v9467_v57 = vpop.f32.mrb[38].mxu1 }
 0x1be   : > { %v9468_v25 = vpop.f32.mrb[39].mxu1 }
 0x1bf   : > { %v12431_v26 = vadd.f32 %v12295_v52, %v2518_v42  ;;  %v9346_v0 = vpop.f32.mrb[88].mxu0  ;;  %v12433_v50 = vadd.f32 %v9468_v25, %v9467_v57 }
 0x1c0   : > { %v9347_v28 = vpop.f32.mrb[89].mxu0 }
 0x1c1   : > { %v9348_v8 = vadd.f32 %v9347_v28, %v9346_v0  ;;  %v9349_v5 = vpop.f32.mrb[90].mxu0 }
 0x1c2   : > { %v9350_v30 = vpop.f32.mrb[91].mxu0 }
 0x1c3   : > { %v2519_v47 = vadd.f32 %v9348_v8, %v12250_v41  ;;  %v9351_v38 = vadd.f32 %v9350_v30, %v9349_v5  ;;  %v9562_v9 = vpop.f32.mrb[40].mxu1 }
 0x1c4   : > { %4337 = vmatmul.mubr.bf16.gmra.mrb[196].mxu0 %v12279_v58  ;;  %v9563_v31 = vpop.f32.mrb[41].mxu1 }
 0x1c5   : > { %v2520_v33 = vadd.f32 %v9351_v38, %v12256_v51  ;;  %v12439_v12 = vadd.f32 %v12318_v24, %v2519_v47  ;;  %4904 = vmatprep.mubr.bf16.mxu0 %v12121_v54  ;;  %v12442_v52 = vadd.f32 %v9563_v31, %v9562_v9  ;;  %v9565_v42 = vpop.f32.mrb[42].mxu1 }
 0x1c6   : > { %v9566_v57 = vpop.f32.mrb[43].mxu1 }
 0x1c7   : > { %v12445_v25 = vadd.f32 %v12323_v40, %v2520_v33  ;;  %v9352_v41 = vpop.f32.mrb[92].mxu0  ;;  %v12447_v0 = vadd.f32 %v9566_v57, %v9565_v42 }
 0x1c8   : > { %v9353_v28 = vpop.f32.mrb[93].mxu0 }
 0x1c9   : > { %v9354_v8 = vadd.f32 %v9353_v28, %v9352_v41  ;;  %v9355_v5 = vpop.f32.mrb[94].mxu0 }
 0x1ca   : > { %v9356_v30 = vpop.f32.mrb[95].mxu0 }
 0x1cb   : > { %v2521_v51 = vadd.f32 %v9354_v8, %v12277_v1  ;;  %v9357_v24 = vadd.f32 %v9356_v30, %v9355_v5  ;;  %v9568_v47 = vpop.f32.mrb[44].mxu1 }
 0x1cc   : > { %4905 = vmatmul.mubr.bf16.vlgmr.msra.gmra.mrb[200].mxu0 %v12143_v63  ;;  %v9569_v54 = vpop.f32.mrb[45].mxu1 }
 0x1cd   : > { %v2522_v38 = vadd.f32 %v9357_v24, %v12282_v32  ;;  %v12453_v9 = vadd.f32 %v12343_v43, %v2521_v51  ;;  %4912 = vmatprep.mubr.bf16.mxu0 %v12149_v56  ;;  %v12456_v40 = vadd.f32 %v9569_v54, %v9568_v47  ;;  %v9571_v31 = vpop.f32.mrb[46].mxu1 }
 0x1ce   : > { %v9572_v33 = vpop.f32.mrb[47].mxu1 }
 0x1cf   : > { %v12459_v42 = vadd.f32 %v12348_v44, %v2522_v38  ;;  %v9358_v1 = vpop.f32.mrb[96].mxu0  ;;  %v12461_v57 = vadd.f32 %v9572_v33, %v9571_v31 }
 0x1d0   : > { %v9359_v41 = vpop.f32.mrb[97].mxu0 }
 0x1d1   : > { %v9360_v63 = vadd.f32 %v9359_v41, %v9358_v1  ;;  %v9361_v28 = vpop.f32.mrb[98].mxu0 }
 0x1d2   : > { %v9362_v8 = vpop.f32.mrb[99].mxu0 }
 0x1d3   : > { %v2523_v32 = vadd.f32 %v9360_v63, %v12306_v20  ;;  %v9363_v43 = vadd.f32 %v9362_v8, %v9361_v28  ;;  %v9574_v5 = vpop.f32.mrb[48].mxu1 }
 0x1d4   : > { %4913 = vmatmul.mubr.bf16.gmra.mrb[204].mxu0 %v12165_v62  ;;  %v9575_v56 = vpop.f32.mrb[49].mxu1 }
 0x1d5   : > { %v2524_v30 = vadd.f32 %v9363_v43, %v12312_v49  ;;  %v12467_v51 = vadd.f32 %v12367_v61, %v2523_v32  ;;  %4920 = vmatprep.mubr.bf16.mxu0 %v12168_v46  ;;  %v12470_v44 = vadd.f32 %v9575_v56, %v9574_v5  ;;  %v9577_v24 = vpop.f32.mrb[50].mxu1 }
 0x1d6   : > { %v9578_v47 = vpop.f32.mrb[51].mxu1 }
 0x1d7   : > { %v12473_v54 = vadd.f32 %v12369_v29, %v2524_v30  ;;  %v9364_v20 = vpop.f32.mrb[100].mxu0  ;;  %v12475_v38 = vadd.f32 %v9578_v47, %v9577_v24 }
 0x1d8   : > { %v9365_v31 = vpop.f32.mrb[101].mxu0 }
 0x1d9   : > { %v9366_v62 = vadd.f32 %v9365_v31, %v9364_v20  ;;  %v9367_v33 = vpop.f32.mrb[102].mxu0 }
 0x1da   : > { %v9368_v1 = vpop.f32.mrb[103].mxu0 }
 0x1db   : > { %v2525_v49 = vadd.f32 %v9366_v62, %v12333_v2  ;;  %v9369_v61 = vadd.f32 %v9368_v1, %v9367_v33  ;;  %v9580_v41 = vpop.f32.mrb[52].mxu1 }
 0x1dc   : > { %4921 = vmatmul.mubr.bf16.gmra.mrb[208].mxu0 %v12181_v4  ;;  %v9581_v46 = vpop.f32.mrb[53].mxu1 }
 0x1dd   : > { %v2526_v63 = vadd.f32 %v9369_v61, %v12337_v23  ;;  %v12481_v28 = vadd.f32 %v12379_v53, %v2525_v49  ;;  %4928 = vmatprep.mubr.bf16.mxu0 %v12184_v16  ;;  %v12484_v29 = vadd.f32 %v9581_v46, %v9580_v41  ;;  %v9583_v8 = vpop.f32.mrb[54].mxu1 }
 0x1de   : > { %v9584_v32 = vpop.f32.mrb[55].mxu1 }
 0x1df   : > { %v12487_v43 = vadd.f32 %v12381_v37, %v2526_v63  ;;  %v9370_v2 = vpop.f32.mrb[104].mxu0  ;;  %v12489_v5 = vadd.f32 %v9584_v32, %v9583_v8 }
 0x1e0   : > { %v9371_v56 = vpop.f32.mrb[105].mxu0 }
 0x1e1   : > { %v9372_v4 = vadd.f32 %v9371_v56, %v9370_v2  ;;  %v9373_v30 = vpop.f32.mrb[106].mxu0 }
 0x1e2   : > { %v9374_v24 = vpop.f32.mrb[107].mxu0 }
 0x1e3   : > { %v2527_v23 = vadd.f32 %v9372_v4, %v12357_v39  ;;  %v9375_v53 = vadd.f32 %v9374_v24, %v9373_v30  ;;  %v9586_v47 = vpop.f32.mrb[56].mxu1 }
 0x1e4   : > { %4929 = vmatmul.mubr.bf16.gmra.mrb[212].mxu0 %v12197_v34  ;;  %v9587_v16 = vpop.f32.mrb[57].mxu1 }
 0x1e5   : > { %v2528_v20 = vadd.f32 %v9375_v53, %v12361_v45  ;;  %v12495_v31 = vadd.f32 %v12391_v59, %v2527_v23  ;;  %4936 = vmatprep.mubr.bf16.mxu0 %v12200_v7  ;;  %v12498_v37 = vadd.f32 %v9587_v16, %v9586_v47  ;;  %v9589_v62 = vpop.f32.mrb[58].mxu1  ;;  %v13591_v16 = vld [vmem:[#allocation10_spill] sm:$0xff] }
 0x1e6   : > { %v9590_v33 = vpop.f32.mrb[59].mxu1 }
 0x1e7   : > { %v12501_v1 = vadd.f32 %v12393_v55, %v2528_v20  ;;  %v9376_v39 = vpop.f32.mrb[108].mxu0  ;;  %v12503_v49 = vadd.f32 %v9590_v33, %v9589_v62 }
 0x1e8   : > { %v9377_v61 = vpop.f32.mrb[109].mxu0 }
 0x1e9   : > { %v9378_v34 = vadd.f32 %v9377_v61, %v9376_v39  ;;  %v9379_v41 = vpop.f32.mrb[110].mxu0 }
 0x1ea   : > { %v9380_v46 = vpop.f32.mrb[111].mxu0 }
 0x1eb   : > { %v2529_v45 = vadd.f32 %v9378_v34, %v12372_v35  ;;  %v9381_v59 = vadd.f32 %v9380_v46, %v9379_v41  ;;  %v9592_v63 = vpop.f32.mrb[60].mxu1 }
 0x1ec   : > { %4937 = vmatmul.mubr.bf16.gmra.mrb[216].mxu0 %v12212_v13  ;;  %v9593_v7 = vpop.f32.mrb[61].mxu1 }
 0x1ed   : > { %v2530_v8 = vadd.f32 %v9381_v59, %v12376_v18  ;;  %v12509_v32 = vadd.f32 %v12403_v17, %v2529_v45  ;;  %4944 = vmatprep.mubr.bf16.mxu0 %v12218_v15  ;;  %v12512_v55 = vadd.f32 %v9593_v7, %v9592_v63  ;;  %v9595_v2 = vpop.f32.mrb[62].mxu1  ;;  %v13592_v59 = vld [vmem:[#allocation18_spill] sm:$0xff]  ;;  %v3918_v7 = vld [vmem:[#allocation2 + $0x110] sm:$0xff] }
 0x1ee   : > { %v9596_v56 = vpop.f32.mrb[63].mxu1 }
 0x1ef   : > { %v12515_v4 = vadd.f32 %v12405_v19, %v2530_v8  ;;  %v9382_v35 = vpop.f32.mrb[112].mxu0  ;;  %v12517_v30 = vadd.f32 %v9596_v56, %v9595_v2  ;;  %v13593_v2 = vld [vmem:[#allocation15_spill] sm:$0xff] }
 0x1f0   : > { %v9383_v24 = vpop.f32.mrb[113].mxu0 }
 0x1f1   : > { %v9384_v13 = vadd.f32 %v9383_v24, %v9382_v35  ;;  %v9385_v23 = vpop.f32.mrb[114].mxu0 }
 0x1f2   : > { %v9386_v53 = vpop.f32.mrb[115].mxu0 }
 0x1f3   : > { %v2531_v18 = vadd.f32 %v9384_v13, %v12384_v60  ;;  %v9387_v17 = vadd.f32 %v9386_v53, %v9385_v23  ;;  %v9598_v47 = vpop.f32.mrb[64].mxu1  ;;  %v4730_v13 = vrot.slane %v3918_v7, 5 }
 0x1f4   : > { %4945 = vmatmul.mubr.bf16.gmra.mrb[220].mxu0 %v12230_v10  ;;  %v9599_v15 = vpop.f32.mrb[65].mxu1 }
 0x1f5   : > { %v2532_v20 = vadd.f32 %v9387_v17, %v13591_v16  ;;  %v12523_v62 = vadd.f32 %v12414_v11, %v2531_v18  ;;  %4952 = vmatprep.mubr.bf16.mxu0 %v12238_v6  ;;  %v12526_v19 = vadd.f32 %v9599_v15, %v9598_v47  ;;  %v9601_v33 = vpop.f32.mrb[66].mxu1  ;;  %v3917_v17 = vld [vmem:[#allocation2 + $0x108] sm:$0xee]  ;;  %v3919_v47 = vld [vmem:[#allocation2 + $0x118] sm:$0x11] }
 0x1f6   : > { %v9602_v39 = vpop.f32.mrb[67].mxu1 }
 0x1f7   : > { %v12529_v61 = vadd.f32 %v12419_v21, %v2532_v20  ;;  %v9388_v60 = vpop.f32.mrb[116].mxu0  ;;  %v12531_v34 = vadd.f32 %v9602_v39, %v9601_v33  ;;  %v8750_v33 = vrot.slane %v3917_v17, 9  ;;  %v4732_v39 = vrot.slane %v4730_v13, 4 }
 0x1f8   : > { %v9389_v41 = vpop.f32.mrb[117].mxu0 }
 0x1f9   : > { %v9390_v10 = vadd.f32 %v9389_v41, %v9388_v60  ;;  %v9391_v46 = vpop.f32.mrb[118].mxu0 }
 0x1fa   : > { %v9392_v45 = vpop.f32.mrb[119].mxu0 }
 0x1fb   : > { %v2533_v63 = vadd.f32 %v9390_v10, %v13592_v59  ;;  %v9393_v11 = vadd.f32 %v9392_v45, %v9391_v46  ;;  %v9604_v8 = vpop.f32.mrb[68].mxu1  ;;  %v13594_v59 = vld [vmem:[#allocation16_spill] sm:$0xff] }
 0x1fc   : > { %4953 = vmatmul.mubr.bf16.gmra.mrb[224].mxu0 %v12253_v3  ;;  %v9605_v6 = vpop.f32.mrb[69].mxu1 }
 0x1fd   : > { %v2534_v56 = vadd.f32 %v9393_v11, %v13593_v2  ;;  %v12537_v21 = vadd.f32 %v12428_v14, %v2533_v63  ;;  %4960 = vmatprep.mubr.bf16.mxu0 %v12260_v22  ;;  %v12540_v35 = vadd.f32 %v9605_v6, %v9604_v8  ;;  %v9607_v24 = vpop.f32.mrb[70].mxu1  ;;  %v4733_v22 = vrot.slane %v3919_v47, 5 }
 0x1fe   : > { %v9608_v23 = vpop.f32.mrb[71].mxu1  ;;  %v4731_v8 = vsel %vm12076_vm6, %v8750_v33, %v4730_v13  ;;  %v13596_v13 = vld [vmem:[#allocation17_spill] sm:$0xff] }
 0x1ff   : > { %v12543_v53 = vadd.f32 %v12433_v50, %v2534_v56  ;;  %v9486_v18 = vpop.f32.mrb[120].mxu0  ;;  %v12545_v3 = vadd.f32 %v9608_v23, %v9607_v24 }
 0x200   : > { %v9487_v15 = vpop.f32.mrb[121].mxu0 }
 0x201   : > { %v9488_v16 = vadd.f32 %v9487_v15, %v9486_v18  ;;  %v9489_v20 = vpop.f32.mrb[122].mxu0 }
 0x202   : > { %v9490_v14 = vpop.f32.mrb[123].mxu0 }
 0x203   : > { %v3510_v60 = vadd.f32 %v9488_v16, %v12411_v36  ;;  %v9491_v41 = vadd.f32 %v9490_v14, %v9489_v20  ;;  %v9610_v10 = vpop.f32.mrb[72].mxu1  ;;  %v4734_v36 = vsel %vm12076_vm6, %v4732_v39, %v4733_v22 }
 0x204   : > { %4961 = vmatmul.mubr.bf16.gmra.mrb[228].mxu0 %v12279_v58  ;;  %v9611_v50 = vpop.f32.mrb[73].mxu1  ;;  %v8784_v23 = vcombine.high %v4731_v8, %v4734_v36 }
 0x205   : > { %v3511_v46 = vadd.f32 %v9491_v41, %v12417_v27  ;;  %v12551_v45 = vadd.f32 %v12442_v52, %v3510_v60  ;;  %4968 = vmatprep.mubr.bf16.mxu0 %v13594_v59  ;;  %v12554_v63 = vadd.f32 %v9611_v50, %v9610_v10  ;;  %v9613_v11 = vpop.f32.mrb[74].mxu1  ;;  %v8783_v10 = vcombine.low %v4731_v8, %v4734_v36 }
 0x206   : > { %v9614_v6 = vpop.f32.mrb[75].mxu1 }
 0x207   : > { %v12561_v58 = vadd.f32 %v12447_v0, %v3511_v46  ;;  %v9492_v2 = vpop.f32.mrb[124].mxu0  ;;  %v12563_v27 = vadd.f32 %v9614_v6, %v9613_v11 }
 0x208   : > { %v9493_v52 = vpop.f32.mrb[125].mxu0 }
 0x209   : > { %v9494_v56 = vadd.f32 %v9493_v52, %v9492_v2  ;;  %v9495_v24 = vpop.f32.mrb[126].mxu0 }
 0x20a   : > { %v9496_v18 = vpop.f32.mrb[127].mxu0 }
 0x20b   : > { %v3512_v17 = vadd.f32 %v9494_v56, %v12425_v48  ;;  %v9497_v47 = vadd.f32 %v9496_v18, %v9495_v24  ;;  %v9616_v15 = vpop.f32.mrb[76].mxu1 }
 0x20c   : > { %4969 = vmatmul.mubr.bf16.gmra.mrb[232].mxu0 %v13596_v13  ;;  %v9617_v16 = vpop.f32.mrb[77].mxu1 }
 0x20d   : > { %v3513_v20 = vadd.f32 %v9497_v47, %v12431_v26  ;;  %v12569_v0 = vadd.f32 %v12456_v40, %v3512_v17  ;;  %4976 = vmatprep.mubr.bf16.mxu0 %v8784_v23  ;;  %v12571_v14 = vadd.f32 %v9617_v16, %v9616_v15  ;;  %v9619_v33 = vpop.f32.mrb[78].mxu1 }
 0x20e   : > { %v9620_v39 = vpop.f32.mrb[79].mxu1 }
 0x20f   : > { %v12574_v22 = vadd.f32 %v12461_v57, %v3513_v20  ;;  %v9498_v60 = vpop.f32.mrb[128].mxu0  ;;  %v12576_v48 = vadd.f32 %v9620_v39, %v9619_v33 }
 0x210   : > { %v9499_v41 = vpop.f32.mrb[129].mxu0 }
 0x211   : > { %v9500_v50 = vadd.f32 %v9499_v41, %v9498_v60  ;;  %v9501_v46 = vpop.f32.mrb[130].mxu0 }
 0x212   : > { %v9502_v59 = vpop.f32.mrb[131].mxu0 }
 0x213   : > { %v3514_v26 = vadd.f32 %v9500_v50, %v12439_v12  ;;  %v9503_v40 = vadd.f32 %v9502_v59, %v9501_v46  ;;  %v9714_v11 = vpop.f32.mrb[80].mxu1 }
 0x214   : > { %4977 = vmatmul.mubr.bf16.gmra.mrb[236].mxu0 %v8783_v10  ;;  %v9715_v7 = vpop.f32.mrb[81].mxu1 }
 0x215   : > { %v3515_v6 = vadd.f32 %v9503_v40, %v12445_v25  ;;  %v12581_v2 = vadd.f32 %v12470_v44, %v3514_v26  ;;  %v12583_v57 = vadd.f32 %v9715_v7, %v9714_v11  ;;  %v9717_v52 = vpop.f32.mrb[82].mxu1 }
 0x216   : > { %v9718_v56 = vpop.f32.mrb[83].mxu1 }
 0x217   : > { %v12586_v8 = vadd.f32 %v12475_v38, %v3515_v6  ;;  %v9504_v36 = vpop.f32.mrb[132].mxu0  ;;  %v12588_v24 = vadd.f32 %v9718_v56, %v9717_v52 }
 0x218   : > { %v9505_v12 = vpop.f32.mrb[133].mxu0 }
 0x219   : > { %v9506_v23 = vadd.f32 %v9505_v12, %v9504_v36  ;;  %v9507_v18 = vpop.f32.mrb[134].mxu0  ;;  %v5112_v12 = vld [vmem:[#allocation3] sm:$0x1] }
 0x21a   : > { %v9508_v17 = vpop.f32.mrb[135].mxu0 }
 0x21b   : > { %v3516_v47 = vadd.f32 %v9506_v23, %v12453_v9  ;;  %v9509_v25 = vadd.f32 %v9508_v17, %v9507_v18  ;;  %v9720_v15 = vpop.f32.mrb[84].mxu1  ;;  %v5113_v18 = vsel %vm10923_vm3, 0, %v5112_v12 }
 0x21c   : > { %v9721_v44 = vpop.f32.mrb[85].mxu1  ;;  %5114 = vst [vmem:[#allocation3] sm:$0x1] %v5113_v18 }
 0x21d   : > { %v3517_v13 = vadd.f32 %v9509_v25, %v12459_v42  ;;  %v12593_v16 = vadd.f32 %v12484_v29, %v3516_v47  ;;  %v12595_v20 = vadd.f32 %v9721_v44, %v9720_v15  ;;  %v9723_v38 = vpop.f32.mrb[86].mxu1 }
 0x21e   : > { %v9724_v33 = vpop.f32.mrb[87].mxu1 }
 0x21f   : > { %v12598_v39 = vadd.f32 %v12489_v5, %v3517_v13  ;;  %v9510_v60 = vpop.f32.mrb[136].mxu0  ;;  %v12600_v41 = vadd.f32 %v9724_v33, %v9723_v38 }
 0x220   : > { %v9511_v10 = vpop.f32.mrb[137].mxu0 }
 0x221   : > { %v9512_v9 = vadd.f32 %v9511_v10, %v9510_v60  ;;  %v9513_v50 = vpop.f32.mrb[138].mxu0 }
 0x222   : > { %v9514_v46 = vpop.f32.mrb[139].mxu0 }
 0x223   : > { %v3518_v59 = vadd.f32 %v9512_v9, %v12467_v51  ;;  %v9515_v42 = vadd.f32 %v9514_v46, %v9513_v50  ;;  %v9726_v26 = vpop.f32.mrb[88].mxu1 }
 0x224   : > { %v9727_v29 = vpop.f32.mrb[89].mxu1 }
 0x225   : > { %v3519_v40 = vadd.f32 %v9515_v42, %v12473_v54  ;;  %v12605_v11 = vadd.f32 %v12498_v37, %v3518_v59  ;;  %v12607_v7 = vadd.f32 %v9727_v29, %v9726_v26  ;;  %v9729_v5 = vpop.f32.mrb[90].mxu1  ;;  %v5142_v37 = vld [vmem:[#allocation3 + $0x8] sm:$0x1] }
 0x226   : > { %v9730_v6 = vpop.f32.mrb[91].mxu1  ;;  %v5143_v15 = vsel %vm10952_vm8, 0, %v5142_v37 }
 0x227   : > { %v12610_v52 = vadd.f32 %v12503_v49, %v3519_v40  ;;  %v9516_v56 = vpop.f32.mrb[140].mxu0  ;;  %v12612_v36 = vadd.f32 %v9730_v6, %v9729_v5  ;;  %5144 = vst [vmem:[#allocation3 + $0x8] sm:$0x1] %v5143_v15  ;;  %v5145_v5 = vld [vmem:[#allocation3 + $0x14] sm:$0x1] }
 0x228   : > { %v9517_v51 = vpop.f32.mrb[141].mxu0 }
 0x229   : > { %v9518_v17 = vadd.f32 %v9517_v51, %v9516_v56  ;;  %v9519_v54 = vpop.f32.mrb[142].mxu0 }
 0x22a   : > { %v9520_v47 = vpop.f32.mrb[143].mxu0 }
 0x22b   : > { %v3520_v44 = vadd.f32 %v9518_v17, %v12481_v28  ;;  %v9521_v49 = vadd.f32 %v9520_v47, %v9519_v54  ;;  %v9732_v13 = vpop.f32.mrb[92].mxu1  ;;  %v5115_v28 = vld [vmem:[#allocation3 + $0xc] sm:$0x1] }
 0x22c   : > { %v9733_v38 = vpop.f32.mrb[93].mxu1  ;;  %v5116_v29 = vsel %vm10923_vm3, 0, %v5115_v28 }
 0x22d   : > { %v3521_v33 = vadd.f32 %v9521_v49, %v12487_v43  ;;  %v12621_v60 = vadd.f32 %v12512_v55, %v3520_v44  ;;  %v12623_v10 = vadd.f32 %v9733_v38, %v9732_v13  ;;  %v9735_v9 = vpop.f32.mrb[94].mxu1  ;;  %5117 = vst [vmem:[#allocation3 + $0xc] sm:$0x1] %v5116_v29  ;;  %v5118_v13 = vld [vmem:[#allocation3 + $0x18] sm:$0x1] }
 0x22e   : > { %v9736_v50 = vpop.f32.mrb[95].mxu1 }
 0x22f   : > { %v12626_v46 = vadd.f32 %v12517_v30, %v3521_v33  ;;  %v9522_v59 = vpop.f32.mrb[144].mxu0  ;;  %v12628_v42 = vadd.f32 %v9736_v50, %v9735_v9  ;;  %v5146_v30 = vsel %vm10952_vm8, 0, %v5145_v5 }
 0x230   : > { %v9523_v26 = vpop.f32.mrb[145].mxu0  ;;  %5147 = vst [vmem:[#allocation3 + $0x14] sm:$0x1] %v5146_v30 }
 0x231   : > { %v9524_v40 = vadd.f32 %v9523_v26, %v9522_v59  ;;  %v9525_v43 = vpop.f32.mrb[146].mxu0 }
 0x232   : > { %v9526_v55 = vpop.f32.mrb[147].mxu0 }
 0x233   : > { %v3522_v6 = vadd.f32 %v9524_v40, %v12495_v31  ;;  %v9527_v56 = vadd.f32 %v9526_v55, %v9525_v43  ;;  %v9738_v12 = vpop.f32.mrb[96].mxu1 }
 0x234   : > { %v9739_v51 = vpop.f32.mrb[97].mxu1 }
 0x235   : > { %v3523_v18 = vadd.f32 %v9527_v56, %v12501_v1  ;;  %v12637_v17 = vadd.f32 %v12526_v19, %v3522_v6  ;;  %v12639_v54 = vadd.f32 %v9739_v51, %v9738_v12  ;;  %v9741_v37 = vpop.f32.mrb[98].mxu1  ;;  %v5119_v1 = vsel %vm10923_vm3, 0, %v5118_v13  ;;  %v5148_v19 = vld [vmem:[#allocation3 + $0x20] sm:$0x1] }
 0x236   : > { %v9742_v47 = vpop.f32.mrb[99].mxu1  ;;  %5120 = vst [vmem:[#allocation3 + $0x18] sm:$0x1] %v5119_v1 }
 0x237   : > { %v12642_v15 = vadd.f32 %v12531_v34, %v3523_v18  ;;  %v9528_v31 = vpop.f32.mrb[148].mxu0  ;;  %v12644_v44 = vadd.f32 %v9742_v47, %v9741_v37  ;;  %v5149_v34 = vsel %vm10952_vm8, 0, %v5148_v19  ;;  %v5121_v18 = vld [vmem:[#allocation3 + $0x24] sm:$0x1] }
 0x238   : > { %v9529_v49 = vpop.f32.mrb[149].mxu0  ;;  %5150 = vst [vmem:[#allocation3 + $0x20] sm:$0x1] %v5149_v34 }
 0x239   : > { %v9530_v38 = vadd.f32 %v9529_v49, %v9528_v31  ;;  %v9531_v33 = vpop.f32.mrb[150].mxu0  ;;  %v5151_v49 = vld [vmem:[#allocation3 + $0x2c] sm:$0x1] }
 0x23a   : > { %v9532_v9 = vpop.f32.mrb[151].mxu0 }
 0x23b   : > { %v3524_v50 = vadd.f32 %v9530_v38, %v12509_v32  ;;  %v9533_v59 = vadd.f32 %v9532_v9, %v9531_v33  ;;  %v9744_v28 = vpop.f32.mrb[100].mxu1 }
 0x23c   : > { %v9745_v26 = vpop.f32.mrb[101].mxu1 }
 0x23d   : > { %v3525_v29 = vadd.f32 %v9533_v59, %v12515_v4  ;;  %v12653_v40 = vadd.f32 %v12540_v35, %v3524_v50  ;;  %v12655_v43 = vadd.f32 %v9745_v26, %v9744_v28  ;;  %v9747_v55 = vpop.f32.mrb[102].mxu1  ;;  %v5122_v4 = vsel %vm10923_vm3, 0, %v5121_v18 }
 0x23e   : > { %v9748_v5 = vpop.f32.mrb[103].mxu1  ;;  %5123 = vst [vmem:[#allocation3 + $0x24] sm:$0x1] %v5122_v4 }
 0x23f   : > { %v12658_v6 = vadd.f32 %v12545_v3, %v3525_v29  ;;  %v9534_v32 = vpop.f32.mrb[152].mxu0  ;;  %v12660_v56 = vadd.f32 %v9748_v5, %v9747_v55  ;;  %v5152_v3 = vsel %vm10952_vm8, 0, %v5151_v49  ;;  %v5124_v29 = vld [vmem:[#allocation3 + $0x30] sm:$0x1] }
 0x240   : > { %v9535_v12 = vpop.f32.mrb[153].mxu0  ;;  %5153 = vst [vmem:[#allocation3 + $0x2c] sm:$0x1] %v5152_v3 }
 0x241   : > { %v9536_v30 = vadd.f32 %v9535_v12, %v9534_v32  ;;  %v9537_v51 = vpop.f32.mrb[154].mxu0  ;;  %v5154_v12 = vld [vmem:[#allocation3 + $0x38] sm:$0x1] }
 0x242   : > { %v9538_v37 = vpop.f32.mrb[155].mxu0 }
 0x243   : > { %v3526_v35 = vadd.f32 %v9536_v30, %v12523_v62  ;;  %v9539_v47 = vadd.f32 %v9538_v37, %v9537_v51  ;;  %v9750_v31 = vpop.f32.mrb[104].mxu1 }
 0x244   : > { %v9751_v13 = vpop.f32.mrb[105].mxu1 }
 0x245   : > { %v3527_v38 = vadd.f32 %v9539_v47, %v12529_v61  ;;  %v12669_v33 = vadd.f32 %v12554_v63, %v3526_v35  ;;  %v12671_v1 = vadd.f32 %v9751_v13, %v9750_v31  ;;  %v9753_v9 = vpop.f32.mrb[106].mxu1  ;;  %v5125_v61 = vsel %vm10923_vm3, 0, %v5124_v29 }
 0x246   : > { %v9754_v19 = vpop.f32.mrb[107].mxu1  ;;  %5126 = vst [vmem:[#allocation3 + $0x30] sm:$0x1] %v5125_v61 }
 0x247   : > { %v12674_v62 = vadd.f32 %v12563_v27, %v3527_v38  ;;  %v9540_v50 = vpop.f32.mrb[156].mxu0  ;;  %v12676_v59 = vadd.f32 %v9754_v19, %v9753_v9  ;;  %v5155_v27 = vsel %vm10952_vm8, 0, %v5154_v12  ;;  %v5127_v38 = vld [vmem:[#allocation3 + $0x3c] sm:$0x1] }
 0x248   : > { %v9541_v28 = vpop.f32.mrb[157].mxu0  ;;  %5156 = vst [vmem:[#allocation3 + $0x38] sm:$0x1] %v5155_v27 }
 0x249   : > { %v9542_v34 = vadd.f32 %v9541_v28, %v9540_v50  ;;  %v9543_v26 = vpop.f32.mrb[158].mxu0  ;;  %v5157_v28 = vld [vmem:[#allocation3 + $0x44] sm:$0x1] }
 0x24a   : > { %v9544_v55 = vpop.f32.mrb[159].mxu0 }
 0x24b   : > { %v3528_v63 = vadd.f32 %v9542_v34, %v12537_v21  ;;  %v9545_v5 = vadd.f32 %v9544_v55, %v9543_v26  ;;  %v9756_v32 = vpop.f32.mrb[108].mxu1 }
 0x24c   : > { %v9757_v30 = vpop.f32.mrb[109].mxu1 }
 0x24d   : > { %v3529_v51 = vadd.f32 %v9545_v5, %v12543_v53  ;;  %v12685_v18 = vadd.f32 %v12571_v14, %v3528_v63  ;;  %v12687_v37 = vadd.f32 %v9757_v30, %v9756_v32  ;;  %v9759_v4 = vpop.f32.mrb[110].mxu1  ;;  %v5128_v53 = vsel %vm10923_vm3, 0, %v5127_v38 }
 0x24e   : > { %v9760_v35 = vpop.f32.mrb[111].mxu1  ;;  %5129 = vst [vmem:[#allocation3 + $0x3c] sm:$0x1] %v5128_v53 }
 0x24f   : > { %v12690_v21 = vadd.f32 %v12576_v48, %v3529_v51  ;;  %v9638_v47 = vpop.f32.mrb[160].mxu0  ;;  %v12692_v31 = vadd.f32 %v9760_v35, %v9759_v4  ;;  %v5158_v48 = vsel %vm10952_vm8, 0, %v5157_v28  ;;  %v5130_v51 = vld [vmem:[#allocation3 + $0x48] sm:$0x1] }
 0x250   : > { %v9639_v49 = vpop.f32.mrb[161].mxu0  ;;  %5159 = vst [vmem:[#allocation3 + $0x44] sm:$0x1] %v5158_v48 }
 0x251   : > { %v9640_v13 = vadd.f32 %v9639_v49, %v9638_v47  ;;  %v9641_v3 = vpop.f32.mrb[162].mxu0  ;;  %v5160_v49 = vld [vmem:[#allocation3 + $0x50] sm:$0x1] }
 0x252   : > { %v9642_v9 = vpop.f32.mrb[163].mxu0 }
 0x253   : > { %v4365_v14 = vadd.f32 %v9640_v13, %v12551_v45  ;;  %v9643_v19 = vadd.f32 %v9642_v9, %v9641_v3  ;;  %v9762_v50 = vpop.f32.mrb[112].mxu1 }
 0x254   : > { %v9763_v34 = vpop.f32.mrb[113].mxu1 }
 0x255   : > { %v4366_v26 = vadd.f32 %v9643_v19, %v12561_v58  ;;  %v12701_v29 = vadd.f32 %v12583_v57, %v4365_v14  ;;  %v12703_v55 = vadd.f32 %v9763_v34, %v9762_v50  ;;  %v9765_v61 = vpop.f32.mrb[114].mxu1  ;;  %v5131_v58 = vsel %vm10923_vm3, 0, %v5130_v51 }
 0x256   : > { %v9766_v63 = vpop.f32.mrb[115].mxu1  ;;  %5132 = vst [vmem:[#allocation3 + $0x48] sm:$0x1] %v5131_v58 }
 0x257   : > { %v12706_v45 = vadd.f32 %v12588_v24, %v4366_v26  ;;  %v9644_v5 = vpop.f32.mrb[164].mxu0  ;;  %v12708_v32 = vadd.f32 %v9766_v63, %v9765_v61  ;;  %v5161_v24 = vsel %vm10952_vm8, 0, %v5160_v49  ;;  %v5133_v26 = vld [vmem:[#allocation3 + $0x54] sm:$0x1] }
 0x258   : > { %v9645_v12 = vpop.f32.mrb[165].mxu0  ;;  %5162 = vst [vmem:[#allocation3 + $0x50] sm:$0x1] %v5161_v24 }
 0x259   : > { %v9646_v30 = vadd.f32 %v9645_v12, %v9644_v5  ;;  %v9647_v27 = vpop.f32.mrb[166].mxu0  ;;  %v5163_v5 = vld [vmem:[#allocation3 + $0x5c] sm:$0x1] }
 0x25a   : > { %v9648_v4 = vpop.f32.mrb[167].mxu0 }
 0x25b   : > { %v4367_v57 = vadd.f32 %v9646_v30, %v12569_v0  ;;  %v9649_v35 = vadd.f32 %v9648_v4, %v9647_v27  ;;  %v9768_v47 = vpop.f32.mrb[116].mxu1 }
 0x25c   : > { %v9769_v13 = vpop.f32.mrb[117].mxu1 }
 0x25d   : > { %v4368_v3 = vadd.f32 %v9649_v35, %v12574_v22  ;;  %v12717_v38 = vadd.f32 %v12595_v20, %v4367_v57  ;;  %v12719_v9 = vadd.f32 %v9769_v13, %v9768_v47  ;;  %v9771_v53 = vpop.f32.mrb[118].mxu1  ;;  %v5134_v22 = vsel %vm10923_vm3, 0, %v5133_v26 }
 0x25e   : > { %v9772_v14 = vpop.f32.mrb[119].mxu1  ;;  %5135 = vst [vmem:[#allocation3 + $0x54] sm:$0x1] %v5134_v22 }
 0x25f   : > { %v12722_v0 = vadd.f32 %v12600_v41, %v4368_v3  ;;  %v9650_v19 = vpop.f32.mrb[168].mxu0  ;;  %v12724_v50 = vadd.f32 %v9772_v14, %v9771_v53  ;;  %v5164_v41 = vsel %vm10952_vm8, 0, %v5163_v5 }
 0x260   : > { %v9651_v28 = vpop.f32.mrb[169].mxu0  ;;  %5165 = vst [vmem:[#allocation3 + $0x5c] sm:$0x1] %v5164_v41 }
 0x261   : > { %v9652_v34 = vadd.f32 %v9651_v28, %v9650_v19  ;;  %v9653_v48 = vpop.f32.mrb[170].mxu0 }
 0x262   : > { %v9654_v61 = vpop.f32.mrb[171].mxu0 }
 0x263   : > { %v4369_v20 = vadd.f32 %v9652_v34, %v12581_v2  ;;  %v9655_v63 = vadd.f32 %v9654_v61, %v9653_v48  ;;  %v5136_v2 = vld [vmem:[#allocation3 + $0x60] sm:$0x1] }
 0x264   : > { %v5137_v47 = vsel %vm10923_vm3, 0, %v5136_v2 }
 0x265   : > { %v4370_v12 = vadd.f32 %v9655_v63, %v12586_v8  ;;  %v12733_v30 = vadd.f32 %v12607_v7, %v4369_v20  ;;  %5138 = vst [vmem:[#allocation3 + $0x60] sm:$0x1] %v5137_v47  ;;  %v5166_v8 = vld [vmem:[#allocation3 + $0x68] sm:$0x1] }
 0x266   : > { %v5167_v7 = vsel %vm10952_vm8, 0, %v5166_v8 }
 0x267   : > { %v12736_v27 = vadd.f32 %v12612_v36, %v4370_v12  ;;  %v9656_v51 = vpop.f32.mrb[172].mxu0  ;;  %5168 = vst [vmem:[#allocation3 + $0x68] sm:$0x1] %v5167_v7 }
 0x268   : > { %v9657_v4 = vpop.f32.mrb[173].mxu0 }
 0x269   : > { %v9658_v58 = vadd.f32 %v9657_v4, %v9656_v51  ;;  %v9659_v57 = vpop.f32.mrb[174].mxu0 }
 0x26a   : > { %v9660_v35 = vpop.f32.mrb[175].mxu0 }
 0x26b   : > { %v4371_v49 = vadd.f32 %v9658_v58, %v12593_v16  ;;  %v9661_v13 = vadd.f32 %v9660_v35, %v9659_v57  ;;  %v5139_v16 = vld [vmem:[#allocation3 + $0x6c] sm:$0x1] }
 0x26c   : > { %v5140_v48 = vsel %vm10923_vm3, 0, %v5139_v16 }
 0x26d   : > { %v4372_v36 = vadd.f32 %v9661_v13, %v12598_v39  ;;  %v12745_v24 = vadd.f32 %v12623_v10, %v4371_v49  ;;  %5141 = vst [vmem:[#allocation3 + $0x6c] sm:$0x1] %v5140_v48  ;;  %v5169_v39 = vld [vmem:[#allocation3 + $0x74] sm:$0x1] }
 0x26e   : > { %v5170_v10 = vsel %vm10952_vm8, 0, %v5169_v39 }
 0x26f   : > { %v12748_v3 = vadd.f32 %v12628_v42, %v4372_v36  ;;  %v9662_v53 = vpop.f32.mrb[176].mxu0  ;;  %5171 = vst [vmem:[#allocation3 + $0x74] sm:$0x1] %v5170_v10 }
 0x270   : > { %v9663_v14 = vpop.f32.mrb[177].mxu0 }
 0x271   : > { %v9664_v19 = vadd.f32 %v9663_v14, %v9662_v53  ;;  %v9665_v28 = vpop.f32.mrb[178].mxu0 }
 0x272   : > { %v9666_v34 = vpop.f32.mrb[179].mxu0 }
 0x273   : > { %v4373_v26 = vadd.f32 %v9664_v19, %v12605_v11  ;;  %v9667_v61 = vadd.f32 %v9666_v34, %v9665_v28 }
 0x275   : > { %v4374_v42 = vadd.f32 %v9667_v61, %v12610_v52  ;;  %v12757_v22 = vadd.f32 %v12639_v54, %v4373_v26 }
 0x277   : > { %v12760_v20 = vadd.f32 %v12644_v44, %v4374_v42  ;;  %v9668_v63 = vpop.f32.mrb[180].mxu0 }
 0x278   : > { %v9669_v5 = vpop.f32.mrb[181].mxu0 }
 0x279   : > { %v9670_v41 = vadd.f32 %v9669_v5, %v9668_v63  ;;  %v9671_v12 = vpop.f32.mrb[182].mxu0 }
 0x27a   : > { %v9672_v11 = vpop.f32.mrb[183].mxu0 }
 0x27b   : > { %v4375_v51 = vadd.f32 %v9670_v41, %v12621_v60  ;;  %v9673_v4 = vadd.f32 %v9672_v11, %v9671_v12 }
 0x27d   : > { %v4376_v25 = vadd.f32 %v9673_v4, %v12626_v46  ;;  %v12765_v58 = vadd.f32 %v12655_v43, %v4375_v51  ;;  %v12805_v51 = vld [vmem:[%s13508_s7] ss:$0 sm:$0xff] }
 0x27f   : > { %v12768_v52 = vadd.f32 %v12660_v56, %v4376_v25  ;;  %v9674_v54 = vpop.f32.mrb[184].mxu0 }
 0x280   : > { %v9675_v57 = vpop.f32.mrb[185].mxu0 }
 0x281   : > { %v9676_v44 = vadd.f32 %v9675_v57, %v9674_v54  ;;  %v9677_v2 = vpop.f32.mrb[186].mxu0 }
 0x282   : > { %v9678_v35 = vpop.f32.mrb[187].mxu0 }
 0x283   : > { %v4377_v47 = vadd.f32 %v9676_v44, %v12637_v17  ;;  %v9679_v49 = vadd.f32 %v9678_v35, %v9677_v2 }
 0x285   : > { %v4378_v13 = vadd.f32 %v9679_v49, %v12642_v15  ;;  %v12773_v60 = vadd.f32 %v12671_v1, %v4377_v47 }
 0x287   : > { %v12776_v46 = vadd.f32 %v12676_v59, %v4378_v13  ;;  %v9680_v43 = vpop.f32.mrb[188].mxu0 }
 0x288   : > { %v9681_v8 = vpop.f32.mrb[189].mxu0 }
 0x289   : > { %v9682_v56 = vadd.f32 %v9681_v8, %v9680_v43  ;;  %v9683_v7 = vpop.f32.mrb[190].mxu0 }
 0x28a   : > { %v9684_v36 = vpop.f32.mrb[191].mxu0 }
 0x28b   : > { %v4379_v53 = vadd.f32 %v9682_v56, %v12653_v40  ;;  %v9685_v14 = vadd.f32 %v9684_v36, %v9683_v7 }
 0x28d   : > { %v4380_v19 = vadd.f32 %v9685_v14, %v12658_v6  ;;  %v12781_v17 = vadd.f32 %v12687_v37, %v4379_v53  ;;  %v5432_v14 = vld [vmem:[#allocation3] sm:$0xf] }
 0x28f   : > { %v12784_v15 = vadd.f32 %v12692_v31, %v4380_v19  ;;  %v9686_v1 = vpop.f32.mrb[192].mxu0 }
 0x290   : > { %v9687_v28 = vpop.f32.mrb[193].mxu0 }
 0x291   : > { %v9688_v59 = vadd.f32 %v9687_v28, %v9686_v1  ;;  %v9689_v16 = vpop.f32.mrb[194].mxu0 }
 0x292   : > { %v9690_v34 = vpop.f32.mrb[195].mxu0 }
 0x293   : > { %v4381_v48 = vadd.f32 %v9688_v59, %v12669_v33  ;;  %v9691_v26 = vadd.f32 %v9690_v34, %v9689_v16 }
 0x295   : > { %v4382_v61 = vadd.f32 %v9691_v26, %v12674_v62  ;;  %v12789_v40 = vadd.f32 %v12703_v55, %v4381_v48  ;;  %v5436_v26 = vld [vmem:[#allocation3 + $0x8] sm:$0x1] }
 0x297   : > { %v12792_v6 = vadd.f32 %v12708_v32, %v4382_v61  ;;  %v9692_v37 = vpop.f32.mrb[196].mxu0 }
 0x298   : > { %v9693_v39 = vpop.f32.mrb[197].mxu0 }
 0x299   : > { %v9694_v31 = vadd.f32 %v9693_v39, %v9692_v37  ;;  %v9695_v10 = vpop.f32.mrb[198].mxu0 }
 0x29a   : > { %v9696_v42 = vpop.f32.mrb[199].mxu0 }
 0x29b   : > { %v4383_v63 = vadd.f32 %v9694_v31, %v12685_v18  ;;  %v9697_v5 = vadd.f32 %v9696_v42, %v9695_v10 }
 0x29d   : > { %v4384_v41 = vadd.f32 %v9697_v5, %v12690_v21  ;;  %v12797_v33 = vadd.f32 %v12719_v9, %v4383_v63 }
 0x29f   : > { %v12800_v62 = vadd.f32 %v12724_v50, %v4384_v41  ;;  %v9790_v55 = vpop.f32.mrb[200].mxu0 }
 0x2a0   : > { %v9791_v12 = vpop.f32.mrb[201].mxu0 }
 0x2a1   : > { %v9792_v32 = vadd.f32 %v9791_v12, %v9790_v55  ;;  %v9793_v11 = vpop.f32.mrb[202].mxu0 }
 0x2a2   : > { %v9794_v4 = vpop.f32.mrb[203].mxu0 }
 0x2a3   : > { %v5005_v18 = vadd.f32 %v9792_v32, %v12701_v29  ;;  %v9795_v25 = vadd.f32 %v9794_v4, %v9793_v11 }
 0x2a5   : > { %v5072_v21 = vadd.f32 %v12805_v51, %v5005_v18  ;;  %v5006_v9 = vadd.f32 %v9795_v25, %v12706_v45 }
 0x2a7   : > { %v5092_v54 = vmax.f32 %v5072_v21, 0.0  ;;  %v5073_v50 = vadd.f32 %v12805_v51, %v5006_v9  ;;  %v9796_v57 = vpop.f32.mrb[204].mxu0 }
 0x2a8   : > { %v9797_v44 = vpop.f32.mrb[205].mxu0 }
 0x2a9   : > { %v9083_v2 = vpack.c.bf16 %v5092_v54, %v5092_v54  ;;  %v5093_v35 = vmax.f32 %v5073_v50, 0.0  ;;  %v9798_v47 = vadd.f32 %v9797_v44, %v9796_v57  ;;  %v9799_v49 = vpop.f32.mrb[206].mxu0  ;;  %v5439_v54 = vld [vmem:[#allocation3 + $0xc] sm:$0xf] }
 0x2aa   : > { %v9800_v13 = vpop.f32.mrb[207].mxu0 }
 0x2ab   : > { %v5233_v43 = vshrl.u32 %v9083_v2, 16  ;;  %v9084_v8 = vpack.c.bf16 %v5093_v35, %v5093_v35  ;;  %v5007_v56 = vadd.f32 %v9798_v47, %v12717_v38  ;;  %v9801_v29 = vadd.f32 %v9800_v13, %v9799_v49 }
 0x2ac   : > { %v5236_v36 = vshll.u32 %v9083_v2, 16 }
 0x2ad   : > { %v5235_v7 = vrot.slane %v5233_v43, 7  ;;  %v5241_v53 = vshrl.u32 %v9084_v8, 16  ;;  %v5074_v45 = vadd.f32 %v12805_v51, %v5007_v56  ;;  %v5008_v19 = vadd.f32 %v9801_v29, %v12722_v0  ;;  %v5443_v29 = vld [vmem:[#allocation3 + $0x14] sm:$0x1] }
 0x2ae   : > { %v5244_v59 = vshll.u32 %v9084_v8, 16 }
 0x2af   : > { %v5238_v1 = vor.u32 %v5236_v36, %v5235_v7  ;;  %v5243_v28 = vrot.slane %v5241_v53, 7  ;;  %v5094_v16 = vmax.f32 %v5074_v45, 0.0  ;;  %v9802_v34 = vpop.f32.mrb[208].mxu0  ;;  %v5239_v48 = vrot.slane %v5235_v7, 4 }
 0x2b0   : > { %v5075_v61 = vadd.f32 %v12805_v51, %v5008_v19  ;;  %v9803_v37 = vpop.f32.mrb[209].mxu0 }
 0x2b1   : > { %v5433_v39 = vsel %vm11040_vm12, %v5238_v1, %v5432_v14  ;;  %v5246_v31 = vor.u32 %v5244_v59, %v5243_v28  ;;  %v5248_v10 = vrot.slane %v5243_v28, 4  ;;  %v9085_v42 = vpack.c.bf16 %v5094_v16, %v5094_v16  ;;  %v9805_v63 = vpop.f32.mrb[210].mxu0 }
 0x2b2   : > { %5434 = vst [vmem:[#allocation3] sm:$0xf] %v5433_v39  ;;  %v5095_v5 = vmax.f32 %v5075_v61, 0.0  ;;  %v9804_v0 = vadd.f32 %v9803_v37, %v9802_v34  ;;  %v9806_v41 = vpop.f32.mrb[211].mxu0 }
 0x2b3   : > { %v5247_v12 = vsel %vm11015_vm11, %v5239_v48, %v5246_v31  ;;  %v5437_v32 = vsel %vm10923_vm3, %v5248_v10, %v5436_v26  ;;  %v5250_v11 = vshrl.u32 %v9085_v42, 16  ;;  %v9807_v25 = vadd.f32 %v9806_v41, %v9805_v63  ;;  %v5446_v31 = vld [vmem:[#allocation3 + $0x18] sm:$0xf] }
 0x2b4   : > { %5435 = vst [vmem:[#allocation3 + $0x4] sm:$0xf] %v5247_v12  ;;  %5438 = vst [vmem:[#allocation3 + $0x8] sm:$0x1] %v5437_v32  ;;  %v9086_v4 = vpack.c.bf16 %v5095_v5, %v5095_v5  ;;  %v5009_v18 = vadd.f32 %v9804_v0, %v12733_v30  ;;  %v5253_v9 = vshll.u32 %v9085_v42, 16 }
 0x2b5   : > { %v5252_v21 = vrot.slane %v5250_v11, 7  ;;  %v5010_v44 = vadd.f32 %v9807_v25, %v12736_v27 }
 0x2b6   : > { %v5258_v50 = vshrl.u32 %v9086_v4, 16  ;;  %v5076_v57 = vadd.f32 %v12805_v51, %v5009_v18  ;;  %v5261_v49 = vshll.u32 %v9086_v4, 16 }
 0x2b7   : > { %v5255_v2 = vor.u32 %v5253_v9, %v5252_v21  ;;  %v9808_v35 = vpop.f32.mrb[212].mxu0  ;;  %v5077_v43 = vadd.f32 %v12805_v51, %v5010_v44  ;;  %v5256_v56 = vrot.slane %v5252_v21, 4 }
 0x2b8   : > { %v5260_v47 = vrot.slane %v5258_v50, 7  ;;  %v5096_v13 = vmax.f32 %v5076_v57, 0.0  ;;  %v9809_v8 = vpop.f32.mrb[213].mxu0 }
 0x2b9   : > { %v5440_v30 = vsel %vm11040_vm12, %v5255_v2, %v5439_v54  ;;  %v9810_v7 = vadd.f32 %v9809_v8, %v9808_v35  ;;  %v9811_v36 = vpop.f32.mrb[214].mxu0  ;;  %v5097_v27 = vmax.f32 %v5077_v43, 0.0  ;;  %v5453_v8 = vld [vmem:[#allocation3 + $0x24] sm:$0xf] }
 0x2ba   : > { %5441 = vst [vmem:[#allocation3 + $0xc] sm:$0xf] %v5440_v30  ;;  %v5263_v53 = vor.u32 %v5261_v49, %v5260_v47  ;;  %v5265_v45 = vrot.slane %v5260_v47, 4  ;;  %v9087_v14 = vpack.c.bf16 %v5096_v13, %v5096_v13  ;;  %v9812_v19 = vpop.f32.mrb[215].mxu0 }
 0x2bb   : > { %v5011_v1 = vadd.f32 %v9810_v7, %v12745_v24  ;;  %v9813_v28 = vadd.f32 %v9812_v19, %v9811_v36  ;;  %v9088_v48 = vpack.c.bf16 %v5097_v27, %v5097_v27 }
 0x2bc   : > { %v5264_v59 = vsel %vm11015_vm11, %v5256_v56, %v5263_v53  ;;  %v5444_v16 = vsel %vm10923_vm3, %v5265_v45, %v5443_v29  ;;  %v5267_v34 = vshrl.u32 %v9087_v14, 16  ;;  %v5270_v39 = vshll.u32 %v9087_v14, 16 }
 0x2bd   : > { %5442 = vst [vmem:[#allocation3 + $0x10] sm:$0xf] %v5264_v59  ;;  %5445 = vst [vmem:[#allocation3 + $0x14] sm:$0x1] %v5444_v16  ;;  %v5078_v26 = vadd.f32 %v12805_v51, %v5011_v1  ;;  %v5012_v61 = vadd.f32 %v9813_v28, %v12748_v3  ;;  %v5275_v10 = vshrl.u32 %v9088_v48, 16  ;;  %v5278_v0 = vshll.u32 %v9088_v48, 16 }
 0x2be   : > { %v5269_v37 = vrot.slane %v5267_v34, 7  ;;  %v5450_v3 = vld [vmem:[#allocation3 + $0x20] sm:$0x1]  ;;  %v5457_v28 = vld [vmem:[#allocation3 + $0x2c] sm:$0x1] }
 0x2bf   : > { %v5098_v24 = vmax.f32 %v5078_v26, 0.0  ;;  %v5079_v42 = vadd.f32 %v12805_v51, %v5012_v61  ;;  %v9814_v63 = vpop.f32.mrb[216].mxu0  ;;  %v5277_v12 = vrot.slane %v5275_v10, 7 }
 0x2c0   : > { %v5272_v5 = vor.u32 %v5270_v39, %v5269_v37  ;;  %v9815_v41 = vpop.f32.mrb[217].mxu0  ;;  %v5273_v9 = vrot.slane %v5269_v37, 4 }
 0x2c1   : > { %v9089_v32 = vpack.c.bf16 %v5098_v24, %v5098_v24  ;;  %v5099_v11 = vmax.f32 %v5079_v42, 0.0  ;;  %v9816_v4 = vadd.f32 %v9815_v41, %v9814_v63  ;;  %v9817_v18 = vpop.f32.mrb[218].mxu0  ;;  %v5280_v54 = vor.u32 %v5278_v0, %v5277_v12 }
 0x2c2   : > { %v5447_v25 = vsel %vm11040_vm12, %v5272_v5, %v5446_v31  ;;  %v9818_v21 = vpop.f32.mrb[219].mxu0  ;;  %v5282_v50 = vrot.slane %v5277_v12, 4  ;;  %v5460_v12 = vld [vmem:[#allocation3 + $0x30] sm:$0xf] }
 0x2c3   : > { %5448 = vst [vmem:[#allocation3 + $0x18] sm:$0xf] %v5447_v25  ;;  %v5284_v57 = vshrl.u32 %v9089_v32, 16  ;;  %v9090_v44 = vpack.c.bf16 %v5099_v11, %v5099_v11  ;;  %v5013_v2 = vadd.f32 %v9816_v4, %v12757_v22  ;;  %v9819_v35 = vadd.f32 %v9818_v21, %v9817_v18 }
 0x2c4   : > { %v5281_v47 = vsel %vm11015_vm11, %v5273_v9, %v5280_v54  ;;  %v5451_v49 = vsel %vm10923_vm3, %v5282_v50, %v5450_v3  ;;  %v5287_v43 = vshll.u32 %v9089_v32, 16 }
 0x2c5   : > { %v5286_v13 = vrot.slane %v5284_v57, 7  ;;  %5449 = vst [vmem:[#allocation3 + $0x1c] sm:$0xf] %v5281_v47  ;;  %5452 = vst [vmem:[#allocation3 + $0x20] sm:$0x1] %v5451_v49  ;;  %v5292_v56 = vshrl.u32 %v9090_v44, 16  ;;  %v5080_v30 = vadd.f32 %v12805_v51, %v5013_v2  ;;  %v5014_v29 = vadd.f32 %v9819_v35, %v12760_v20 }
 0x2c6   : > { %v5295_v53 = vshll.u32 %v9090_v44, 16 }
 0x2c7   : > { %v5289_v7 = vor.u32 %v5287_v43, %v5286_v13  ;;  %v9820_v36 = vpop.f32.mrb[220].mxu0  ;;  %v5294_v22 = vrot.slane %v5292_v56, 7  ;;  %v5100_v45 = vmax.f32 %v5080_v30, 0.0  ;;  %v5081_v14 = vadd.f32 %v12805_v51, %v5014_v29 }
 0x2c8   : > { %v9821_v27 = vpop.f32.mrb[221].mxu0  ;;  %v5290_v19 = vrot.slane %v5286_v13, 4 }
 0x2c9   : > { %v5454_v1 = vsel %vm11040_vm12, %v5289_v7, %v5453_v8  ;;  %v9822_v59 = vadd.f32 %v9821_v27, %v9820_v36  ;;  %v9823_v16 = vpop.f32.mrb[222].mxu0  ;;  %v5297_v34 = vor.u32 %v5295_v53, %v5294_v22  ;;  %v5299_v48 = vrot.slane %v5294_v22, 4  ;;  %v5467_v22 = vld [vmem:[#allocation3 + $0x3c] sm:$0xf] }
 0x2ca   : > { %5455 = vst [vmem:[#allocation3 + $0x24] sm:$0xf] %v5454_v1  ;;  %v9091_v26 = vpack.c.bf16 %v5100_v45, %v5100_v45  ;;  %v5101_v20 = vmax.f32 %v5081_v14, 0.0  ;;  %v9824_v61 = vpop.f32.mrb[223].mxu0 }
 0x2cb   : > { %v5015_v37 = vadd.f32 %v9822_v59, %v12765_v58  ;;  %v9825_v39 = vadd.f32 %v9824_v61, %v9823_v16  ;;  %v5298_v31 = vsel %vm11015_vm11, %v5290_v19, %v5297_v34  ;;  %v5458_v10 = vsel %vm10923_vm3, %v5299_v48, %v5457_v28 }
 0x2cc   : > { %v5301_v24 = vshrl.u32 %v9091_v26, 16  ;;  %5456 = vst [vmem:[#allocation3 + $0x28] sm:$0xf] %v5298_v31  ;;  %5459 = vst [vmem:[#allocation3 + $0x2c] sm:$0x1] %v5458_v10  ;;  %v9092_v42 = vpack.c.bf16 %v5101_v20, %v5101_v20  ;;  %v5304_v41 = vshll.u32 %v9091_v26, 16 }
 0x2cd   : > { %v5082_v63 = vadd.f32 %v12805_v51, %v5015_v37  ;;  %v5016_v5 = vadd.f32 %v9825_v39, %v12768_v52  ;;  %v5464_v52 = vld [vmem:[#allocation3 + $0x38] sm:$0x1]  ;;  %v5471_v26 = vld [vmem:[#allocation3 + $0x44] sm:$0x1] }
 0x2ce   : > { %v5303_v0 = vrot.slane %v5301_v24, 7  ;;  %v5309_v32 = vshrl.u32 %v9092_v42, 16  ;;  %v5312_v25 = vshll.u32 %v9092_v42, 16 }
 0x2cf   : > { %v5102_v58 = vmax.f32 %v5082_v63, 0.0  ;;  %v5083_v11 = vadd.f32 %v12805_v51, %v5016_v5  ;;  %v9826_v4 = vpop.f32.mrb[224].mxu0 }
 0x2d0   : > { %v5306_v18 = vor.u32 %v5304_v41, %v5303_v0  ;;  %v9827_v3 = vpop.f32.mrb[225].mxu0  ;;  %v5311_v21 = vrot.slane %v5309_v32, 7  ;;  %v5307_v35 = vrot.slane %v5303_v0, 4 }
 0x2d1   : > { %v9093_v9 = vpack.c.bf16 %v5102_v58, %v5102_v58  ;;  %v5103_v54 = vmax.f32 %v5083_v11, 0.0  ;;  %v9828_v50 = vadd.f32 %v9827_v3, %v9826_v4  ;;  %v9829_v57 = vpop.f32.mrb[226].mxu0  ;;  %v5474_v4 = vld [vmem:[#allocation3 + $0x48] sm:$0xf] }
 0x2d2   : > { %v5461_v44 = vsel %vm11040_vm12, %v5306_v18, %v5460_v12  ;;  %v9830_v2 = vpop.f32.mrb[227].mxu0  ;;  %v5314_v47 = vor.u32 %v5312_v25, %v5311_v21  ;;  %v5316_v49 = vrot.slane %v5311_v21, 4 }
 0x2d3   : > { %5462 = vst [vmem:[#allocation3 + $0x30] sm:$0xf] %v5461_v44  ;;  %v5318_v13 = vshrl.u32 %v9093_v9, 16  ;;  %v9094_v43 = vpack.c.bf16 %v5103_v54, %v5103_v54  ;;  %v5017_v8 = vadd.f32 %v9828_v50, %v12773_v60  ;;  %v9831_v56 = vadd.f32 %v9830_v2, %v9829_v57 }
 0x2d4   : > { %v5315_v30 = vsel %vm11015_vm11, %v5307_v35, %v5314_v47  ;;  %v5465_v29 = vsel %vm10923_vm3, %v5316_v49, %v5464_v52  ;;  %v5321_v36 = vshll.u32 %v9093_v9, 16 }
 0x2d5   : > { %v5320_v7 = vrot.slane %v5318_v13, 7  ;;  %5463 = vst [vmem:[#allocation3 + $0x34] sm:$0xf] %v5315_v30  ;;  %5466 = vst [vmem:[#allocation3 + $0x38] sm:$0x1] %v5465_v29  ;;  %v5326_v53 = vshrl.u32 %v9094_v43, 16  ;;  %v5084_v45 = vadd.f32 %v12805_v51, %v5017_v8  ;;  %v5018_v14 = vadd.f32 %v9831_v56, %v12776_v46 }
 0x2d6   : > { %v5329_v1 = vshll.u32 %v9094_v43, 16 }
 0x2d7   : > { %v5323_v27 = vor.u32 %v5321_v36, %v5320_v7  ;;  %v9832_v19 = vpop.f32.mrb[228].mxu0  ;;  %v5328_v60 = vrot.slane %v5326_v53, 7  ;;  %v5104_v28 = vmax.f32 %v5084_v45, 0.0  ;;  %v5085_v59 = vadd.f32 %v12805_v51, %v5018_v14  ;;  %v5481_v45 = vld [vmem:[#allocation3 + $0x54] sm:$0xf] }
 0x2d8   : > { %v9833_v16 = vpop.f32.mrb[229].mxu0  ;;  %v5324_v34 = vrot.slane %v5320_v7, 4 }
 0x2d9   : > { %v5468_v48 = vsel %vm11040_vm12, %v5323_v27, %v5467_v22  ;;  %v9834_v20 = vadd.f32 %v9833_v16, %v9832_v19  ;;  %v9835_v61 = vpop.f32.mrb[230].mxu0  ;;  %v5331_v37 = vor.u32 %v5329_v1, %v5328_v60  ;;  %v5333_v39 = vrot.slane %v5328_v60, 4 }
 0x2da   : > { %5469 = vst [vmem:[#allocation3 + $0x3c] sm:$0xf] %v5468_v48  ;;  %v9095_v31 = vpack.c.bf16 %v5104_v28, %v5104_v28  ;;  %v5105_v46 = vmax.f32 %v5085_v59, 0.0  ;;  %v9836_v10 = vpop.f32.mrb[231].mxu0 }
 0x2db   : > { %v5019_v24 = vadd.f32 %v9834_v20, %v12781_v17  ;;  %v9837_v42 = vadd.f32 %v9836_v10, %v9835_v61  ;;  %v5332_v63 = vsel %vm11015_vm11, %v5324_v34, %v5331_v37  ;;  %v5472_v5 = vsel %vm10923_vm3, %v5333_v39, %v5471_v26  ;;  %v5485_v20 = vld [vmem:[#allocation3 + $0x5c] sm:$0x1] }
 0x2dc   : > { %v5335_v0 = vshrl.u32 %v9095_v31, 16  ;;  %5470 = vst [vmem:[#allocation3 + $0x40] sm:$0xf] %v5332_v63  ;;  %5473 = vst [vmem:[#allocation3 + $0x44] sm:$0x1] %v5472_v5  ;;  %v9096_v41 = vpack.c.bf16 %v5105_v46, %v5105_v46  ;;  %v5338_v11 = vshll.u32 %v9095_v31, 16 }
 0x2dd   : > { %v5086_v12 = vadd.f32 %v12805_v51, %v5019_v24  ;;  %v5020_v32 = vadd.f32 %v9837_v42, %v12784_v15  ;;  %v5478_v15 = vld [vmem:[#allocation3 + $0x50] sm:$0x1] }
 0x2de   : > { %v5337_v58 = vrot.slane %v5335_v0, 7  ;;  %v5343_v18 = vshrl.u32 %v9096_v41, 16  ;;  %v5346_v9 = vshll.u32 %v9096_v41, 16 }
 0x2df   : > { %v5106_v17 = vmax.f32 %v5086_v12, 0.0  ;;  %v5087_v25 = vadd.f32 %v12805_v51, %v5020_v32  ;;  %v9838_v3 = vpop.f32.mrb[232].mxu0 }
 0x2e0   : > { %v5340_v21 = vor.u32 %v5338_v11, %v5337_v58  ;;  %v9839_v54 = vpop.f32.mrb[233].mxu0  ;;  %v5345_v50 = vrot.slane %v5343_v18, 7  ;;  %v5341_v49 = vrot.slane %v5337_v58, 4 }
 0x2e1   : > { %v9097_v57 = vpack.c.bf16 %v5106_v17, %v5106_v17  ;;  %v5107_v44 = vmax.f32 %v5087_v25, 0.0  ;;  %v9840_v52 = vadd.f32 %v9839_v54, %v9838_v3  ;;  %v9841_v2 = vpop.f32.mrb[234].mxu0 }
 0x2e2   : > { %v5475_v35 = vsel %vm11040_vm12, %v5340_v21, %v5474_v4  ;;  %v9842_v47 = vpop.f32.mrb[235].mxu0  ;;  %v5348_v13 = vor.u32 %v5346_v9, %v5345_v50  ;;  %v5350_v43 = vrot.slane %v5345_v50, 4  ;;  %v5488_v4 = vld [vmem:[#allocation3 + $0x60] sm:$0xf] }
 0x2e3   : > { %5476 = vst [vmem:[#allocation3 + $0x48] sm:$0xf] %v5475_v35  ;;  %v5352_v8 = vshrl.u32 %v9097_v57, 16  ;;  %v9098_v56 = vpack.c.bf16 %v5107_v44, %v5107_v44  ;;  %v5021_v30 = vadd.f32 %v9840_v52, %v12789_v40  ;;  %v9843_v29 = vadd.f32 %v9842_v47, %v9841_v2 }
 0x2e4   : > { %v5349_v7 = vsel %vm11015_vm11, %v5341_v49, %v5348_v13  ;;  %v5479_v36 = vsel %vm10923_vm3, %v5350_v43, %v5478_v15  ;;  %v5355_v53 = vshll.u32 %v9097_v57, 16  ;;  %v5492_v57 = vld [vmem:[#allocation3 + $0x68] sm:$0x1]  ;;  %v5495_v13 = vld [vmem:[#allocation3 + $0x6c] sm:$0xf] }
 0x2e5   : > { %v5354_v22 = vrot.slane %v5352_v8, 7  ;;  %5477 = vst [vmem:[#allocation3 + $0x4c] sm:$0xf] %v5349_v7  ;;  %5480 = vst [vmem:[#allocation3 + $0x50] sm:$0x1] %v5479_v36  ;;  %v5360_v14 = vshrl.u32 %v9098_v56, 16  ;;  %v5088_v27 = vadd.f32 %v12805_v51, %v5021_v30  ;;  %v5022_v19 = vadd.f32 %v9843_v29, %v12792_v6 }
 0x2e6   : > { %v5363_v28 = vshll.u32 %v9098_v56, 16  ;;  %v5499_v7 = vld [vmem:[#allocation3 + $0x74] sm:$0x1] }
 0x2e7   : > { %v5357_v60 = vor.u32 %v5355_v53, %v5354_v22  ;;  %v9844_v1 = vpop.f32.mrb[236].mxu0  ;;  %v5362_v40 = vrot.slane %v5360_v14, 7  ;;  %v5108_v59 = vmax.f32 %v5088_v27, 0.0  ;;  %v5089_v16 = vadd.f32 %v12805_v51, %v5022_v19 }
 0x2e8   : > { %v9845_v34 = vpop.f32.mrb[237].mxu0  ;;  %v5358_v48 = vrot.slane %v5354_v22, 4  ;;  %v10785_v27 = vmov (!%p8822_p2), 0  }
 0x2e9   : > { %v5482_v26 = vsel %vm11040_vm12, %v5357_v60, %v5481_v45  ;;  %v9846_v61 = vadd.f32 %v9845_v34, %v9844_v1  ;;  %v9847_v37 = vpop.f32.mrb[238].mxu0  ;;  %v5365_v39 = vor.u32 %v5363_v28, %v5362_v40  ;;  %v5367_v31 = vrot.slane %v5362_v40, 4  ;;  %5506 = vst [vmem:[#allocation3] sm:$0xf] (!%p8822_p2), %v10785_v27  ;;  %5507 = vst [vmem:[#allocation3 + $0x4] sm:$0xf] (!%p8822_p2), %v10785_v27 }
 0x2ea   : > { %5483 = vst [vmem:[#allocation3 + $0x54] sm:$0xf] %v5482_v26  ;;  %v9099_v46 = vpack.c.bf16 %v5108_v59, %v5108_v59  ;;  %v5109_v6 = vmax.f32 %v5089_v16, 0.0  ;;  %v9848_v10 = vpop.f32.mrb[239].mxu0  ;;  %5508 = vst [vmem:[#allocation3 + $0x8] sm:$0x1] (!%p8822_p2), %v10785_v27 }
 0x2eb   : > { %v5023_v24 = vadd.f32 %v9846_v61, %v12797_v33  ;;  %v9849_v42 = vadd.f32 %v9848_v10, %v9847_v37  ;;  %v5366_v63 = vsel %vm11015_vm11, %v5358_v48, %v5365_v39  ;;  %v5486_v5 = vsel %vm10923_vm3, %v5367_v31, %v5485_v20 }
 0x2ec   : > { %v5369_v0 = vshrl.u32 %v9099_v46, 16  ;;  %5484 = vst [vmem:[#allocation3 + $0x58] sm:$0xf] %v5366_v63  ;;  %5487 = vst [vmem:[#allocation3 + $0x5c] sm:$0x1] %v5486_v5  ;;  %v9100_v41 = vpack.c.bf16 %v5109_v6, %v5109_v6  ;;  %v5372_v11 = vshll.u32 %v9099_v46, 16 }
 0x2ed   : > { %v5090_v12 = vadd.f32 %v12805_v51, %v5023_v24  ;;  %v5024_v32 = vadd.f32 %v9849_v42, %v12800_v62 }
 0x2ee   : > { %v5371_v58 = vrot.slane %v5369_v0, 7  ;;  %v5377_v18 = vshrl.u32 %v9100_v41, 16  ;;  %v5380_v21 = vshll.u32 %v9100_v41, 16 }
 0x2ef   : > { %v5110_v33 = vmax.f32 %v5090_v12, 0.0  ;;  %v5091_v17 = vadd.f32 %v12805_v51, %v5024_v32 }
 0x2f0   : > { %v5374_v25 = vor.u32 %v5372_v11, %v5371_v58  ;;  %v5379_v3 = vrot.slane %v5377_v18, 7  ;;  %v5375_v44 = vrot.slane %v5371_v58, 4 }
 0x2f1   : > { %v9101_v9 = vpack.c.bf16 %v5110_v33, %v5110_v33  ;;  %v5111_v54 = vmax.f32 %v5091_v17, 0.0 }
 0x2f2   : > { %v5489_v50 = vsel %vm11040_vm12, %v5374_v25, %v5488_v4  ;;  %v5382_v52 = vor.u32 %v5380_v21, %v5379_v3  ;;  %v5384_v62 = vrot.slane %v5379_v3, 4 }
 0x2f3   : > { %5490 = vst [vmem:[#allocation3 + $0x60] sm:$0xf] %v5489_v50  ;;  %v5386_v2 = vshrl.u32 %v9101_v9, 16  ;;  %v9102_v35 = vpack.c.bf16 %v5111_v54, %v5111_v54  ;;  %v5389_v49 = vshll.u32 %v9101_v9, 16 }
 0x2f4   : > { %v5383_v15 = vsel %vm11015_vm11, %v5375_v44, %v5382_v52  ;;  %v5493_v51 = vsel %vm10923_vm3, %v5384_v62, %v5492_v57 }
 0x2f5   : > { %v5388_v47 = vrot.slane %v5386_v2, 7  ;;  %5491 = vst [vmem:[#allocation3 + $0x64] sm:$0xf] %v5383_v15  ;;  %5494 = vst [vmem:[#allocation3 + $0x68] sm:$0x1] %v5493_v51  ;;  %v5394_v43 = vshrl.u32 %v9102_v35, 16 }
 0x2f6   : > { %v5397_v30 = vshll.u32 %v9102_v35, 16  ;;  %5505 = sbr.rel (%p8822_p2) target bundleno = 765 (0x2fd), region = 64 }
 0x2f7   : > { %v5391_v8 = vor.u32 %v5389_v49, %v5388_v47  ;;  %v5396_v56 = vrot.slane %v5394_v43, 7  ;;  %v5392_v36 = vrot.slane %v5388_v47, 4 }
 0x2f9   : > { %v5496_v29 = vsel %vm11040_vm12, %v5391_v8, %v5495_v13  ;;  %v5399_v22 = vor.u32 %v5397_v30, %v5396_v56  ;;  %v5401_v53 = vrot.slane %v5396_v56, 4 }
 0x2fa   : > { %5497 = vst [vmem:[#allocation3 + $0x6c] sm:$0xf] %v5496_v29 }
 0x2fb   : > { %v5400_v45 = vsel %vm11015_vm11, %v5392_v36, %v5399_v22  ;;  %v5500_v14 = vsel %vm10923_vm3, %v5401_v53, %v5499_v7 }
 0x2fc   : > { %5498 = vst [vmem:[#allocation3 + $0x70] sm:$0xf] %v5400_v45  ;;  %5501 = vst [vmem:[#allocation3 + $0x74] sm:$0x1] %v5500_v14 }
 0x2fd PF: > { %p8823_p3 = scmp.ne.s32.totalorder %s10767_s13, 1 }
 0x2fe   : > { %v10786_v38 = vmov (!%p8823_p3), 0  }
 0x2ff   : > { %5512 = sbr.rel (%p8823_p3) target bundleno = 774 (0x306), region = 68  ;;  %5514 = vst [vmem:[#allocation3 + $0x6c] sm:$0xf] (!%p8823_p3), %v10786_v38  ;;  %5515 = vst [vmem:[#allocation3 + $0x70] sm:$0xf] (!%p8823_p3), %v10786_v38 }
 0x300   : > { %5516 = vst [vmem:[#allocation3 + $0x74] sm:$0x1] (!%p8823_p3), %v10786_v38 }
 0x306 PF: > { %v10663_v23 = vld [vmem:[%s13509_s8] sm:$0xff]   ;;  %v10664_v55 = vld [vmem:[%s13509_s8 + $0x8] sm:$0xff]   ;;  %v10665_v19 = vld [vmem:[%s13509_s8 + $0x10] sm:$0xff]  }
 0x307   : > { %9994 = vmatprep.subr.bf16.mxu1 %v10663_v23  ;;  %v10666_v60 = vld [vmem:[%s13509_s8 + $0x18] sm:$0xff]   ;;  %v10671_v1 = vld [vmem:[#allocation3] sm:$0xff]   ;;  %v10668_v28 = vld [vmem:[%s13509_s8 + $0x28] sm:$0xff]  }
 0x308   : > { %9995 = vmatpush3.bf16.msra.mxu1 %v10663_v23  ;;  %10010 = vmatprep.mubr.bf16.mxu1 %v10671_v1  ;;  %v10667_v40 = vld [vmem:[%s13509_s8 + $0x20] sm:$0xff]   ;;  %v10669_v59 = vld [vmem:[%s13509_s8 + $0x30] sm:$0xff]   ;;  %v10670_v16 = vld [vmem:[%s13509_s8 + $0x38] sm:$0xff]  }
 0x309   : > { %9996 = vmatprep.subr.bf16.mxu1 %v10664_v55  ;;  %v10673_v34 = vld [vmem:[%s13509_s8 + $0xc0] sm:$0xff]   ;;  %v10672_v48 = vld [vmem:[#allocation3 + $0xc] sm:$0xff]   ;;  %v12936_v26 = vld [vmem:[#allocation3 + $0x18] sm:$0xff]  }
 0x30a   : > { %v10674_v20 = vld [vmem:[%s13509_s8 + $0xc8] sm:$0xff]   ;;  %v10677_v61 = vld [vmem:[%s13509_s8 + $0xd0] sm:$0xff]   ;;  %v10678_v31 = vld [vmem:[%s13509_s8 + $0xd8] sm:$0xff]  }
 0x30b   : > { %v12945_v37 = vld [vmem:[#allocation3 + $0x24] sm:$0xff]   ;;  %v12947_v39 = vld [vmem:[#allocation3 + $0x30] sm:$0xff]   ;;  %v12957_v6 = vld [vmem:[#allocation3 + $0x3c] sm:$0xff]  }
 0x30c   : > { %9997 = vmatpush3.bf16.msra.mxu1 %v10664_v55  ;;  %v10681_v46 = vld [vmem:[%s13509_s8 + $0xe0] sm:$0xff]   ;;  %v12959_v10 = vld [vmem:[#allocation3 + $0x48] sm:$0xff]   ;;  %v10685_v42 = vld [vmem:[%s13509_s8 + $0xf0] sm:$0xff]  }
 0x30d   : > { %9998 = vmatprep.subr.bf16.mxu1 %v10665_v19  ;;  %v10682_v24 = vld [vmem:[%s13509_s8 + $0xe8] sm:$0xff]   ;;  %v12969_v63 = vld [vmem:[#allocation3 + $0x54] sm:$0xff]   ;;  %v10687_v0 = vld [vmem:[%s13509_s8 + $0x180] sm:$0xff]  }
 0x30e   : > { %v10686_v5 = vld [vmem:[%s13509_s8 + $0xf8] sm:$0xff]   ;;  %v10688_v41 = vld [vmem:[%s13509_s8 + $0x188] sm:$0xff]   ;;  %v10689_v12 = vld [vmem:[%s13509_s8 + $0x190] sm:$0xff]  }
 0x30f   : > { %v10690_v32 = vld [vmem:[%s13509_s8 + $0x198] sm:$0xff]   ;;  %v10691_v58 = vld [vmem:[%s13509_s8 + $0x1a0] sm:$0xff]   ;;  %v10692_v18 = vld [vmem:[%s13509_s8 + $0x1a8] sm:$0xff]  }
 0x310   : > { %9999 = vmatpush3.bf16.msra.mxu1 %v10665_v19  ;;  %v6194_v11 = vld [vmem:[#allocation3] sm:$0xf]  ;;  %v6195_v4 = vld [vmem:[#allocation3 + $0x4] sm:$0xf]  ;;  %v10694_v25 = vld [vmem:[%s13509_s8 + $0x1b0] sm:$0xff]  }
 0x311   : > { %10000 = vmatprep.subr.bf16.mxu1 %v10666_v60  ;;  %v6225_v33 = vshrl.u32 %v6194_v11, 16  ;;  %v6228_v17 = vshll.u32 %v6194_v11, 16  ;;  %v6234_v3 = vshll.u32 %v6195_v4, 16  ;;  %v6238_v21 = vshrl.u32 %v6195_v4, 16  ;;  %v13002_v9 = vld [vmem:[#allocation3 + $0x60] sm:$0xff]   ;;  %v10695_v35 = vld [vmem:[%s13509_s8 + $0x1b8] sm:$0xff]  }
 0x312   : > { %v6196_v54 = vld [vmem:[#allocation3 + $0x8] sm:$0x1]  ;;  %v6197_v50 = vld [vmem:[#allocation3 + $0xc] sm:$0xf]  ;;  %v6198_v2 = vld [vmem:[#allocation3 + $0x10] sm:$0xf] }
 0x313   : > { %v6227_v57 = vrot.slane %v6225_v33, 4  ;;  %v6230_v44 = vrot.slane %v6228_v17, 5  ;;  %v13004_v52 = vrot.slane %v6234_v3, 5  ;;  %v6240_v62 = vrot.slane %v6238_v21, 4  ;;  %v6199_v8 = vld [vmem:[#allocation3 + $0x14] sm:$0x1] }
 0x314   : > { %10001 = vmatpush3.bf16.msra.mxu1 %v10666_v60  ;;  %v6244_v15 = vshll.u32 %v6196_v54, 16  ;;  %v6249_v51 = vshrl.u32 %v6197_v50, 16  ;;  %v6252_v49 = vshll.u32 %v6197_v50, 16  ;;  %v6258_v13 = vshll.u32 %v6198_v2, 16  ;;  %v10696_v56 = vld [vmem:[%s13509_s8 + $0x40] sm:$0xff]   ;;  %v10697_v53 = vld [vmem:[%s13509_s8 + $0x48] sm:$0xff]  }
 0x315   : > { %10002 = vmatprep.subr.bf16.mxu1 %v10667_v40  ;;  %v6231_v47 = vor.u32 %v6230_v44, %v6227_v57  ;;  %v6241_v43 = vor.u32 %v6240_v62, %v13004_v52  ;;  %v6200_v30 = vld [vmem:[#allocation3 + $0x18] sm:$0xf]  ;;  %v6201_v29 = vld [vmem:[#allocation3 + $0x1c] sm:$0xf]  ;;  %v6262_v22 = vshrl.u32 %v6198_v2, 16  ;;  %v6268_v38 = vshll.u32 %v6199_v8, 16 }
 0x316   : > { %v13015_v7 = vrot.slane %v6244_v15, 5  ;;  %v13017_v36 = vrot.slane %v6249_v51, 4  ;;  %v6254_v14 = vrot.slane %v6252_v49, 5  ;;  %v13024_v27 = vrot.slane %v6258_v13, 5  ;;  %v6203_v1 = vld [vmem:[#allocation3 + $0x24] sm:$0xf] }
 0x317   : > { %v13022_v45 = vrot.slane %v6231_v47, 4  ;;  %v13026_v23 = vrot.slane %v6241_v43, 4  ;;  %v6273_v55 = vshrl.u32 %v6200_v30, 16  ;;  %v6276_v19 = vshll.u32 %v6200_v30, 16  ;;  %v6202_v17 = vld [vmem:[#allocation3 + $0x20] sm:$0x1] }
 0x318   : > { %10003 = vmatpush3.bf16.msra.mxu1 %v10667_v40  ;;  %v6282_v60 = vshll.u32 %v6201_v29, 16  ;;  %v6286_v40 = vshrl.u32 %v6201_v29, 16  ;;  %v6205_v21 = vld [vmem:[#allocation3 + $0x2c] sm:$0x1]  ;;  %v6207_v15 = vld [vmem:[#allocation3 + $0x34] sm:$0xf] }
 0x319   : > { %10004 = vmatprep.subr.bf16.mxu1 %v10668_v28  ;;  %v6208_v13 = vld [vmem:[#allocation3 + $0x38] sm:$0x1]  ;;  %v10700_v8 = vld [vmem:[%s13509_s8 + $0x60] sm:$0xff]  }
 0x31a   : > { %v13460_v57 = vld [vmem:[%s13510_s9] ss:$0 sm:$0xff] }
 0x31c   : > { %10005 = vmatpush3.bf16.msra.mxu1 %v10668_v28  ;;  %v6204_v28 = vld [vmem:[#allocation3 + $0x28] sm:$0xf] }
 0x31d   : > { %10006 = vmatprep.subr.bf16.mxu1 %v10669_v59  ;;  %v6306_v11 = vshll.u32 %v6204_v28, 16  ;;  %v6310_v3 = vshrl.u32 %v6204_v28, 16 }
 0x31f   : > { %v13073_v47 = vrot.slane %v6306_v11, 5  ;;  %v6312_v49 = vrot.slane %v6310_v3, 4 }
 0x320   : > { %10007 = vmatpush3.bf16.msra.mxu1 %v10669_v59  ;;  %v13031_v59 = vld [vmem:[%s13509_s8 + $0x200] sm:$0xff]  }
 0x321   : > { %10008 = vmatprep.subr.bf16.mxu1 %v10670_v16  ;;  %10250 = vmatprep.subr.bf16.mxu0 %v13031_v59  ;;  %v6313_v28 = vor.u32 %v6312_v49, %v13073_v47 }
 0x322   : > { %10251 = vmatpush3.bf16.msra.mxu0 %v13031_v59 }
 0x324   : > { %10009 = vmatpush3.bf16.msra.mxu1 %v10670_v16  ;;  %v10698_v16 = vld [vmem:[%s13509_s8 + $0x50] sm:$0xff]  }
 0x325   : > { %10026 = vmatprep.subr.bf16.mxu1 %v10673_v34 }
 0x327   : > { %10011 = vmatmul.mubr.bf16.vlgmr.msra.gmra.mrb[120].mxu1 %v10672_v48 }
 0x328   : > { %10027 = vmatpush3.bf16.msra.mxu1 %v10673_v34  ;;  %10014 = vmatprep.mubr.bf16.mxu1 %v12936_v26  ;;  %v6264_v34 = vrot.slane %v6262_v22, 4 }
 0x329   : > { %10028 = vmatprep.subr.bf16.mxu1 %v10674_v20 }
 0x32a   : > { %v6265_v33 = vor.u32 %v6264_v34, %v13024_v27 }
 0x32c   : > { %10029 = vmatpush3.bf16.msra.mxu1 %v10674_v20  ;;  %v7141_v20 = vld [vmem:[#allocation3 + $0x1c] sm:$0xf] }
 0x32d   : > { %10030 = vmatprep.subr.bf16.mxu1 %v10677_v61 }
 0x32f   : > { %10015 = vmatmul.mubr.bf16.gmra.mrb[124].mxu1 %v12945_v37 }
 0x330   : > { %10031 = vmatpush3.bf16.msra.mxu1 %v10677_v61  ;;  %10018 = vmatprep.mubr.bf16.mxu1 %v12947_v39  ;;  %v13038_v61 = vrot.slane %v6268_v38, 5  ;;  %v6209_v38 = vld [vmem:[#allocation3 + $0x3c] sm:$0xf] }
 0x331   : > { %10032 = vmatprep.subr.bf16.mxu1 %v10678_v31 }
 0x334   : > { %10033 = vmatpush3.bf16.msra.mxu1 %v10678_v31  ;;  %v7142_v31 = vld [vmem:[#allocation3 + $0x20] sm:$0x1] }
 0x335   : > { %10034 = vmatprep.subr.bf16.mxu1 %v10681_v46 }
 0x337   : > { %10019 = vmatmul.mubr.bf16.gmra.mrb[128].mxu1 %v12957_v6 }
 0x338   : > { %10035 = vmatpush3.bf16.msra.mxu1 %v10681_v46  ;;  %10022 = vmatprep.mubr.bf16.mxu1 %v12959_v10 }
 0x339   : > { %10036 = vmatprep.subr.bf16.mxu1 %v10682_v24 }
 0x33c   : > { %10037 = vmatpush3.bf16.msra.mxu1 %v10682_v24  ;;  %v7204_v24 = vrot.slane %v7141_v20, 5  ;;  %v13103_v20 = vld [vmem:[%s13509_s8 + $0x220] sm:$0xff]  }
 0x33d   : > { %10038 = vmatprep.subr.bf16.mxu1 %v10685_v42 }
 0x33e   : > { %v7206_v4 = vrot.slane %v7204_v24, 4 }
 0x33f   : > { %10023 = vmatmul.mubr.bf16.gmra.mrb[132].mxu1 %v12969_v63 }
 0x340   : > { %10039 = vmatpush3.bf16.msra.mxu1 %v10685_v42  ;;  %10042 = vmatprep.mubr.bf16.mxu1 %v10672_v48  ;;  %v6297_v48 = vshrl.u32 %v6203_v1, 16  ;;  %v13046_v42 = vrot.slane %v6273_v55, 4  ;;  %v10701_v55 = vld [vmem:[%s13509_s8 + $0x68] sm:$0xff]  }
 0x341   : > { %10040 = vmatprep.subr.bf16.mxu1 %v10686_v5 }
 0x344   : > { %10041 = vmatpush3.bf16.msra.mxu1 %v10686_v5  ;;  %v6300_v5 = vshll.u32 %v6203_v1, 16  ;;  %v6340_v1 = vshll.u32 %v6208_v13, 16  ;;  %v7145_v13 = vld [vmem:[#allocation3 + $0x2c] sm:$0x1] }
 0x345   : > { %10058 = vmatprep.subr.bf16.mxu1 %v10687_v0 }
 0x346   : > { %v6302_v2 = vrot.slane %v6300_v5, 5 }
 0x347   : > { %10043 = vmatmul.mubr.bf16.vlgmr.msra.gmra.mrb[120].mxu1 %v12936_v26 }
 0x348   : > { %10059 = vmatpush3.bf16.msra.mxu1 %v10687_v0  ;;  %10046 = vmatprep.mubr.bf16.mxu1 %v12945_v37  ;;  %v6206_v0 = vld [vmem:[#allocation3 + $0x30] sm:$0xf] }
 0x349   : > { %10060 = vmatprep.subr.bf16.mxu1 %v10688_v41  ;;  %v6321_v54 = vshrl.u32 %v6206_v0, 16  ;;  %v6324_v50 = vshll.u32 %v6206_v0, 16 }
 0x34b   : > { %v6323_v30 = vrot.slane %v6321_v54, 4  ;;  %v6326_v29 = vrot.slane %v6324_v50, 5  ;;  %v6211_v54 = vld [vmem:[#allocation3 + $0x44] sm:$0x1]  ;;  %v6213_v50 = vld [vmem:[#allocation3 + $0x4c] sm:$0xf] }
 0x34c   : > { %10061 = vmatpush3.bf16.msra.mxu1 %v10688_v41  ;;  %v7207_v41 = vrot.slane %v7142_v31, 5 }
 0x34d   : > { %10062 = vmatprep.subr.bf16.mxu1 %v10689_v12  ;;  %v6327_v34 = vor.u32 %v6326_v29, %v6323_v30 }
 0x34e   : > { %v7208_v62 = vsel %vm12076_vm6, %v7206_v4, %v7207_v41  ;;  %v13127_v4 = vld [vmem:[#allocation3 + $0x28] sm:$0xf] }
 0x34f   : > { %10047 = vmatmul.mubr.bf16.gmra.mrb[124].mxu1 %v12947_v39 }
 0x350   : > { %10063 = vmatpush3.bf16.msra.mxu1 %v10689_v12  ;;  %10050 = vmatprep.mubr.bf16.mxu1 %v12957_v6  ;;  %v10699_v12 = vld [vmem:[%s13509_s8 + $0x58] sm:$0xff]  }
 0x351   : > { %10064 = vmatprep.subr.bf16.mxu1 %v10690_v32 }
 0x354   : > { %10065 = vmatpush3.bf16.msra.mxu1 %v10690_v32  ;;  %v13054_v32 = vrot.slane %v6282_v60, 5  ;;  %v6334_v60 = vshrl.u32 %v6207_v15, 16 }
 0x355   : > { %10066 = vmatprep.subr.bf16.mxu1 %v10691_v58 }
 0x357   : > { %10051 = vmatmul.mubr.bf16.gmra.mrb[128].mxu1 %v12959_v10 }
 0x358   : > { %10067 = vmatpush3.bf16.msra.mxu1 %v10691_v58  ;;  %10054 = vmatprep.mubr.bf16.mxu1 %v12969_v63  ;;  %v6288_v58 = vrot.slane %v6286_v40, 4  ;;  %v13096_v40 = vld [vmem:[#allocation3 + $0x40] sm:$0xf] }
 0x359   : > { %10068 = vmatprep.subr.bf16.mxu1 %v10692_v18  ;;  %v6354_v11 = vshll.u32 %v13096_v40, 16 }
 0x35a   : > { %v6289_v22 = vor.u32 %v6288_v58, %v13054_v32  ;;  %v13124_v58 = vrot.slane %v6340_v1, 5  ;;  %v13194_v1 = vld [vmem:[#allocation3 + $0x50] sm:$0x1] }
 0x35c   : > { %10069 = vmatpush3.bf16.msra.mxu1 %v10692_v18  ;;  %v6255_v18 = vor.u32 %v6254_v14, %v13017_v36  ;;  %v6330_v14 = vshll.u32 %v6207_v15, 16 }
 0x35d   : > { %10070 = vmatprep.subr.bf16.mxu1 %v10694_v25 }
 0x35e   : > { %v13071_v51 = vrot.slane %v6255_v18, 4  ;;  %v13118_v41 = vrot.slane %v6330_v14, 5  ;;  %v13133_v18 = vrot.slane %v6327_v34, 4  ;;  %v6364_v14 = vshll.u32 %v6211_v54, 16 }
 0x35f   : > { %10055 = vmatmul.mubr.bf16.gmra.mrb[132].mxu1 %v13002_v9  ;;  %v6388_v54 = vshll.u32 %v13194_v1, 16 }
 0x360   : > { %10071 = vmatpush3.bf16.msra.mxu1 %v10694_v25  ;;  %10074 = vmatprep.mubr.bf16.mxu1 %v12936_v26  ;;  %v7140_v26 = vld [vmem:[#allocation3 + $0x18] sm:$0xe]  ;;  %v6299_v25 = vrot.slane %v6297_v48, 4  ;;  %v6345_v48 = vshrl.u32 %v6209_v38, 16  ;;  %v6261_v3 = vsel %vm11506_vm2, %v13071_v51, %v13024_v27 }
 0x361   : > { %10072 = vmatprep.subr.bf16.mxu1 %v10695_v35  ;;  %v8974_v46 = vrot.slane %v7140_v26, 9  ;;  %v6348_v26 = vshll.u32 %v6209_v38, 16  ;;  %v10704_v27 = vld [vmem:[%s13509_s8 + $0x78] sm:$0xff]   ;;  %v6378_v38 = vshll.u32 %v6213_v50, 16 }
 0x363   : > { %v7205_v44 = vsel %vm12076_vm6, %v8974_v46, %v7204_v24  ;;  %v6290_v46 = vrot.slane %v6289_v22, 4  ;;  %v10703_v24 = vld [vmem:[%s13509_s8 + $0x70] sm:$0xff]  }
 0x364   : > { %10073 = vmatpush3.bf16.msra.mxu1 %v10695_v35  ;;  %v13067_v35 = vld [vmem:[%s13509_s8 + $0x210] sm:$0xff]   ;;  %v13075_v43 = vcombine.low %v7205_v44, %v7208_v62  ;;  %v6358_v62 = vshrl.u32 %v13096_v40, 16 }
 0x365   : > { %10090 = vmatprep.subr.bf16.mxu1 %v10696_v56  ;;  %v13157_v44 = vld [vmem:[#allocation3 + $0x34] sm:$0xf]  ;;  %v7146_v22 = vld [vmem:[#allocation3 + $0x30] sm:$0xe] }
 0x366   : > { %10266 = vmatprep.mubr.bf16.mxu0 %v13075_v43 }
 0x367   : > { %10075 = vmatmul.mubr.bf16.vlgmr.msra.gmra.mrb[120].mxu1 %v12945_v37  ;;  %v13044_v37 = vld [vmem:[%s13509_s8 + $0x208] sm:$0xff]  }
 0x368   : > { %10091 = vmatpush3.bf16.msra.mxu1 %v10696_v56  ;;  %10078 = vmatprep.mubr.bf16.mxu1 %v12947_v39  ;;  %v13048_v39 = vrot.slane %v6276_v19, 5  ;;  %v13080_v56 = vrot.slane %v6265_v33, 4  ;;  %v6303_v19 = vor.u32 %v6302_v2, %v6299_v25  ;;  %v13135_v33 = vrot.slane %v6345_v48, 4  ;;  %v13142_v25 = vld [vmem:[%s13509_s8 + $0x228] sm:$0xff]  }
 0x369   : > { %10092 = vmatprep.subr.bf16.mxu1 %v10697_v53  ;;  %10252 = vmatprep.subr.bf16.mxu0 %v13044_v37  ;;  %v7211_v2 = vrot.slane %v13127_v4, 5  ;;  %v8976_v48 = vrot.slane %v7146_v22, 9  ;;  %v13212_v4 = vrot.slane %v6364_v14, 5 }
 0x36a   : > { %10253 = vmatpush3.bf16.msra.mxu0 %v13044_v37  ;;  %v6279_v36 = vor.u32 %v13048_v39, %v13046_v42  ;;  %v6237_v39 = vsel %vm11506_vm2, %v13022_v45, %v13004_v52  ;;  %v13114_v5 = vrot.slane %v6303_v19, 4  ;;  %v10702_v52 = vld [vmem:[#allocation3 + $0x6c] sm:$0xff]   ;;  %v6247_v45 = vsel %vm11506_vm2, %v13026_v23, %v13015_v7  ;;  %v10705_v19 = vld [vmem:[%s13509_s8 + $0x100] sm:$0xff]  }
 0x36b   : > { %10254 = vmatprep.subr.bf16.mxu0 %v13067_v35  ;;  %v6271_v7 = vsel %vm11506_vm2, %v13080_v56, %v13038_v61  ;;  %v7143_v61 = vld [vmem:[#allocation3 + $0x24] sm:$0xe]  ;;  %v13178_v56 = vld [vmem:[%s13509_s8 + $0x230] sm:$0xff]  }
 0x36c   : > { %10093 = vmatpush3.bf16.msra.mxu1 %v10697_v53  ;;  %v6316_v53 = vshll.u32 %v6205_v21, 16  ;;  %v6280_v31 = vrot.slane %v6279_v36, 4  ;;  %v13166_v15 = vcombine.low %v6261_v3, %v6271_v7  ;;  %v6309_v49 = vsel %vm11506_vm2, %v13114_v5, %v13073_v47  ;;  %v6216_v3 = vld [vmem:[#allocation3 + $0x58] sm:$0xf] }
 0x36d   : > { %10094 = vmatprep.subr.bf16.mxu1 %v10698_v16  ;;  %v13186_v47 = vrot.slane %v6354_v11, 5  ;;  %v8975_v40 = vrot.slane %v7143_v61, 9  ;;  %v6360_v5 = vrot.slane %v6358_v62, 4  ;;  %v7151_v62 = vld [vmem:[#allocation3 + $0x44] sm:$0x1] }
 0x36e   : > { %10255 = vmatpush3.bf16.msra.mxu0 %v13067_v35  ;;  %v13116_v0 = vrot.slane %v6316_v53, 5  ;;  %v6285_v23 = vsel %vm11506_vm2, %v6280_v31, %v13054_v32  ;;  %v8906_v32 = vcombine.low %v6237_v39, %v6247_v45  ;;  %v7148_v53 = vld [vmem:[#allocation3 + $0x38] sm:$0x1]  ;;  %v6333_v39 = vsel %vm11506_vm2, %v13133_v18, %v13118_v41  ;;  %v7155_v18 = vld [vmem:[#allocation3 + $0x54] sm:$0xe] }
 0x36f   : > { %10079 = vmatmul.mubr.bf16.gmra.mrb[124].mxu1 %v12957_v6  ;;  %v6292_v6 = vshll.u32 %v6202_v17, 16  ;;  %v6212_v17 = vld [vmem:[#allocation3 + $0x48] sm:$0xf]  ;;  %v7221_v31 = vrot.slane %v7148_v53, 5  ;;  %v7212_v7 = vsel %vm12076_vm6, %v8975_v40, %v7211_v2 }
 0x370   : > { %10095 = vmatpush3.bf16.msra.mxu1 %v10698_v16  ;;  %10082 = vmatprep.mubr.bf16.mxu1 %v12959_v10  ;;  %v13086_v10 = vld [vmem:[%s13509_s8 + $0x218] sm:$0xff]   ;;  %v6369_v29 = vshrl.u32 %v6212_v17, 16  ;;  %v6372_v36 = vshll.u32 %v6212_v17, 16 }
 0x371   : > { %10096 = vmatprep.subr.bf16.mxu1 %v10699_v12  ;;  %10256 = vmatprep.subr.bf16.mxu0 %v13086_v10  ;;  %v6294_v16 = vrot.slane %v6292_v6, 5 }
 0x372   : > { %10257 = vmatpush3.bf16.msra.mxu0 %v13086_v10 }
 0x373   : > { %10258 = vmatprep.subr.bf16.mxu0 %v13103_v20  ;;  %v6295_v21 = vsel %vm11506_vm2, %v6290_v46, %v6294_v16  ;;  %v7214_v16 = vrot.slane %v7145_v13, 5  ;;  %v13198_v46 = vld [vmem:[#allocation3 + $0x40] sm:$0xf] }
 0x374   : > { %10097 = vmatpush3.bf16.msra.mxu1 %v10699_v12  ;;  %v13122_v12 = vrot.slane %v6334_v60, 4  ;;  %v13168_v51 = vcombine.low %v6285_v23, %v6295_v21  ;;  %v7225_v21 = vrot.slane %v13198_v46, 5 }
 0x375   : > { %10098 = vmatprep.subr.bf16.mxu1 %v10700_v8 }
 0x376   : > { %10259 = vmatpush3.bf16.msra.mxu0 %v13103_v20  ;;  %v6337_v30 = vor.u32 %v13122_v12, %v13118_v41  ;;  %v13209_v12 = vld [vmem:[#allocation3 + $0x4c] sm:$0xf] }
 0x377   : > { %10083 = vmatmul.mubr.bf16.gmra.mrb[128].mxu1 %v12969_v63  ;;  %v6314_v63 = vrot.slane %v6313_v28, 4  ;;  %10260 = vmatprep.subr.bf16.mxu0 %v13142_v25  ;;  %v7213_v28 = vrot.slane %v7211_v2, 4  ;;  %v7232_v61 = vrot.slane %v13209_v12, 5  ;;  %v6361_v2 = vor.u32 %v6360_v5, %v13186_v47 }
 0x378   : > { %10099 = vmatpush3.bf16.msra.mxu1 %v10700_v8  ;;  %10086 = vmatprep.mubr.bf16.mxu1 %v13002_v9  ;;  %v13137_v9 = vrot.slane %v6348_v26, 5  ;;  %v7218_v8 = vrot.slane %v13157_v44, 5  ;;  %v6338_v11 = vrot.slane %v6337_v30, 4  ;;  %v7154_v30 = vld [vmem:[#allocation3 + $0x50] sm:$0x1] }
 0x379   : > { %10100 = vmatprep.subr.bf16.mxu1 %v10701_v55  ;;  %v6319_v6 = vsel %vm11506_vm2, %v6314_v63, %v13116_v0  ;;  %v6371_v0 = vrot.slane %v6369_v29, 4  ;;  %v6374_v63 = vrot.slane %v6372_v36, 5  ;;  %v7215_v23 = vsel %vm12076_vm6, %v7213_v28, %v7214_v16 }
 0x37a   : > { %10261 = vmatpush3.bf16.msra.mxu0 %v13142_v25  ;;  %v6351_v60 = vor.u32 %v13137_v9, %v13135_v33  ;;  %v13196_v34 = vcombine.low %v6309_v49, %v6319_v6  ;;  %v7220_v26 = vrot.slane %v7218_v8, 4  ;;  %v6215_v33 = vld [vmem:[#allocation3 + $0x54] sm:$0xf]  ;;  %v10706_v9 = vld [vmem:[%s13509_s8 + $0x108] sm:$0xff]   ;;  %v6402_v29 = vshll.u32 %v6216_v3, 16 }
 0x37b   : > { %10262 = vmatprep.subr.bf16.mxu0 %v13178_v56  ;;  %v6393_v49 = vshrl.u32 %v6215_v33, 16  ;;  %v6396_v13 = vshll.u32 %v6215_v33, 16  ;;  %v7152_v6 = vld [vmem:[#allocation3 + $0x48] sm:$0xe]  ;;  %v6406_v36 = vshrl.u32 %v6216_v3, 16  ;;  %v13237_v22 = vcombine.low %v7212_v7, %v7215_v23  ;;  %v10708_v7 = vld [vmem:[%s13509_s8 + $0x118] sm:$0xff]  }
 0x37c   : > { %10101 = vmatpush3.bf16.msra.mxu1 %v10701_v55  ;;  %v6382_v55 = vshrl.u32 %v6213_v50, 16  ;;  %v13220_v17 = vrot.slane %v6351_v60, 4  ;;  %v7219_v50 = vsel %vm12076_vm6, %v8976_v48, %v7218_v8  ;;  %v7222_v44 = vsel %vm12076_vm6, %v7220_v26, %v7221_v31  ;;  %v10707_v60 = vld [vmem:[%s13509_s8 + $0x110] sm:$0xff]  }
 0x37d   : > { %10102 = vmatprep.subr.bf16.mxu1 %v10703_v24  ;;  %v13240_v53 = vcombine.low %v7219_v50, %v7222_v44  ;;  %v6343_v1 = vsel %vm11506_vm2, %v6338_v11, %v13124_v58  ;;  %v8978_v40 = vrot.slane %v7152_v6, 9  ;;  %v7234_v28 = vrot.slane %v7232_v61, 4 }
 0x37e   : > { %10263 = vmatpush3.bf16.msra.mxu0 %v13178_v56  ;;  %v6384_v45 = vrot.slane %v6382_v55, 4  ;;  %v7228_v55 = vrot.slane %v7151_v62, 5  ;;  %v7235_v16 = vrot.slane %v7154_v30, 5  ;;  %v6362_v48 = vrot.slane %v6361_v2, 4 }
 0x37f   : > { %10087 = vmatmul.mubr.bf16.gmra.mrb[132].mxu1 %v10702_v52  ;;  %v13214_v52 = vrot.slane %v6378_v38, 5  ;;  %v7227_v38 = vrot.slane %v7225_v21, 4  ;;  %v6390_v31 = vrot.slane %v6388_v54, 5  ;;  %v6395_v46 = vrot.slane %v6393_v49, 4 }
 0x380   : > { %10103 = vmatpush3.bf16.msra.mxu1 %v10703_v24  ;;  %10106 = vmatprep.mubr.bf16.mxu1 %v8906_v32  ;;  %v13203_v24 = vld [vmem:[%s13509_s8 + $0x238] sm:$0xff]   ;;  %v6375_v32 = vor.u32 %v6374_v63, %v6371_v0  ;;  %v6398_v63 = vrot.slane %v6396_v13, 5  ;;  %v6404_v12 = vrot.slane %v6402_v29, 5  ;;  %v13255_v58 = vcombine.low %v6333_v39, %v6343_v1 }
 0x381   : > { %10104 = vmatprep.subr.bf16.mxu1 %v10704_v27  ;;  %10264 = vmatprep.subr.bf16.mxu0 %v13203_v24  ;;  %v6385_v8 = vor.u32 %v6384_v45, %v13214_v52  ;;  %v6217_v0 = vld [vmem:[#allocation3 + $0x5c] sm:$0x1]  ;;  %v6408_v45 = vrot.slane %v6406_v36, 4  ;;  %v7229_v33 = vsel %vm12076_vm6, %v7227_v38, %v7228_v55  ;;  %v7236_v41 = vsel %vm12076_vm6, %v7234_v28, %v7235_v16  ;;  %v10710_v36 = vld [vmem:[%s13509_s8 + $0x128] sm:$0xff]   ;;  %v10713_v28 = vld [vmem:[%s13509_s8 + $0x1c0] sm:$0xff]  }
 0x382   : > { %10265 = vmatpush3.bf16.msra.mxu0 %v13203_v24  ;;  %v6376_v26 = vrot.slane %v6375_v32, 4  ;;  %v7157_v39 = vld [vmem:[#allocation3 + $0x5c] sm:$0x1]  ;;  %v6357_v23 = vsel %vm11506_vm2, %v13220_v17, %v13186_v47  ;;  %v6412_v50 = vshll.u32 %v6217_v0, 16  ;;  %v10714_v16 = vld [vmem:[%s13509_s8 + $0x1c8] sm:$0xff]  }
 0x383   : > { %v6386_v5 = vrot.slane %v6385_v8, 4  ;;  %v6409_v62 = vor.u32 %v6408_v45, %v6404_v12  ;;  %v7242_v2 = vrot.slane %v7157_v39, 5 }
 0x384   : > { %10105 = vmatpush3.bf16.msra.mxu1 %v10704_v27  ;;  %v7149_v27 = vld [vmem:[#allocation3 + $0x3c] sm:$0xe]  ;;  %v6381_v54 = vsel %vm11506_vm2, %v6376_v26, %v13214_v52  ;;  %v10709_v52 = vld [vmem:[%s13509_s8 + $0x120] sm:$0xff]   ;;  %v6414_v13 = vrot.slane %v6412_v50, 5 }
 0x385   : > { %10122 = vmatprep.subr.bf16.mxu1 %v10705_v19  ;;  %v8977_v14 = vrot.slane %v7149_v27, 9  ;;  %10267 = vmatmul.mubr.bf16.vlgmr.msra.gmra.mrb[240].mxu0 %v13237_v22  ;;  %v6391_v44 = vsel %vm11506_vm2, %v6386_v5, %v6390_v31  ;;  %v6399_v27 = vor.u32 %v6398_v63, %v6395_v46  ;;  %v6410_v30 = vrot.slane %v6409_v62, 4  ;;  %v10715_v5 = vld [vmem:[%s13509_s8 + $0x1d0] sm:$0xff]   ;;  %v10720_v62 = vld [vmem:[%s13509_s8 + $0x1f8] sm:$0xff]  }
 0x386   : > { %10270 = vmatprep.mubr.bf16.mxu0 %v13240_v53  ;;  %v13293_v49 = vcombine.low %v6381_v54, %v6391_v44  ;;  %v10719_v44 = vld [vmem:[%s13509_s8 + $0x1f0] sm:$0xff]  }
 0x387   : > { %10107 = vmatmul.mubr.bf16.vlgmr.msra.gmra.mrb[120].mxu1 %v13166_v15  ;;  %v7226_v11 = vsel %vm12076_vm6, %v8977_v14, %v7225_v21  ;;  %v6367_v21 = vsel %vm11506_vm2, %v6362_v48, %v13212_v4  ;;  %v8979_v4 = vrot.slane %v7155_v18, 9  ;;  %v6400_v6 = vrot.slane %v6399_v27, 4  ;;  %v6219_v48 = vld [vmem:[#allocation3 + $0x64] sm:$0xf] }
 0x388   : > { %10123 = vmatpush3.bf16.msra.mxu1 %v10705_v19  ;;  %10110 = vmatprep.mubr.bf16.mxu1 %v13168_v51  ;;  %v7156_v19 = vld [vmem:[#allocation3 + $0x58] sm:$0xf]  ;;  %v13291_v32 = vcombine.low %v6357_v23, %v6367_v21  ;;  %v6415_v55 = vsel %vm11506_vm2, %v6410_v30, %v6414_v13  ;;  %v6668_v31 = vshll.u32 %v6219_v48, 16  ;;  %v6672_v46 = vshrl.u32 %v6219_v48, 16  ;;  %v10718_v21 = vld [vmem:[%s13509_s8 + $0x1e8] sm:$0xff]  }
 0x389   : > { %10124 = vmatprep.subr.bf16.mxu1 %v10706_v9  ;;  %v7239_v3 = vrot.slane %v7156_v19, 5  ;;  %v6405_v38 = vsel %vm11506_vm2, %v6400_v6, %v6404_v12  ;;  %v6218_v19 = vld [vmem:[#allocation3 + $0x60] sm:$0xf] }
 0x38a   : > { %v13314_v1 = vcombine.low %v6405_v38, %v6415_v55  ;;  %v6659_v26 = vshrl.u32 %v6218_v19, 16  ;;  %v6670_v12 = vrot.slane %v6668_v31, 5  ;;  %v6674_v45 = vrot.slane %v6672_v46, 4 }
 0x38b   : > { %v7241_v17 = vrot.slane %v7239_v3, 4  ;;  %v7240_v8 = vsel %vm12076_vm6, %v8979_v4, %v7239_v3  ;;  %v10721_v4 = vld [vmem:[%s13509_s8 + $0x80] sm:$0xff]  }
 0x38c   : > { %10125 = vmatpush3.bf16.msra.mxu1 %v10706_v9  ;;  %v7233_v9 = vsel %vm12076_vm6, %v8978_v40, %v7232_v61  ;;  %v13281_v61 = vcombine.low %v7226_v11, %v7229_v33  ;;  %v10712_v40 = vld [vmem:[%s13509_s8 + $0x138] sm:$0xff]   ;;  %v6661_v0 = vrot.slane %v6659_v26, 4  ;;  %v6220_v33 = vld [vmem:[#allocation3 + $0x68] sm:$0x1]  ;;  %v7134_v26 = vld [vmem:[#allocation3] sm:$0xe] }
 0x38d   : > { %10126 = vmatprep.subr.bf16.mxu1 %v10707_v60  ;;  %v13284_v47 = vcombine.low %v7233_v9, %v7236_v41  ;;  %v7243_v29 = vsel %vm12076_vm6, %v7241_v17, %v7242_v2  ;;  %v10716_v11 = vld [vmem:[%s13509_s8 + $0x1d8] sm:$0xff]   ;;  %v6678_v9 = vshll.u32 %v6220_v33, 16  ;;  %v10717_v41 = vld [vmem:[%s13509_s8 + $0x1e0] sm:$0xff]   ;;  %v10722_v17 = vld [vmem:[%s13509_s8 + $0x88] sm:$0xff]  }
 0x38e   : > { %10271 = vmatmul.mubr.bf16.gmra.mrb[244].mxu0 %v13281_v61  ;;  %v13303_v14 = vcombine.low %v7240_v8, %v7243_v29  ;;  %v6221_v2 = vld [vmem:[#allocation3 + $0x6c] sm:$0xf]  ;;  %v10723_v8 = vld [vmem:[%s13509_s8 + $0x90] sm:$0xff]  }
 0x38f   : > { %10111 = vmatmul.mubr.bf16.gmra.mrb[124].mxu1 %v13196_v34  ;;  %10274 = vmatprep.mubr.bf16.mxu0 %v13284_v47  ;;  %v6680_v23 = vrot.slane %v6678_v9, 5  ;;  %v6897_v13 = vshrl.u32 %v6221_v2, 16  ;;  %v7137_v9 = vld [vmem:[#allocation3 + $0xc] sm:$0xe] }
 0x390   : > { %10127 = vmatpush3.bf16.msra.mxu1 %v10707_v60  ;;  %10114 = vmatprep.mubr.bf16.mxu1 %v13255_v58  ;;  %v10711_v60 = vld [vmem:[%s13509_s8 + $0x130] sm:$0xff]  }
 0x391   : > { %10128 = vmatprep.subr.bf16.mxu1 %v10708_v7  ;;  %v6899_v29 = vrot.slane %v6897_v13, 4  ;;  %v10739_v13 = vld [vmem:[%s13509_s8 + $0x168] sm:$0xff]  }
 0x394   : > { %10129 = vmatpush3.bf16.msra.mxu1 %v10708_v7  ;;  %v6675_v7 = vor.u32 %v6674_v45, %v6670_v12 }
 0x395   : > { %10130 = vmatprep.subr.bf16.mxu1 %v10709_v52 }
 0x396   : > { %10275 = vmatmul.mubr.bf16.gmra.mrb[248].mxu0 %v13303_v14  ;;  %v6676_v39 = vrot.slane %v6675_v7, 4 }
 0x397   : > { %10115 = vmatmul.mubr.bf16.gmra.mrb[128].mxu1 %v13291_v32 }
 0x398   : > { %10131 = vmatpush3.bf16.msra.mxu1 %v10709_v52  ;;  %10118 = vmatprep.mubr.bf16.mxu1 %v13293_v49  ;;  %v6681_v50 = vsel %vm11506_vm2, %v6676_v39, %v6680_v23  ;;  %v6222_v52 = vld [vmem:[#allocation3 + $0x70] sm:$0xf]  ;;  %v8973_v23 = vrot.slane %v7137_v9, 9 }
 0x399   : > { %10132 = vmatprep.subr.bf16.mxu1 %v10710_v36  ;;  %v6906_v6 = vshll.u32 %v6222_v52, 16  ;;  %v6910_v30 = vshrl.u32 %v6222_v52, 16  ;;  %v10737_v52 = vld [vmem:[%s13509_s8 + $0x160] sm:$0xff]  }
 0x39b   : > { %v6908_v38 = vrot.slane %v6906_v6, 5  ;;  %v6912_v55 = vrot.slane %v6910_v30, 4  ;;  %v10743_v6 = vld [vmem:[%s13509_s8 + $0x178] sm:$0xff]   ;;  %v7159_v30 = vld [vmem:[#allocation3 + $0x64] sm:$0xf] }
 0x39c   : > { %10133 = vmatpush3.bf16.msra.mxu1 %v10710_v36 }
 0x39d   : > { %10134 = vmatprep.subr.bf16.mxu1 %v10711_v60 }
 0x39f   : > { %10119 = vmatmul.mubr.bf16.gmra.mrb[132].mxu1 %v13314_v1 }
 0x3a0   : > { %10135 = vmatpush3.bf16.msra.mxu1 %v10711_v60  ;;  %10138 = vmatprep.mubr.bf16.mxu1 %v13166_v15  ;;  %v6662_v15 = vshll.u32 %v6218_v19, 16  ;;  %v7135_v60 = vld [vmem:[#allocation3 + $0x4] sm:$0xf] }
 0x3a1   : > { %10136 = vmatprep.subr.bf16.mxu1 %v10712_v40  ;;  %v10725_v19 = vld [vmem:[%s13509_s8 + $0xa0] sm:$0xff]   ;;  %v7190_v48 = vrot.slane %v7135_v60, 5 }
 0x3a2   : > { %v6664_v63 = vrot.slane %v6662_v15, 5  ;;  %v7136_v15 = vld [vmem:[#allocation3 + $0x8] sm:$0x1] }
 0x3a4   : > { %10137 = vmatpush3.bf16.msra.mxu1 %v10712_v40  ;;  %v6665_v3 = vor.u32 %v6664_v63, %v6661_v0  ;;  %v7192_v0 = vrot.slane %v7190_v48, 4  ;;  %v7193_v63 = vrot.slane %v7136_v15, 5 }
 0x3a5   : > { %10154 = vmatprep.subr.bf16.mxu1 %v10713_v28 }
 0x3a6   : > { %v6666_v18 = vrot.slane %v6665_v3, 4  ;;  %v10727_v3 = vld [vmem:[%s13509_s8 + $0xb0] sm:$0xff]  }
 0x3a7   : > { %10139 = vmatmul.mubr.bf16.vlgmr.msra.gmra.mrb[120].mxu1 %v13168_v51 }
 0x3a8   : > { %10155 = vmatpush3.bf16.msra.mxu1 %v10713_v28  ;;  %10142 = vmatprep.mubr.bf16.mxu1 %v13196_v34  ;;  %v6671_v54 = vsel %vm11506_vm2, %v6666_v18, %v6670_v12  ;;  %v6913_v28 = vor.u32 %v6912_v55, %v6908_v38  ;;  %v7138_v12 = vld [vmem:[#allocation3 + $0x10] sm:$0xf] }
 0x3a9   : > { %10156 = vmatprep.subr.bf16.mxu1 %v10714_v16  ;;  %v8938_v27 = vcombine.low %v6671_v54, %v6681_v50  ;;  %v7197_v33 = vrot.slane %v7138_v12, 5  ;;  %v10728_v54 = vld [vmem:[%s13509_s8 + $0xb8] sm:$0xff]  }
 0x3aa   : > { %v6914_v46 = vrot.slane %v6913_v28, 4 }
 0x3ab   : > { %v7199_v42 = vrot.slane %v7197_v33, 4  ;;  %v7198_v50 = vsel %vm12076_vm6, %v8973_v23, %v7197_v33 }
 0x3ac   : > { %10157 = vmatpush3.bf16.msra.mxu1 %v10714_v16 }
 0x3ad   : > { %10158 = vmatprep.subr.bf16.mxu1 %v10715_v5 }
 0x3af   : > { %10143 = vmatmul.mubr.bf16.gmra.mrb[124].mxu1 %v13255_v58 }
 0x3b0   : > { %10159 = vmatpush3.bf16.msra.mxu1 %v10715_v5  ;;  %10146 = vmatprep.mubr.bf16.mxu1 %v13291_v32 }
 0x3b1   : > { %10160 = vmatprep.subr.bf16.mxu1 %v10716_v11 }
 0x3b4   : > { %10161 = vmatpush3.bf16.msra.mxu1 %v10716_v11 }
 0x3b5   : > { %10162 = vmatprep.subr.bf16.mxu1 %v10717_v41 }
 0x3b7   : > { %10147 = vmatmul.mubr.bf16.gmra.mrb[128].mxu1 %v13293_v49 }
 0x3b8   : > { %10163 = vmatpush3.bf16.msra.mxu1 %v10717_v41  ;;  %10150 = vmatprep.mubr.bf16.mxu1 %v13314_v1  ;;  %v7139_v41 = vld [vmem:[#allocation3 + $0x14] sm:$0x1] }
 0x3b9   : > { %10164 = vmatprep.subr.bf16.mxu1 %v10718_v21 }
 0x3bc   : > { %10165 = vmatpush3.bf16.msra.mxu1 %v10718_v21  ;;  %v7200_v21 = vrot.slane %v7139_v41, 5 }
 0x3bd   : > { %10166 = vmatprep.subr.bf16.mxu1 %v10719_v44 }
 0x3bf   : > { %10151 = vmatmul.mubr.bf16.gmra.mrb[132].mxu1 %v8938_v27 }
 0x3c0   : > { %10167 = vmatpush3.bf16.msra.mxu1 %v10719_v44  ;;  %10170 = vmatprep.mubr.bf16.mxu1 %v13168_v51  ;;  %v6900_v51 = vshll.u32 %v6221_v2, 16  ;;  %v7201_v44 = vsel %vm12076_vm6, %v7199_v42, %v7200_v21  ;;  %v10735_v2 = vld [vmem:[%s13509_s8 + $0x158] sm:$0xff]  }
 0x3c1   : > { %10168 = vmatprep.subr.bf16.mxu1 %v10720_v62 }
 0x3c2   : > { %v6902_v36 = vrot.slane %v6900_v51, 5  ;;  %v10741_v51 = vld [vmem:[%s13509_s8 + $0x170] sm:$0xff]  }
 0x3c4   : > { %10169 = vmatpush3.bf16.msra.mxu1 %v10720_v62  ;;  %v6903_v40 = vor.u32 %v6902_v36, %v6899_v29  ;;  %v8997_v62 = vcombine.low %v7198_v50, %v7201_v44 }
 0x3c5   : > { %10186 = vmatprep.subr.bf16.mxu1 %v10721_v4 }
 0x3c6   : > { %v6904_v31 = vrot.slane %v6903_v40, 4 }
 0x3c7   : > { %10171 = vmatmul.mubr.bf16.vlgmr.msra.gmra.mrb[120].mxu1 %v13196_v34  ;;  %v10724_v34 = vld [vmem:[%s13509_s8 + $0x98] sm:$0xff]  }
 0x3c8   : > { %10187 = vmatpush3.bf16.msra.mxu1 %v10721_v4  ;;  %10174 = vmatprep.mubr.bf16.mxu1 %v13255_v58  ;;  %v6223_v58 = vld [vmem:[#allocation3 + $0x74] sm:$0x1]  ;;  %v6909_v45 = vsel %vm11506_vm2, %v6904_v31, %v6908_v38  ;;  %v10731_v4 = vld [vmem:[%s13509_s8 + $0x148] sm:$0xff]  }
 0x3c9   : > { %10188 = vmatprep.subr.bf16.mxu1 %v10722_v17  ;;  %v6916_v16 = vshll.u32 %v6223_v58, 16  ;;  %v7163_v38 = vld [vmem:[#allocation3 + $0x74] sm:$0x1] }
 0x3ca   : > { %v7718_v55 = vrot.slane %v7163_v38, 5 }
 0x3cb   : > { %v6918_v5 = vrot.slane %v6916_v16, 5 }
 0x3cc   : > { %10189 = vmatpush3.bf16.msra.mxu1 %v10722_v17  ;;  %v10733_v17 = vld [vmem:[%s13509_s8 + $0x150] sm:$0xff]  }
 0x3cd   : > { %10190 = vmatprep.subr.bf16.mxu1 %v10723_v8  ;;  %v6919_v11 = vsel %vm11506_vm2, %v6914_v46, %v6918_v5 }
 0x3ce   : > { %v8963_v18 = vcombine.low %v6909_v45, %v6919_v11 }
 0x3cf   : > { %10175 = vmatmul.mubr.bf16.gmra.mrb[124].mxu1 %v13291_v32  ;;  %v10726_v32 = vld [vmem:[%s13509_s8 + $0xa8] sm:$0xff]  }
 0x3d0   : > { %10191 = vmatpush3.bf16.msra.mxu1 %v10723_v8  ;;  %10178 = vmatprep.mubr.bf16.mxu1 %v13293_v49  ;;  %v8972_v49 = vrot.slane %v7134_v26, 9  ;;  %v7491_v8 = vrot.slane %v7159_v30, 5 }
 0x3d1   : > { %10192 = vmatprep.subr.bf16.mxu1 %v10724_v34 }
 0x3d2   : > { %v7191_v7 = vsel %vm12076_vm6, %v8972_v49, %v7190_v48  ;;  %v7493_v29 = vrot.slane %v7491_v8, 4 }
 0x3d4   : > { %10193 = vmatpush3.bf16.msra.mxu1 %v10724_v34 }
 0x3d5   : > { %10194 = vmatprep.subr.bf16.mxu1 %v10725_v19 }
 0x3d7   : > { %10179 = vmatmul.mubr.bf16.gmra.mrb[128].mxu1 %v13314_v1  ;;  %v7194_v1 = vsel %vm12076_vm6, %v7192_v0, %v7193_v63 }
 0x3d8   : > { %10195 = vmatpush3.bf16.msra.mxu1 %v10725_v19  ;;  %10182 = vmatprep.mubr.bf16.mxu1 %v8938_v27  ;;  %v8996_v39 = vcombine.low %v7191_v7, %v7194_v1  ;;  %v10729_v27 = vld [vmem:[%s13509_s8 + $0x140] sm:$0xff]  }
 0x3d9   : > { %10196 = vmatprep.subr.bf16.mxu1 %v10726_v32 }
 0x3dc   : > { %10197 = vmatpush3.bf16.msra.mxu1 %v10726_v32 }
 0x3dd   : > { %10198 = vmatprep.subr.bf16.mxu1 %v10727_v3 }
 0x3df   : > { %10183 = vmatmul.mubr.bf16.gmra.mrb[132].mxu1 %v8963_v18 }
 0x3e0   : > { %10199 = vmatpush3.bf16.msra.mxu1 %v10727_v3  ;;  %10202 = vmatprep.mubr.bf16.mxu1 %v8996_v39 }
 0x3e1   : > { %10200 = vmatprep.subr.bf16.mxu1 %v10728_v54 }
 0x3e4   : > { %10201 = vmatpush3.bf16.msra.mxu1 %v10728_v54 }
 0x3e5   : > { %10218 = vmatprep.subr.bf16.mxu1 %v10729_v27 }
 0x3e7   : > { %10203 = vmatmul.mubr.bf16.vlgmr.msra.gmra.mrb[120].mxu1 %v8997_v62 }
 0x3e8   : > { %10219 = vmatpush3.bf16.msra.mxu1 %v10729_v27  ;;  %10206 = vmatprep.mubr.bf16.mxu1 %v13075_v43 }
 0x3e9   : > { %10220 = vmatprep.subr.bf16.mxu1 %v10731_v4 }
 0x3ec   : > { %10221 = vmatpush3.bf16.msra.mxu1 %v10731_v4 }
 0x3ed   : > { %10222 = vmatprep.subr.bf16.mxu1 %v10733_v17 }
 0x3ef   : > { %10207 = vmatmul.mubr.bf16.gmra.mrb[124].mxu1 %v13237_v22 }
 0x3f0   : > { %10223 = vmatpush3.bf16.msra.mxu1 %v10733_v17  ;;  %10210 = vmatprep.mubr.bf16.mxu1 %v13240_v53 }
 0x3f1   : > { %10224 = vmatprep.subr.bf16.mxu1 %v10735_v2 }
 0x3f4   : > { %10225 = vmatpush3.bf16.msra.mxu1 %v10735_v2 }
 0x3f5   : > { %10226 = vmatprep.subr.bf16.mxu1 %v10737_v52 }
 0x3f7   : > { %10211 = vmatmul.mubr.bf16.gmra.mrb[128].mxu1 %v13281_v61 }
 0x3f8   : > { %10227 = vmatpush3.bf16.msra.mxu1 %v10737_v52  ;;  %10214 = vmatprep.mubr.bf16.mxu1 %v13284_v47 }
 0x3f9   : > { %10228 = vmatprep.subr.bf16.mxu1 %v10739_v13 }
 0x3fc   : > { %10229 = vmatpush3.bf16.msra.mxu1 %v10739_v13 }
 0x3fd   : > { %10230 = vmatprep.subr.bf16.mxu1 %v10741_v51 }
 0x3ff   : > { %10215 = vmatmul.mubr.bf16.gmra.mrb[132].mxu1 %v13303_v14 }
 0x400   : > { %10231 = vmatpush3.bf16.msra.mxu1 %v10741_v51  ;;  %10234 = vmatprep.mubr.bf16.mxu1 %v8997_v62 }
 0x401   : > { %10232 = vmatprep.subr.bf16.mxu1 %v10743_v6 }
 0x404   : > { %10233 = vmatpush3.bf16.msra.mxu1 %v10743_v6 }
 0x405   : > { %10282 = vmatprep.subr.bf16.mxu1 %v13031_v59 }
 0x407   : > { %10235 = vmatmul.mubr.bf16.vlgmr.msra.gmra.mrb[120].mxu1 %v13075_v43  ;;  %v7158_v43 = vld [vmem:[#allocation3 + $0x60] sm:$0xe] }
 0x408   : > { %10290 = vmatpush3.bf16.msra.mxu1 %v13031_v59  ;;  %10238 = vmatprep.mubr.bf16.mxu1 %v13237_v22  ;;  %v7160_v59 = vld [vmem:[#allocation3 + $0x68] sm:$0x1]  ;;  %v9012_v22 = vrot.slane %v7158_v43, 9 }
 0x409   : > { %10283 = vmatprep.subr.bf16.mxu1 %v13044_v37  ;;  %v7494_v36 = vrot.slane %v7160_v59, 5 }
 0x40c   : > { %10291 = vmatpush3.bf16.msra.mxu1 %v13044_v37  ;;  %v7492_v37 = vsel %vm12076_vm6, %v9012_v22, %v7491_v8 }
 0x40d   : > { %10284 = vmatprep.subr.bf16.mxu1 %v13067_v35 }
 0x40f   : > { %10239 = vmatmul.mubr.bf16.gmra.mrb[124].mxu1 %v13240_v53 }
 0x410   : > { %10292 = vmatpush3.bf16.msra.mxu1 %v13067_v35  ;;  %10242 = vmatprep.mubr.bf16.mxu1 %v13281_v61  ;;  %v7495_v35 = vsel %vm12076_vm6, %v7493_v29, %v7494_v36 }
 0x411   : > { %10285 = vmatprep.subr.bf16.mxu1 %v13086_v10  ;;  %v9029_v53 = vcombine.low %v7492_v37, %v7495_v35 }
 0x414   : > { %10293 = vmatpush3.bf16.msra.mxu1 %v13086_v10  ;;  %v7162_v10 = vld [vmem:[#allocation3 + $0x70] sm:$0xf] }
 0x415   : > { %10286 = vmatprep.subr.bf16.mxu1 %v13103_v20  ;;  %v7715_v61 = vrot.slane %v7162_v10, 5 }
 0x417   : > { %10243 = vmatmul.mubr.bf16.gmra.mrb[128].mxu1 %v13284_v47  ;;  %v7161_v47 = vld [vmem:[#allocation3 + $0x6c] sm:$0xe] }
 0x418   : > { %10294 = vmatpush3.bf16.msra.mxu1 %v13103_v20  ;;  %10246 = vmatprep.mubr.bf16.mxu1 %v13303_v14  ;;  %v9038_v20 = vrot.slane %v7161_v47, 9  ;;  %v7717_v14 = vrot.slane %v7715_v61, 4 }
 0x419   : > { %10287 = vmatprep.subr.bf16.mxu1 %v13142_v25 }
 0x41a   : > { %v7716_v34 = vsel %vm12076_vm6, %v9038_v20, %v7715_v61 }
 0x41c   : > { %10295 = vmatpush3.bf16.msra.mxu1 %v13142_v25  ;;  %v7719_v25 = vsel %vm12076_vm6, %v7717_v14, %v7718_v55 }
 0x41d   : > { %10288 = vmatprep.subr.bf16.mxu1 %v13178_v56  ;;  %v9055_v58 = vcombine.low %v7716_v34, %v7719_v25 }
 0x41f   : > { %10247 = vmatmul.mubr.bf16.gmra.mrb[132].mxu1 %v9029_v53 }
 0x420   : > { %10296 = vmatpush3.bf16.msra.mxu1 %v13178_v56  ;;  %10278 = vmatprep.mubr.bf16.mxu1 %v9029_v53 }
 0x421   : > { %10289 = vmatprep.subr.bf16.mxu1 %v13203_v24 }
 0x424   : > { %10297 = vmatpush3.bf16.msra.mxu1 %v13203_v24 }
 0x42b   : > { %10279 = vmatmul.mubr.bf16.vlgmr.msra.gmra.mrb[132].mxu1 %v9055_v58 }
 0x458   : > { %v10268_v60 = vpop.f32.mrb[240].mxu0 }
 0x459   : > { %v7823_v40 = vpop.f32.mrb[241].mxu0 }
 0x45a   : > { %v10269_v28 = vpop.f32.mrb[242].mxu0 }
 0x45b   : > { %v7826_v56 = vpop.f32.mrb[243].mxu0 }
 0x461   : > { %v10272_v16 = vpop.f32.mrb[244].mxu0 }
 0x462   : > { %v7839_v19 = vpop.f32.mrb[245].mxu0 }
 0x463   : > { %v10273_v48 = vpop.f32.mrb[246].mxu0 }
 0x464   : > { %v7842_v26 = vpop.f32.mrb[247].mxu0 }
 0x469   : > { %v10276_v15 = vpop.f32.mrb[248].mxu0 }
 0x46a   : > { %v7855_v31 = vpop.f32.mrb[249].mxu0 }
 0x46b   : > { %v10277_v46 = vpop.f32.mrb[250].mxu0 }
 0x46c   : > { %v7858_v24 = vpop.f32.mrb[251].mxu0 }
 0x4da   : > { %v10236_v5 = vpop.f32.mrb[120].mxu1 }
 0x4db   : > { %v10298_v32 = vadd.f32 %v10268_v60, %v10236_v5  ;;  %v7599_v49 = vpop.f32.mrb[121].mxu1 }
 0x4dc   : > { %v10299_v0 = vadd.f32 %v7823_v40, %v7599_v49  ;;  %v10237_v63 = vpop.f32.mrb[122].mxu1 }
 0x4dd   : > { %v7959_v12 = vadd.f32 %v10298_v32, %v13460_v57  ;;  %v10300_v45 = vadd.f32 %v10269_v28, %v10237_v63  ;;  %v7602_v11 = vpop.f32.mrb[123].mxu1 }
 0x4de   : > { %v7957_v33 = vadd.f32 %v10299_v0, %v13460_v57  ;;  %v10301_v3 = vadd.f32 %v7826_v56, %v7602_v11 }
 0x4df   : > { %v7960_v7 = vadd.f32 %v10300_v45, %v13460_v57  ;;  %v7975_v9 = vmax.f32 %v7959_v12, 0.0 }
 0x4e0   : > { %v7958_v1 = vadd.f32 %v10301_v3, %v13460_v57  ;;  %v7973_v18 = vmax.f32 %v7957_v33, 0.0 }
 0x4e1   : > { %v7976_v41 = vmax.f32 %v7960_v7, 0.0 }
 0x4e2   : > { %v7974_v39 = vmax.f32 %v7958_v1, 0.0  ;;  %v10240_v23 = vpop.f32.mrb[124].mxu1 }
 0x4e3   : > { %v9127_v42 = vpack.c.bf16 %v7976_v41, %v7975_v9  ;;  %v10302_v21 = vadd.f32 %v10272_v16, %v10240_v23  ;;  %v7615_v54 = vpop.f32.mrb[125].mxu1 }
 0x4e4   : > { %v9122_v50 = vpack.c.bf16 %v7974_v39, %v7973_v18  ;;  %v10303_v44 = vadd.f32 %v7839_v19, %v7615_v54  ;;  %v10241_v27 = vpop.f32.mrb[126].mxu1 }
 0x4e5   : > { %9159 = vst [vmem:[%s10974_s27 + $0x8] sm:$0xff] %v9127_v42   ;;  %v7963_v62 = vadd.f32 %v10302_v21, %v13460_v57  ;;  %v10304_v4 = vadd.f32 %v10273_v48, %v10241_v27  ;;  %v7618_v17 = vpop.f32.mrb[127].mxu1 }
 0x4e6   : > { %9123 = vst [vmem:[%s10974_s27] sm:$0xff] %v9122_v50   ;;  %v7961_v2 = vadd.f32 %v10303_v44, %v13460_v57  ;;  %v10305_v52 = vadd.f32 %v7842_v26, %v7618_v17 }
 0x4e7   : > { %v7964_v13 = vadd.f32 %v10304_v4, %v13460_v57  ;;  %v7979_v6 = vmax.f32 %v7963_v62, 0.0 }
 0x4e8   : > { %v7962_v51 = vadd.f32 %v10305_v52, %v13460_v57  ;;  %v7977_v8 = vmax.f32 %v7961_v2, 0.0 }
 0x4e9   : > { %v7980_v30 = vmax.f32 %v7964_v13, 0.0 }
 0x4ea   : > { %v7978_v43 = vmax.f32 %v7962_v51, 0.0  ;;  %v10244_v59 = vpop.f32.mrb[128].mxu1 }
 0x4eb   : > { %v9137_v22 = vpack.c.bf16 %v7980_v30, %v7979_v6  ;;  %v10306_v29 = vadd.f32 %v10276_v15, %v10244_v59  ;;  %v7631_v36 = vpop.f32.mrb[129].mxu1 }
 0x4ec   : > { %v9132_v37 = vpack.c.bf16 %v7978_v43, %v7977_v8  ;;  %v10307_v35 = vadd.f32 %v7855_v31, %v7631_v36  ;;  %v10245_v10 = vpop.f32.mrb[130].mxu1 }
 0x4ed   : > { %9161 = vst [vmem:[%s10974_s27 + $0x18] sm:$0xff] %v9137_v22   ;;  %v7967_v53 = vadd.f32 %v10306_v29, %v13460_v57  ;;  %v10308_v61 = vadd.f32 %v10277_v46, %v10245_v10  ;;  %v7634_v47 = vpop.f32.mrb[131].mxu1 }
 0x4ee   : > { %9160 = vst [vmem:[%s10974_s27 + $0x10] sm:$0xff] %v9132_v37   ;;  %v7965_v38 = vadd.f32 %v10307_v35, %v13460_v57  ;;  %v10309_v20 = vadd.f32 %v7858_v24, %v7634_v47 }
 0x4ef   : > { %v7968_v14 = vadd.f32 %v10308_v61, %v13460_v57  ;;  %v7983_v34 = vmax.f32 %v7967_v53, 0.0 }
 0x4f0   : > { %v7966_v55 = vadd.f32 %v10309_v20, %v13460_v57  ;;  %v7981_v58 = vmax.f32 %v7965_v38, 0.0 }
 0x4f1   : > { %v7984_v25 = vmax.f32 %v7968_v14, 0.0 }
 0x4f2   : > { %v7982_v60 = vmax.f32 %v7966_v55, 0.0 }
 0x4f3   : > { %v9147_v40 = vpack.c.bf16 %v7984_v25, %v7983_v34 }
 0x4f4   : > { %v9142_v28 = vpack.c.bf16 %v7982_v60, %v7981_v58 }
 0x4f5   : > { %9163 = vst [vmem:[%s10974_s27 + $0x28] sm:$0xff] %v9147_v40  }
 0x4f6   : > { %9162 = vst [vmem:[%s10974_s27 + $0x20] sm:$0xff] %v9142_v28  }
 0x4fe   : > { %v10280_v56 = vpop.f32.mrb[132].mxu1 }
 0x4ff   : > { %v7971_v16 = vadd.f32 %v10280_v56, %v13460_v57  ;;  %v7871_v19 = vpop.f32.mrb[133].mxu1 }
 0x500   : > { %v7969_v48 = vadd.f32 %v13460_v57, %v7871_v19  ;;  %v10281_v26 = vpop.f32.mrb[134].mxu1 }
 0x501   : > { %v7972_v15 = vadd.f32 %v10281_v26, %v13460_v57  ;;  %v7874_v31 = vpop.f32.mrb[135].mxu1  ;;  %v7987_v24 = vmax.f32 %v7971_v16, 0.0 }
 0x502   : > { %v7970_v46 = vadd.f32 %v13460_v57, %v7874_v31  ;;  %v7985_v32 = vmax.f32 %v7969_v48, 0.0 }
 0x503   : > { %v7988_v5 = vmax.f32 %v7972_v15, 0.0 }
 0x504   : > { %v7986_v49 = vmax.f32 %v7970_v46, 0.0 }
 0x505   : > { %v9157_v0 = vpack.c.bf16 %v7988_v5, %v7987_v24 }
 0x506   : > { %v9152_v63 = vpack.c.bf16 %v7986_v49, %v7985_v32 }
 0x507   : > { %9165 = vst [vmem:[%s10974_s27 + $0x38] sm:$0xff] %v9157_v0  }
 0x508   : > { %9164 = vst [vmem:[%s10974_s27 + $0x30] sm:$0xff] %v9152_v63  }
 0x509 PF: > { %s20_s17 = sadd.s32 1, %s10783_s17   ;;  %s13603_s14 = sld [smem:[#allocation6_spill]] }
 0x50a   : > { %p17_p4 = scmp.ge.s32.totalorder %s20_s17, 6   ;;  %s13604_s24 = sld [smem:[#allocation7_spill]] }
 0x50b   : > { %s13605_s16 = sld [smem:[#allocation8_spill]]  ;;  %s13606_s13 = smov %s10775_s15 }
 0x50c   :  { %19 = sbr.rel (!%p17_p4) target bundleno = 3 (0x3), region = 132 }
 0x510   : > { %s13607_s15 = smov %s13604_s24 }

</bundles_post_ra>
